<compile_context>
chip_gen: v6e
topology: v6e:2x2x1
jax: 0.10.0
libtpu: 0.0.40
codegen_flags: <defaults>
</compile_context>

<pallas_src>
import functools

import jax
import jax.numpy as jnp
from jax import lax
from jax.experimental import pallas as pl
from jax.experimental.pallas import tpu as pltpu


# ----------------------------- hardware-aware knobs -----------------------------

@functools.lru_cache(maxsize=None)
def _vmem_limit_bytes():
    """~75% of physical VMEM: ~96 MiB on v5e/v6e (128 MiB), ~48 MiB on v7x (64 MiB)."""
    try:
        cap = int(pltpu.get_tpu_info().vmem_capacity_bytes)
    except Exception:  # no info available -> assume v7x-sized (smallest) VMEM
        cap = 64 * 1024 * 1024
    return min((cap * 3) // 4, 100 * 1024 * 1024)


def _compiler_params(dimension_semantics):
    return pltpu.CompilerParams(dimension_semantics=dimension_semantics,
                                vmem_limit_bytes=_vmem_limit_bytes())


def _pick_tile(dim, candidates):
    """Largest aligned candidate that divides `dim`, else the full dim (always legal)."""
    for t in candidates:
        if dim % t == 0:
            return t
    return dim


def _pick_head_group(num_heads, head_dim):
    """Smallest head group whose merged width Hb*Dh is lane-dense (multiple of 128).
    The fallback (all heads -> width == C == full array dim) stays VMEM-safe because the
    flash-style q/kv tiling bounds the per-head score tile to (tq, tk)."""
    for hb in range(1, num_heads + 1):
        if num_heads % hb == 0 and (hb * head_dim) % 128 == 0:
            return hb
    return num_heads


# --------------------- QKV projection: x @ [Wq Wk Wv] (no bias) ---------------------
# Emits q, k, v as three separate (tokens, C) bf16 arrays in merged-head layout, so the
# attention kernel consumes them directly (no XLA reshape/transpose between kernels).

def _qkv_kernel(x_ref, wq_ref, wk_ref, wv_ref, q_ref, k_ref, v_ref,
                q_acc, k_acc, v_acc):
    kk = pl.program_id(2)

    @pl.when(kk == 0)
    def _():
        q_acc[...] = jnp.zeros_like(q_acc)
        k_acc[...] = jnp.zeros_like(k_acc)
        v_acc[...] = jnp.zeros_like(v_acc)

    x = x_ref[...]  # (tm, tk) bf16, reused for all three dots (one DMA, 3x MXU reuse)
    q_acc[...] += jnp.dot(x, wq_ref[...], preferred_element_type=jnp.float32)
    k_acc[...] += jnp.dot(x, wk_ref[...], preferred_element_type=jnp.float32)
    v_acc[...] += jnp.dot(x, wv_ref[...], preferred_element_type=jnp.float32)

    @pl.when(kk == pl.num_programs(2) - 1)
    def _():
        q_ref[...] = q_acc[...].astype(q_ref.dtype)
        k_ref[...] = k_acc[...].astype(k_ref.dtype)
        v_ref[...] = v_acc[...].astype(v_ref.dtype)


def _qkv_projection(x2d, wq, wk, wv):
    """x2d: (Mp, C) bf16; wq/wk/wv: (C, C) bf16 -> three (Mp, C) bf16 (qkv_bias=False)."""
    Mp, K = x2d.shape
    C = wq.shape[1]
    tm = _pick_tile(Mp, (512, 256, 128))
    tn = _pick_tile(C, (1024, 512, 256, 128))
    tk = _pick_tile(K, (512, 256, 128))

    out = jax.ShapeDtypeStruct((Mp, C), jnp.bfloat16)
    w_spec = pl.BlockSpec((tk, tn), lambda i, j, k: (k, j))
    o_spec = pl.BlockSpec((tm, tn), lambda i, j, k: (i, j))

    return pl.pallas_call(
        _qkv_kernel,
        out_shape=(out, out, out),
        grid_spec=pltpu.PrefetchScalarGridSpec(
            num_scalar_prefetch=0,
            grid=(Mp // tm, C // tn, K // tk),
            in_specs=[pl.BlockSpec((tm, tk), lambda i, j, k: (i, k)),
                      w_spec, w_spec, w_spec],
            out_specs=[o_spec, o_spec, o_spec],
            scratch_shapes=[pltpu.VMEM((tm, tn), jnp.float32)] * 3,
        ),
        compiler_params=_compiler_params(("parallel", "parallel", "arbitrary")),
        cost_estimate=pl.CostEstimate(
            flops=2 * Mp * 3 * C * K,
            transcendentals=0,
            bytes_accessed=2 * (Mp * K + 3 * K * C + 3 * Mp * C),
        ),
    )(x2d, wq, wk, wv)


# ------------------------- output projection: x @ W + b -------------------------

def _proj_kernel(x_ref, w_ref, b_ref, o_ref, acc_ref):
    kk = pl.program_id(2)

    @pl.when(kk == 0)
    def _():
        acc_ref[...] = jnp.zeros_like(acc_ref)

    acc_ref[...] += jnp.dot(x_ref[...], w_ref[...],
                            preferred_element_type=jnp.float32)

    @pl.when(kk == pl.num_programs(2) - 1)
    def _():
        o_ref[...] = (acc_ref[...] + b_ref[...].astype(jnp.float32)).astype(o_ref.dtype)


def _proj_linear(x2d, w, b, out_dtype):
    Mp, K = x2d.shape
    Nout = w.shape[1]
    tm = _pick_tile(Mp, (512, 256, 128))
    tn = _pick_tile(Nout, (1024, 512, 256, 128))
    tk = _pick_tile(K, (512, 256, 128))

    return pl.pallas_call(
        _proj_kernel,
        out_shape=jax.ShapeDtypeStruct((Mp, Nout), out_dtype),
        grid_spec=pltpu.PrefetchScalarGridSpec(
            num_scalar_prefetch=0,
            grid=(Mp // tm, Nout // tn, K // tk),
            in_specs=[
                pl.BlockSpec((tm, tk), lambda i, j, k: (i, k)),
                pl.BlockSpec((tk, tn), lambda i, j, k: (k, j)),
                pl.BlockSpec((1, tn), lambda i, j, k: (0, j)),
            ],
            out_specs=pl.BlockSpec((tm, tn), lambda i, j, k: (i, j)),
            scratch_shapes=[pltpu.VMEM((tm, tn), jnp.float32)],
        ),
        compiler_params=_compiler_params(("parallel", "parallel", "arbitrary")),
        cost_estimate=pl.CostEstimate(
            flops=2 * Mp * Nout * K,
            transcendentals=0,
            bytes_accessed=2 * Mp * K + 2 * K * Nout + 4 * Nout + 4 * Mp * Nout,
        ),
    )(x2d, w, b.reshape(1, Nout))


# ---------------- flash-style attention over merged-head (tokens, C) arrays ----------------

def _flash_attn_kernel(q_ref, k_ref, v_ref, o_ref, m_sc, l_sc, acc_sc, *,
                       scale, heads_per_group, head_dim):
    ki = pl.program_id(3)

    @pl.when(ki == 0)
    def _():
        m_sc[...] = jnp.full_like(m_sc, -jnp.inf)
        l_sc[...] = jnp.zeros_like(l_sc)
        acc_sc[...] = jnp.zeros_like(acc_sc)

    for h in range(heads_per_group):
        sl = slice(h * head_dim, (h + 1) * head_dim)
        q_h = q_ref[:, sl] * scale                 # (tq, Dh) bf16; scale folded into q
        k_h = k_ref[:, sl]                         # (tk, Dh) bf16
        v_h = v_ref[:, sl]                         # (tk, Dh) bf16

        # s[n, m] = sum_d q[n, d] * k[m, d]: contraction on the minor dim of both
        # operands, so no k transpose / relayout is emitted.
        s = lax.dot_general(q_h, k_h, (((1,), (1,)), ((), ())),
                            preferred_element_type=jnp.float32)     # (tq, tk) f32

        m_prev = m_sc[h]                                            # (tq, 1) f32
        m_new = jnp.maximum(m_prev, jnp.max(s, axis=-1, keepdims=True))
        alpha = jnp.exp(m_prev - m_new)
        p = jnp.exp(s - m_new)                                      # (tq, tk) f32
        l_sc[h] = alpha * l_sc[h] + jnp.sum(p, axis=-1, keepdims=True)
        acc_sc[:, sl] = alpha * acc_sc[:, sl] + jnp.dot(
            p.astype(v_h.dtype), v_h, preferred_element_type=jnp.float32)
        m_sc[h] = m_new

    @pl.when(ki == pl.num_programs(3) - 1)
    def _():
        for h in range(heads_per_group):
            sl = slice(h * head_dim, (h + 1) * head_dim)
            # exact divide (f32): O(tq*Dh) work, negligible next to the matmuls, and it
            # avoids the approximate-reciprocal accuracy loss flagged in review.
            o_ref[:, sl] = (acc_sc[:, sl] / l_sc[h]).astype(o_ref.dtype)


def _flash_attention(q2d, k2d, v2d, *, batch, seq_len, num_heads, head_dim):
    """q2d/k2d/v2d: (Mp, C) bf16 merged-head layout; rows >= batch*seq_len are padding
    and are never touched by the grid.  Output (Mp, C) bf16, heads already merged."""
    Mp, C = q2d.shape
    hb = _pick_head_group(num_heads, head_dim)
    groups = num_heads // hb
    gd = hb * head_dim                       # merged lane width of one head group

    tq = _pick_tile(seq_len, (256, 128, 64, 32, 16, 8))
    tk = _pick_tile(seq_len, (512, 256, 128, 64, 32, 16, 8))
    # TODO(synk): pad + mask the q/kv axes for sequence lengths not divisible by 8.
    nq = seq_len // tq
    nk = seq_len // tk

    def q_map(b, g, qi, ki):
        return (b * nq + qi, g)

    def kv_map(b, g, qi, ki):
        return (b * nk + ki, g)

    kv_kwargs = {}
    if nk >= 3:
        # deeper kv pipelining once there are enough kv steps (hides DMA on v7x HBM)
        kv_kwargs["pipeline_mode"] = pl.Buffered(3)

    kernel = functools.partial(_flash_attn_kernel,
                               scale=float(head_dim) ** -0.5,
                               heads_per_group=hb, head_dim=head_dim)

    return pl.pallas_call(
        kernel,
        out_shape=jax.ShapeDtypeStruct((Mp, C), jnp.bfloat16),
        grid_spec=pltpu.PrefetchScalarGridSpec(
            num_scalar_prefetch=0,
            grid=(batch, groups, nq, nk),
            in_specs=[
                pl.BlockSpec((tq, gd), q_map),
                pl.BlockSpec((tk, gd), kv_map, **kv_kwargs),
                pl.BlockSpec((tk, gd), kv_map, **kv_kwargs),
            ],
            out_specs=pl.BlockSpec((tq, gd), q_map),
            scratch_shapes=[
                pltpu.VMEM((hb, tq, 1), jnp.float32),   # running row max
                pltpu.VMEM((hb, tq, 1), jnp.float32),   # running softmax denom
                pltpu.VMEM((tq, gd), jnp.float32),      # output accumulator (merged heads)
            ],
        ),
        compiler_params=_compiler_params(
            ("parallel", "parallel", "parallel", "arbitrary")),
        cost_estimate=pl.CostEstimate(
            flops=4 * batch * num_heads * seq_len * seq_len * head_dim,
            transcendentals=batch * num_heads * seq_len * seq_len,
            bytes_accessed=8 * batch * seq_len * C,
        ),
    )(q2d, k2d, v2d)


# ---------------------------------- full forward ----------------------------------

def ssast_attention(x, qkv_w, proj_w, proj_b, num_heads):
    """Pallas TPU forward pass equivalent to SSASTAttention.forward (eval mode)."""
    B, N, C = x.shape
    H = num_heads
    assert C % H == 0, "dim should be divisible by num_heads"
    Dh = C // H
    M = B * N

    # bf16 operands for every matmul (MXU peak dtype on v5e/v6e/v7x), f32 accumulation.
    xb = x.reshape(M, C).astype(jnp.bfloat16)

    # Pad the token axis so the linears always get 128-aligned row tiles instead of a
    # single full-M block (B*N is rarely 128-divisible at real SSAST lengths).
    quantum = 512 if M >= 2048 else 256
    Mp = -(-M // quantum) * quantum
    if Mp != M:
        xb = jnp.pad(xb, ((0, Mp - M), (0, 0)))

    # qkv weight (C, 3C) columns are laid out as (3, H, Dh): split once (weights only,
    # tiny) so the QKV kernel emits q/k/v already in merged-head (token, C) layout.
    # This removes the activation reshape/transpose HBM round trip between kernels.
    wq, wk, wv = jnp.split(qkv_w.astype(jnp.bfloat16), 3, axis=1)

    q2d, k2d, v2d = _qkv_projection(xb, wq, wk, wv)            # three (Mp, C) bf16

    o2d = _flash_attention(q2d, k2d, v2d, batch=B, seq_len=N,
                           num_heads=H, head_dim=Dh)           # (Mp, C) bf16
    # rows >= B*N of o2d are never written (padding); they only feed padded rows of the
    # projection below, which are sliced off.

    y2d = _proj_linear(o2d, proj_w.astype(jnp.bfloat16),
                       proj_b.astype(jnp.float32), x.dtype)    # (Mp, C) f32
    return y2d[:M].reshape(B, N, C)


# ------------------------- references (pure JAX) for verification -------------------------

def _reference_f32(x, qkv_w, proj_w, proj_b, num_heads):
    B, N, C = x.shape
    H = num_heads
    Dh = C // H
    scale = Dh ** (-0.5)
    qkv = (x.reshape(B * N, C) @ qkv_w).reshape(B, N, 3, H, Dh).transpose(2, 0, 3, 1, 4)
    q, k, v = qkv[0], qkv[1], qkv[2]
    s = jnp.einsum("bhnd,bhmd->bhnm", q, k) * scale
    p = jax.nn.softmax(s, axis=-1)
    o = jnp.einsum("bhnm,bhmd->bhnd", p, v)
    o = o.transpose(0, 2, 1, 3).reshape(B * N, C)
    return (o @ proj_w + proj_b).reshape(B, N, C)


def _reference_matched(x, qkv_w, proj_w, proj_b, num_heads):
    """Same mixed precision as the kernels: bf16 matmul operands, f32 accumulation/softmax."""
    bf = jnp.bfloat16
    B, N, C = x.shape
    H = num_heads
    Dh = C // H
    scale = Dh ** (-0.5)
    xb = x.reshape(B * N, C).astype(bf)
    qkv = jnp.dot(xb, qkv_w.astype(bf), preferred_element_type=jnp.float32).astype(bf)
    qkv = qkv.reshape(B, N, 3, H, Dh).transpose(2, 0, 3, 1, 4)
    q, k, v = qkv[0], qkv[1], qkv[2]
    q = (q * scale).astype(bf)
    s = jnp.einsum("bhnd,bhmd->bhnm", q, k, preferred_element_type=jnp.float32)
    s = s - jnp.max(s, axis=-1, keepdims=True)
    p = jnp.exp(s)
    l = jnp.sum(p, axis=-1, keepdims=True)
    o = jnp.einsum("bhnm,bhmd->bhnd", p.astype(bf), v,
                   preferred_element_type=jnp.float32)
    o = (o / l).astype(bf)
    o = o.transpose(0, 2, 1, 3).reshape(B * N, C)
    y = jnp.dot(o, proj_w.astype(bf), preferred_element_type=jnp.float32) + proj_b
    return y.reshape(B, N, C)


def _xavier_uniform(key, fan_in, fan_out, shape, dtype=jnp.float32):
    limit = (6.0 / (fan_in + fan_out)) ** 0.5
    return jax.random.uniform(key, shape, dtype, minval=-limit, maxval=limit)


if __name__ == "__main__":
    # small shapes consistent with the module: B=2, N=8 tokens, dim C=32, 8 heads -> Dh=4
    B, N, C, H = 2, 8, 32, 8

    key = jax.random.PRNGKey(0)
    kx, kqkv, kproj, kb = jax.random.split(key, 4)

    x = jax.random.normal(kx, (B, N, C), dtype=jnp.float32)
    # nn.Linear weights (xavier_uniform) stored transposed so the kernels compute x @ W.
    qkv_w = _xavier_uniform(kqkv, C, 3 * C, (C, 3 * C))
    proj_w = _xavier_uniform(kproj, C, C, (C, C))
    # module init sets proj bias to 0; use a small random bias to exercise the bias path
    proj_b = 0.02 * jax.random.normal(kb, (C,), dtype=jnp.float32)

    fwd = jax.jit(functools.partial(ssast_attention, num_heads=H))
    out = jax.block_until_ready(fwd(x, qkv_w, proj_w, proj_b))
    assert out.shape == (B, N, C)

    # tight check vs a reference using the same bf16-operand / f32-accumulate precision
    ref_matched = _reference_matched(x, qkv_w, proj_w, proj_b, num_heads=H)
    assert jnp.allclose(out, ref_matched, atol=2e-3, rtol=2e-3), \
        "mismatch vs matched-precision JAX reference"

    # sanity check vs the pure-f32 module math (difference is only bf16 MXU rounding)
    ref_f32 = _reference_f32(x, qkv_w, proj_w, proj_b, num_heads=H)
    assert jnp.allclose(out, ref_f32, atol=5e-2, rtol=5e-2), \
        "mismatch vs f32 JAX reference"

    print("KERNEL_OK")
</pallas_src>

<mosaic_0001>
module attributes {stable_mosaic.version = 11 : i64} {
  func.func @_proj_kernel(%arg0: i32, %arg1: i32, %arg2: i32, %arg3: memref<256x32xbf16, #tpu.memory_space<vmem>>, %arg4: memref<32x32xbf16, #tpu.memory_space<vmem>>, %arg5: memref<1x32xf32, #tpu.memory_space<vmem>>, %arg6: memref<256x32xf32, #tpu.memory_space<vmem>>, %arg7: memref<256x32xf32, #tpu.memory_space<vmem>>) attributes {dimension_semantics = [#tpu.dimension_semantics<parallel>, #tpu.dimension_semantics<parallel>, #tpu.dimension_semantics<arbitrary>], iteration_bounds = array<i64: 1, 1, 1>, scalar_prefetch = 0 : i64, scratch_operands = 1 : i64, tpu.core_type = #tpu.core_type<tc>, window_params = [{transform_indices = @transform_0, window_bounds = array<i64: 256, 32>}, {transform_indices = @transform_1, window_bounds = array<i64: 32, 32>}, {transform_indices = @transform_2, window_bounds = array<i64: 1, 32>}, {transform_indices = @transform_3, window_bounds = array<i64: 256, 32>}]} {
    %c0_i32 = arith.constant 0 : i32
    %0 = arith.cmpi eq, %arg2, %c0_i32 : i32
    %1 = arith.extui %0 : i1 to i32
    %c0_i32_0 = arith.constant 0 : i32
    %2 = arith.cmpi ne, %1, %c0_i32_0 : i32
    scf.if %2 {
      %cst_10 = arith.constant 0.000000e+00 : f32
      %12 = vector.broadcast %cst_10 : f32 to vector<256x32xf32>
      %c0_11 = arith.constant 0 : index
      %c0_12 = arith.constant 0 : index
      %13 = vector.load %arg7[%c0_11, %c0_12] : memref<256x32xf32, #tpu.memory_space<vmem>>, vector<256x32xf32>
      tpu.vector_store %arg7[%c0_11, %c0_12], %12 {strides = array<i32>} : memref<256x32xf32, #tpu.memory_space<vmem>>, vector<256x32xf32>,
    } else {
    }
    %c0 = arith.constant 0 : index
    %c0_1 = arith.constant 0 : index
    %3 = vector.load %arg7[%c0, %c0_1] : memref<256x32xf32, #tpu.memory_space<vmem>>, vector<256x32xf32>
    %c0_2 = arith.constant 0 : index
    %c0_3 = arith.constant 0 : index
    %4 = vector.load %arg3[%c0_2, %c0_3] : memref<256x32xbf16, #tpu.memory_space<vmem>>, vector<256x32xbf16>
    %c0_4 = arith.constant 0 : index
    %c0_5 = arith.constant 0 : index
    %5 = vector.load %arg4[%c0_4, %c0_5] : memref<32x32xbf16, #tpu.memory_space<vmem>>, vector<32x32xbf16>
    %cst = arith.constant dense<0.000000e+00> : vector<256x32xf32>
    %6 = tpu.matmul %4, %5, %cst {dimension_numbers = #tpu.dot_dimension_numbers<[1], [0], [0], [1], [0, 0, 1, 1], [], []>} : vector<256x32xbf16>, vector<32x32xbf16>, vector<256x32xf32> -> vector<256x32xf32>
    %7 = arith.addf %3, %6 : vector<256x32xf32>
    %c0_6 = arith.constant 0 : index
    %c0_7 = arith.constant 0 : index
    %8 = vector.load %arg7[%c0_6, %c0_7] : memref<256x32xf32, #tpu.memory_space<vmem>>, vector<256x32xf32>
    tpu.vector_store %arg7[%c0_6, %c0_7], %7 {strides = array<i32>} : memref<256x32xf32, #tpu.memory_space<vmem>>, vector<256x32xf32>,
    %c0_i32_8 = arith.constant 0 : i32
    %9 = arith.cmpi eq, %arg2, %c0_i32_8 : i32
    %10 = arith.extui %9 : i1 to i32
    %c0_i32_9 = arith.constant 0 : i32
    %11 = arith.cmpi ne, %10, %c0_i32_9 : i32
    scf.if %11 {
      %c0_10 = arith.constant 0 : index
      %c0_11 = arith.constant 0 : index
      %12 = vector.load %arg7[%c0_10, %c0_11] : memref<256x32xf32, #tpu.memory_space<vmem>>, vector<256x32xf32>
      %c0_12 = arith.constant 0 : index
      %c0_13 = arith.constant 0 : index
      %13 = vector.load %arg5[%c0_12, %c0_13] : memref<1x32xf32, #tpu.memory_space<vmem>>, vector<1x32xf32>
      %14 = vector.broadcast %13 : vector<1x32xf32> to vector<256x32xf32>
      %15 = arith.addf %12, %14 : vector<256x32xf32>
      %c0_14 = arith.constant 0 : index
      %c0_15 = arith.constant 0 : index
      %16 = vector.load %arg6[%c0_14, %c0_15] : memref<256x32xf32, #tpu.memory_space<vmem>>, vector<256x32xf32>
      tpu.vector_store %arg6[%c0_14, %c0_15], %15 {strides = array<i32>} : memref<256x32xf32, #tpu.memory_space<vmem>>, vector<256x32xf32>,
    } else {
    }
    return
  }
  func.func @transform_0(%arg0: i32, %arg1: i32, %arg2: i32) -> (i32, i32) {
    %c0_i32 = arith.constant 0 : i32
    return %arg0, %arg2 : i32, i32
  }
  func.func @transform_1(%arg0: i32, %arg1: i32, %arg2: i32) -> (i32, i32) {
    %c0_i32 = arith.constant 0 : i32
    return %arg2, %arg1 : i32, i32
  }
  func.func @transform_2(%arg0: i32, %arg1: i32, %arg2: i32) -> (i32, i32) {
    %c0_i32 = arith.constant 0 : i32
    %c0_i32_0 = arith.constant 0 : i32
    return %c0_i32, %arg1 : i32, i32
  }
  func.func @transform_3(%arg0: i32, %arg1: i32, %arg2: i32) -> (i32, i32) {
    %c0_i32 = arith.constant 0 : i32
    return %arg0, %arg1 : i32, i32
  }
}

module attributes {stable_mosaic.version = 11 : i64} {
  func.func @_qkv_kernel(%arg0: i32, %arg1: i32, %arg2: i32, %arg3: memref<256x32xbf16, #tpu.memory_space<vmem>>, %arg4: memref<32x32xbf16, #tpu.memory_space<vmem>>, %arg5: memref<32x32xbf16, #tpu.memory_space<vmem>>, %arg6: memref<32x32xbf16, #tpu.memory_space<vmem>>, %arg7: memref<256x32xbf16, #tpu.memory_space<vmem>>, %arg8: memref<256x32xbf16, #tpu.memory_space<vmem>>, %arg9: memref<256x32xbf16, #tpu.memory_space<vmem>>, %arg10: memref<256x32xf32, #tpu.memory_space<vmem>>, %arg11: memref<256x32xf32, #tpu.memory_space<vmem>>, %arg12: memref<256x32xf32, #tpu.memory_space<vmem>>) attributes {dimension_semantics = [#tpu.dimension_semantics<parallel>, #tpu.dimension_semantics<parallel>, #tpu.dimension_semantics<arbitrary>], iteration_bounds = array<i64: 1, 1, 1>, scalar_prefetch = 0 : i64, scratch_operands = 3 : i64, tpu.core_type = #tpu.core_type<tc>, window_params = [{transform_indices = @transform_0, window_bounds = array<i64: 256, 32>}, {transform_indices = @transform_1, window_bounds = array<i64: 32, 32>}, {transform_indices = @transform_2, window_bounds = array<i64: 32, 32>}, {transform_indices = @transform_3, window_bounds = array<i64: 32, 32>}, {transform_indices = @transform_4, window_bounds = array<i64: 256, 32>}, {transform_indices = @transform_5, window_bounds = array<i64: 256, 32>}, {transform_indices = @transform_6, window_bounds = array<i64: 256, 32>}]} {
    %c0_i32 = arith.constant 0 : i32
    %0 = arith.cmpi eq, %arg2, %c0_i32 : i32
    %1 = arith.extui %0 : i1 to i32
    %c0_i32_0 = arith.constant 0 : i32
    %2 = arith.cmpi ne, %1, %c0_i32_0 : i32
    scf.if %2 {
      %cst_24 = arith.constant 0.000000e+00 : f32
      %22 = vector.broadcast %cst_24 : f32 to vector<256x32xf32>
      %c0_25 = arith.constant 0 : index
      %c0_26 = arith.constant 0 : index
      %23 = vector.load %arg10[%c0_25, %c0_26] : memref<256x32xf32, #tpu.memory_space<vmem>>, vector<256x32xf32>
      tpu.vector_store %arg10[%c0_25, %c0_26], %22 {strides = array<i32>} : memref<256x32xf32, #tpu.memory_space<vmem>>, vector<256x32xf32>,
      %cst_27 = arith.constant 0.000000e+00 : f32
      %24 = vector.broadcast %cst_27 : f32 to vector<256x32xf32>
      %c0_28 = arith.constant 0 : index
      %c0_29 = arith.constant 0 : index
      %25 = vector.load %arg11[%c0_28, %c0_29] : memref<256x32xf32, #tpu.memory_space<vmem>>, vector<256x32xf32>
      tpu.vector_store %arg11[%c0_28, %c0_29], %24 {strides = array<i32>} : memref<256x32xf32, #tpu.memory_space<vmem>>, vector<256x32xf32>,
      %cst_30 = arith.constant 0.000000e+00 : f32
      %26 = vector.broadcast %cst_30 : f32 to vector<256x32xf32>
      %c0_31 = arith.constant 0 : index
      %c0_32 = arith.constant 0 : index
      %27 = vector.load %arg12[%c0_31, %c0_32] : memref<256x32xf32, #tpu.memory_space<vmem>>, vector<256x32xf32>
      tpu.vector_store %arg12[%c0_31, %c0_32], %26 {strides = array<i32>} : memref<256x32xf32, #tpu.memory_space<vmem>>, vector<256x32xf32>,
    } else {
    }
    %c0 = arith.constant 0 : index
    %c0_1 = arith.constant 0 : index
    %3 = vector.load %arg3[%c0, %c0_1] : memref<256x32xbf16, #tpu.memory_space<vmem>>, vector<256x32xbf16>
    %c0_2 = arith.constant 0 : index
    %c0_3 = arith.constant 0 : index
    %4 = vector.load %arg10[%c0_2, %c0_3] : memref<256x32xf32, #tpu.memory_space<vmem>>, vector<256x32xf32>
    %c0_4 = arith.constant 0 : index
    %c0_5 = arith.constant 0 : index
    %5 = vector.load %arg4[%c0_4, %c0_5] : memref<32x32xbf16, #tpu.memory_space<vmem>>, vector<32x32xbf16>
    %cst = arith.constant dense<0.000000e+00> : vector<256x32xf32>
    %6 = tpu.matmul %3, %5, %cst {dimension_numbers = #tpu.dot_dimension_numbers<[1], [0], [0], [1], [0, 0, 1, 1], [], []>} : vector<256x32xbf16>, vector<32x32xbf16>, vector<256x32xf32> -> vector<256x32xf32>
    %7 = arith.addf %4, %6 : vector<256x32xf32>
    %c0_6 = arith.constant 0 : index
    %c0_7 = arith.constant 0 : index
    %8 = vector.load %arg10[%c0_6, %c0_7] : memref<256x32xf32, #tpu.memory_space<vmem>>, vector<256x32xf32>
    tpu.vector_store %arg10[%c0_6, %c0_7], %7 {strides = array<i32>} : memref<256x32xf32, #tpu.memory_space<vmem>>, vector<256x32xf32>,
    %c0_8 = arith.constant 0 : index
    %c0_9 = arith.constant 0 : index
    %9 = vector.load %arg11[%c0_8, %c0_9] : memref<256x32xf32, #tpu.memory_space<vmem>>, vector<256x32xf32>
    %c0_10 = arith.constant 0 : index
    %c0_11 = arith.constant 0 : index
    %10 = vector.load %arg5[%c0_10, %c0_11] : memref<32x32xbf16, #tpu.memory_space<vmem>>, vector<32x32xbf16>
    %cst_12 = arith.constant dense<0.000000e+00> : vector<256x32xf32>
    %11 = tpu.matmul %3, %10, %cst_12 {dimension_numbers = #tpu.dot_dimension_numbers<[1], [0], [0], [1], [0, 0, 1, 1], [], []>} : vector<256x32xbf16>, vector<32x32xbf16>, vector<256x32xf32> -> vector<256x32xf32>
    %12 = arith.addf %9, %11 : vector<256x32xf32>
    %c0_13 = arith.constant 0 : index
    %c0_14 = arith.constant 0 : index
    %13 = vector.load %arg11[%c0_13, %c0_14] : memref<256x32xf32, #tpu.memory_space<vmem>>, vector<256x32xf32>
    tpu.vector_store %arg11[%c0_13, %c0_14], %12 {strides = array<i32>} : memref<256x32xf32, #tpu.memory_space<vmem>>, vector<256x32xf32>,
    %c0_15 = arith.constant 0 : index
    %c0_16 = arith.constant 0 : index
    %14 = vector.load %arg12[%c0_15, %c0_16] : memref<256x32xf32, #tpu.memory_space<vmem>>, vector<256x32xf32>
    %c0_17 = arith.constant 0 : index
    %c0_18 = arith.constant 0 : index
    %15 = vector.load %arg6[%c0_17, %c0_18] : memref<32x32xbf16, #tpu.memory_space<vmem>>, vector<32x32xbf16>
    %cst_19 = arith.constant dense<0.000000e+00> : vector<256x32xf32>
    %16 = tpu.matmul %3, %15, %cst_19 {dimension_numbers = #tpu.dot_dimension_numbers<[1], [0], [0], [1], [0, 0, 1, 1], [], []>} : vector<256x32xbf16>, vector<32x32xbf16>, vector<256x32xf32> -> vector<256x32xf32>
    %17 = arith.addf %14, %16 : vector<256x32xf32>
    %c0_20 = arith.constant 0 : index
    %c0_21 = arith.constant 0 : index
    %18 = vector.load %arg12[%c0_20, %c0_21] : memref<256x32xf32, #tpu.memory_space<vmem>>, vector<256x32xf32>
    tpu.vector_store %arg12[%c0_20, %c0_21], %17 {strides = array<i32>} : memref<256x32xf32, #tpu.memory_space<vmem>>, vector<256x32xf32>,
    %c0_i32_22 = arith.constant 0 : i32
    %19 = arith.cmpi eq, %arg2, %c0_i32_22 : i32
    %20 = arith.extui %19 : i1 to i32
    %c0_i32_23 = arith.constant 0 : i32
    %21 = arith.cmpi ne, %20, %c0_i32_23 : i32
    scf.if %21 {
      %c0_24 = arith.constant 0 : index
      %c0_25 = arith.constant 0 : index
      %22 = vector.load %arg10[%c0_24, %c0_25] : memref<256x32xf32, #tpu.memory_space<vmem>>, vector<256x32xf32>
      %23 = arith.truncf %22 : vector<256x32xf32> to vector<256x32xbf16>
      %c0_26 = arith.constant 0 : index
      %c0_27 = arith.constant 0 : index
      %24 = vector.load %arg7[%c0_26, %c0_27] : memref<256x32xbf16, #tpu.memory_space<vmem>>, vector<256x32xbf16>
      tpu.vector_store %arg7[%c0_26, %c0_27], %23 {strides = array<i32>} : memref<256x32xbf16, #tpu.memory_space<vmem>>, vector<256x32xbf16>,
      %c0_28 = arith.constant 0 : index
      %c0_29 = arith.constant 0 : index
      %25 = vector.load %arg11[%c0_28, %c0_29] : memref<256x32xf32, #tpu.memory_space<vmem>>, vector<256x32xf32>
      %26 = arith.truncf %25 : vector<256x32xf32> to vector<256x32xbf16>
      %c0_30 = arith.constant 0 : index
      %c0_31 = arith.constant 0 : index
      %27 = vector.load %arg8[%c0_30, %c0_31] : memref<256x32xbf16, #tpu.memory_space<vmem>>, vector<256x32xbf16>
      tpu.vector_store %arg8[%c0_30, %c0_31], %26 {strides = array<i32>} : memref<256x32xbf16, #tpu.memory_space<vmem>>, vector<256x32xbf16>,
      %c0_32 = arith.constant 0 : index
      %c0_33 = arith.constant 0 : index
      %28 = vector.load %arg12[%c0_32, %c0_33] : memref<256x32xf32, #tpu.memory_space<vmem>>, vector<256x32xf32>
      %29 = arith.truncf %28 : vector<256x32xf32> to vector<256x32xbf16>
      %c0_34 = arith.constant 0 : index
      %c0_35 = arith.constant 0 : index
      %30 = vector.load %arg9[%c0_34, %c0_35] : memref<256x32xbf16, #tpu.memory_space<vmem>>, vector<256x32xbf16>
      tpu.vector_store %arg9[%c0_34, %c0_35], %29 {strides = array<i32>} : memref<256x32xbf16, #tpu.memory_space<vmem>>, vector<256x32xbf16>,
    } else {
    }
    return
  }
  func.func @transform_0(%arg0: i32, %arg1: i32, %arg2: i32) -> (i32, i32) {
    %c0_i32 = arith.constant 0 : i32
    return %arg0, %arg2 : i32, i32
  }
  func.func @transform_1(%arg0: i32, %arg1: i32, %arg2: i32) -> (i32, i32) {
    %c0_i32 = arith.constant 0 : i32
    return %arg2, %arg1 : i32, i32
  }
  func.func @transform_2(%arg0: i32, %arg1: i32, %arg2: i32) -> (i32, i32) {
    %c0_i32 = arith.constant 0 : i32
    return %arg2, %arg1 : i32, i32
  }
  func.func @transform_3(%arg0: i32, %arg1: i32, %arg2: i32) -> (i32, i32) {
    %c0_i32 = arith.constant 0 : i32
    return %arg2, %arg1 : i32, i32
  }
  func.func @transform_4(%arg0: i32, %arg1: i32, %arg2: i32) -> (i32, i32) {
    %c0_i32 = arith.constant 0 : i32
    return %arg0, %arg1 : i32, i32
  }
  func.func @transform_5(%arg0: i32, %arg1: i32, %arg2: i32) -> (i32, i32) {
    %c0_i32 = arith.constant 0 : i32
    return %arg0, %arg1 : i32, i32
  }
  func.func @transform_6(%arg0: i32, %arg1: i32, %arg2: i32) -> (i32, i32) {
    %c0_i32 = arith.constant 0 : i32
    return %arg0, %arg1 : i32, i32
  }
}

module attributes {stable_mosaic.version = 11 : i64} {
  func.func @_flash_attn_kernel(%arg0: i32, %arg1: i32, %arg2: i32, %arg3: i32, %arg4: memref<8x32xbf16, #tpu.memory_space<vmem>>, %arg5: memref<8x32xbf16, #tpu.memory_space<vmem>>, %arg6: memref<8x32xbf16, #tpu.memory_space<vmem>>, %arg7: memref<8x32xbf16, #tpu.memory_space<vmem>>, %arg8: memref<8x8x1xf32, #tpu.memory_space<vmem>>, %arg9: memref<8x8x1xf32, #tpu.memory_space<vmem>>, %arg10: memref<8x32xf32, #tpu.memory_space<vmem>>) attributes {dimension_semantics = [#tpu.dimension_semantics<parallel>, #tpu.dimension_semantics<parallel>, #tpu.dimension_semantics<parallel>, #tpu.dimension_semantics<arbitrary>], iteration_bounds = array<i64: 2, 1, 1, 1>, scalar_prefetch = 0 : i64, scratch_operands = 3 : i64, tpu.core_type = #tpu.core_type<tc>, window_params = [{transform_indices = @transform_0, window_bounds = array<i64: 8, 32>}, {transform_indices = @transform_1, window_bounds = array<i64: 8, 32>}, {transform_indices = @transform_2, window_bounds = array<i64: 8, 32>}, {transform_indices = @transform_3, window_bounds = array<i64: 8, 32>}]} {
    %c0_i32 = arith.constant 0 : i32
    %0 = arith.cmpi eq, %arg3, %c0_i32 : i32
    %1 = arith.extui %0 : i1 to i32
    %c0_i32_0 = arith.constant 0 : i32
    %2 = arith.cmpi ne, %1, %c0_i32_0 : i32
    scf.if %2 {
      %cst_204 = arith.constant 0xFF800000 : f32
      %286 = vector.broadcast %cst_204 : f32 to vector<8x8x1xf32>
      %c0_205 = arith.constant 0 : index
      %c0_206 = arith.constant 0 : index
      %c0_207 = arith.constant 0 : index
      %287 = vector.load %arg8[%c0_205, %c0_206, %c0_207] : memref<8x8x1xf32, #tpu.memory_space<vmem>>, vector<8x8x1xf32>
      tpu.vector_store %arg8[%c0_205, %c0_206, %c0_207], %286 {strides = array<i32>} : memref<8x8x1xf32, #tpu.memory_space<vmem>>, vector<8x8x1xf32>,
      %cst_208 = arith.constant 0.000000e+00 : f32
      %288 = vector.broadcast %cst_208 : f32 to vector<8x8x1xf32>
      %c0_209 = arith.constant 0 : index
      %c0_210 = arith.constant 0 : index
      %c0_211 = arith.constant 0 : index
      %289 = vector.load %arg9[%c0_209, %c0_210, %c0_211] : memref<8x8x1xf32, #tpu.memory_space<vmem>>, vector<8x8x1xf32>
      tpu.vector_store %arg9[%c0_209, %c0_210, %c0_211], %288 {strides = array<i32>} : memref<8x8x1xf32, #tpu.memory_space<vmem>>, vector<8x8x1xf32>,
      %cst_212 = arith.constant 0.000000e+00 : f32
      %290 = vector.broadcast %cst_212 : f32 to vector<8x32xf32>
      %c0_213 = arith.constant 0 : index
      %c0_214 = arith.constant 0 : index
      %291 = vector.load %arg10[%c0_213, %c0_214] : memref<8x32xf32, #tpu.memory_space<vmem>>, vector<8x32xf32>
      tpu.vector_store %arg10[%c0_213, %c0_214], %290 {strides = array<i32>} : memref<8x32xf32, #tpu.memory_space<vmem>>, vector<8x32xf32>,
    } else {
    }
    %c0 = arith.constant 0 : index
    %c0_1 = arith.constant 0 : index
    %3 = vector.load %arg4[%c0, %c0_1] : memref<8x32xbf16, #tpu.memory_space<vmem>>, vector<8x4xbf16>
    %cst = arith.constant 5.000000e-01 : bf16
    %4 = vector.broadcast %cst : bf16 to vector<8x4xbf16>
    %5 = arith.mulf %3, %4 : vector<8x4xbf16>
    %c0_2 = arith.constant 0 : index
    %c0_3 = arith.constant 0 : index
    %6 = vector.load %arg5[%c0_2, %c0_3] : memref<8x32xbf16, #tpu.memory_space<vmem>>, vector<8x4xbf16>
    %c0_4 = arith.constant 0 : index
    %c0_5 = arith.constant 0 : index
    %7 = vector.load %arg6[%c0_4, %c0_5] : memref<8x32xbf16, #tpu.memory_space<vmem>>, vector<8x4xbf16>
    %cst_6 = arith.constant dense<0.000000e+00> : vector<8x8xf32>
    %8 = tpu.matmul %5, %6, %cst_6 {dimension_numbers = #tpu.dot_dimension_numbers<[1], [1], [0], [0], [0, 0, 1, 0], [], []>} : vector<8x4xbf16>, vector<8x4xbf16>, vector<8x8xf32> -> vector<8x8xf32>
    %c0_7 = arith.constant 0 : index
    %c0_8 = arith.constant 0 : index
    %c0_9 = arith.constant 0 : index
    %9 = vector.load %arg8[%c0_7, %c0_8, %c0_9] : memref<8x8x1xf32, #tpu.memory_space<vmem>>, vector<1x8x1xf32>
    %10 = vector.shape_cast %9 : vector<1x8x1xf32> to vector<8x1xf32>
    %cst_10 = arith.constant dense<0xFF800000> : vector<8xf32>
    %11 = vector.multi_reduction <maximumf>, %8, %cst_10 [1] : vector<8x8xf32> to vector<8xf32>
    %12 = vector.shape_cast %11 : vector<8xf32> to vector<8x1xf32>
    %13 = arith.maximumf %10, %12 : vector<8x1xf32>
    %14 = arith.subf %10, %13 : vector<8x1xf32>
    %15 = math.exp %14 : vector<8x1xf32>
    %16 = vector.broadcast %13 : vector<8x1xf32> to vector<8x8xf32>
    %17 = arith.subf %8, %16 : vector<8x8xf32>
    %18 = math.exp %17 : vector<8x8xf32>
    %c0_11 = arith.constant 0 : index
    %c0_12 = arith.constant 0 : index
    %c0_13 = arith.constant 0 : index
    %19 = vector.load %arg9[%c0_11, %c0_12, %c0_13] : memref<8x8x1xf32, #tpu.memory_space<vmem>>, vector<1x8x1xf32>
    %20 = vector.shape_cast %19 : vector<1x8x1xf32> to vector<8x1xf32>
    %21 = arith.mulf %15, %20 : vector<8x1xf32>
    %cst_14 = arith.constant dense<0.000000e+00> : vector<8xf32>
    %22 = vector.multi_reduction <add>, %18, %cst_14 [1] : vector<8x8xf32> to vector<8xf32>
    %23 = vector.shape_cast %22 : vector<8xf32> to vector<8x1xf32>
    %24 = arith.addf %21, %23 : vector<8x1xf32>
    %c0_15 = arith.constant 0 : index
    %c0_16 = arith.constant 0 : index
    %c0_17 = arith.constant 0 : index
    %25 = vector.load %arg9[%c0_15, %c0_16, %c0_17] : memref<8x8x1xf32, #tpu.memory_space<vmem>>, vector<1x8x1xf32>
    %26 = vector.shape_cast %25 : vector<1x8x1xf32> to vector<8x1xf32>
    %27 = vector.shape_cast %24 : vector<8x1xf32> to vector<1x8x1xf32>
    tpu.vector_store %arg9[%c0_15, %c0_16, %c0_17], %27 {strides = array<i32>} : memref<8x8x1xf32, #tpu.memory_space<vmem>>, vector<1x8x1xf32>,
    %c0_18 = arith.constant 0 : index
    %c0_19 = arith.constant 0 : index
    %28 = vector.load %arg10[%c0_18, %c0_19] : memref<8x32xf32, #tpu.memory_space<vmem>>, vector<8x4xf32>
    %29 = vector.broadcast %15 : vector<8x1xf32> to vector<8x4xf32>
    %30 = arith.mulf %29, %28 : vector<8x4xf32>
    %31 = arith.truncf %18 : vector<8x8xf32> to vector<8x8xbf16>
    %cst_20 = arith.constant dense<0.000000e+00> : vector<8x4xf32>
    %32 = tpu.matmul %31, %7, %cst_20 {dimension_numbers = #tpu.dot_dimension_numbers<[1], [0], [0], [1], [0, 0, 1, 1], [], []>} : vector<8x8xbf16>, vector<8x4xbf16>, vector<8x4xf32> -> vector<8x4xf32>
    %33 = arith.addf %30, %32 : vector<8x4xf32>
    %c0_21 = arith.constant 0 : index
    %c0_22 = arith.constant 0 : index
    %34 = vector.load %arg10[%c0_21, %c0_22] : memref<8x32xf32, #tpu.memory_space<vmem>>, vector<8x4xf32>
    tpu.vector_store %arg10[%c0_21, %c0_22], %33 {strides = array<i32>} : memref<8x32xf32, #tpu.memory_space<vmem>>, vector<8x4xf32>,
    %c0_23 = arith.constant 0 : index
    %c0_24 = arith.constant 0 : index
    %c0_25 = arith.constant 0 : index
    %35 = vector.load %arg8[%c0_23, %c0_24, %c0_25] : memref<8x8x1xf32, #tpu.memory_space<vmem>>, vector<1x8x1xf32>
    %36 = vector.shape_cast %35 : vector<1x8x1xf32> to vector<8x1xf32>
    %37 = vector.shape_cast %13 : vector<8x1xf32> to vector<1x8x1xf32>
    tpu.vector_store %arg8[%c0_23, %c0_24, %c0_25], %37 {strides = array<i32>} : memref<8x8x1xf32, #tpu.memory_space<vmem>>, vector<1x8x1xf32>,
    %c0_26 = arith.constant 0 : index
    %c4 = arith.constant 4 : index
    %38 = vector.load %arg4[%c0_26, %c4] : memref<8x32xbf16, #tpu.memory_space<vmem>>, vector<8x4xbf16>
    %cst_27 = arith.constant 5.000000e-01 : bf16
    %39 = vector.broadcast %cst_27 : bf16 to vector<8x4xbf16>
    %40 = arith.mulf %38, %39 : vector<8x4xbf16>
    %c0_28 = arith.constant 0 : index
    %c4_29 = arith.constant 4 : index
    %41 = vector.load %arg5[%c0_28, %c4_29] : memref<8x32xbf16, #tpu.memory_space<vmem>>, vector<8x4xbf16>
    %c0_30 = arith.constant 0 : index
    %c4_31 = arith.constant 4 : index
    %42 = vector.load %arg6[%c0_30, %c4_31] : memref<8x32xbf16, #tpu.memory_space<vmem>>, vector<8x4xbf16>
    %cst_32 = arith.constant dense<0.000000e+00> : vector<8x8xf32>
    %43 = tpu.matmul %40, %41, %cst_32 {dimension_numbers = #tpu.dot_dimension_numbers<[1], [1], [0], [0], [0, 0, 1, 0], [], []>} : vector<8x4xbf16>, vector<8x4xbf16>, vector<8x8xf32> -> vector<8x8xf32>
    %c1 = arith.constant 1 : index
    %c0_33 = arith.constant 0 : index
    %c0_34 = arith.constant 0 : index
    %44 = vector.load %arg8[%c1, %c0_33, %c0_34] : memref<8x8x1xf32, #tpu.memory_space<vmem>>, vector<1x8x1xf32>
    %45 = vector.shape_cast %44 : vector<1x8x1xf32> to vector<8x1xf32>
    %cst_35 = arith.constant dense<0xFF800000> : vector<8xf32>
    %46 = vector.multi_reduction <maximumf>, %43, %cst_35 [1] : vector<8x8xf32> to vector<8xf32>
    %47 = vector.shape_cast %46 : vector<8xf32> to vector<8x1xf32>
    %48 = arith.maximumf %45, %47 : vector<8x1xf32>
    %49 = arith.subf %45, %48 : vector<8x1xf32>
    %50 = math.exp %49 : vector<8x1xf32>
    %51 = vector.broadcast %48 : vector<8x1xf32> to vector<8x8xf32>
    %52 = arith.subf %43, %51 : vector<8x8xf32>
    %53 = math.exp %52 : vector<8x8xf32>
    %c1_36 = arith.constant 1 : index
    %c0_37 = arith.constant 0 : index
    %c0_38 = arith.constant 0 : index
    %54 = vector.load %arg9[%c1_36, %c0_37, %c0_38] : memref<8x8x1xf32, #tpu.memory_space<vmem>>, vector<1x8x1xf32>
    %55 = vector.shape_cast %54 : vector<1x8x1xf32> to vector<8x1xf32>
    %56 = arith.mulf %50, %55 : vector<8x1xf32>
    %cst_39 = arith.constant dense<0.000000e+00> : vector<8xf32>
    %57 = vector.multi_reduction <add>, %53, %cst_39 [1] : vector<8x8xf32> to vector<8xf32>
    %58 = vector.shape_cast %57 : vector<8xf32> to vector<8x1xf32>
    %59 = arith.addf %56, %58 : vector<8x1xf32>
    %c1_40 = arith.constant 1 : index
    %c0_41 = arith.constant 0 : index
    %c0_42 = arith.constant 0 : index
    %60 = vector.load %arg9[%c1_40, %c0_41, %c0_42] : memref<8x8x1xf32, #tpu.memory_space<vmem>>, vector<1x8x1xf32>
    %61 = vector.shape_cast %60 : vector<1x8x1xf32> to vector<8x1xf32>
    %62 = vector.shape_cast %59 : vector<8x1xf32> to vector<1x8x1xf32>
    tpu.vector_store %arg9[%c1_40, %c0_41, %c0_42], %62 {strides = array<i32>} : memref<8x8x1xf32, #tpu.memory_space<vmem>>, vector<1x8x1xf32>,
    %c0_43 = arith.constant 0 : index
    %c4_44 = arith.constant 4 : index
    %63 = vector.load %arg10[%c0_43, %c4_44] : memref<8x32xf32, #tpu.memory_space<vmem>>, vector<8x4xf32>
    %64 = vector.broadcast %50 : vector<8x1xf32> to vector<8x4xf32>
    %65 = arith.mulf %64, %63 : vector<8x4xf32>
    %66 = arith.truncf %53 : vector<8x8xf32> to vector<8x8xbf16>
    %cst_45 = arith.constant dense<0.000000e+00> : vector<8x4xf32>
    %67 = tpu.matmul %66, %42, %cst_45 {dimension_numbers = #tpu.dot_dimension_numbers<[1], [0], [0], [1], [0, 0, 1, 1], [], []>} : vector<8x8xbf16>, vector<8x4xbf16>, vector<8x4xf32> -> vector<8x4xf32>
    %68 = arith.addf %65, %67 : vector<8x4xf32>
    %c0_46 = arith.constant 0 : index
    %c4_47 = arith.constant 4 : index
    %69 = vector.load %arg10[%c0_46, %c4_47] : memref<8x32xf32, #tpu.memory_space<vmem>>, vector<8x4xf32>
    tpu.vector_store %arg10[%c0_46, %c4_47], %68 {strides = array<i32>} : memref<8x32xf32, #tpu.memory_space<vmem>>, vector<8x4xf32>,
    %c1_48 = arith.constant 1 : index
    %c0_49 = arith.constant 0 : index
    %c0_50 = arith.constant 0 : index
    %70 = vector.load %arg8[%c1_48, %c0_49, %c0_50] : memref<8x8x1xf32, #tpu.memory_space<vmem>>, vector<1x8x1xf32>
    %71 = vector.shape_cast %70 : vector<1x8x1xf32> to vector<8x1xf32>
    %72 = vector.shape_cast %48 : vector<8x1xf32> to vector<1x8x1xf32>
    tpu.vector_store %arg8[%c1_48, %c0_49, %c0_50], %72 {strides = array<i32>} : memref<8x8x1xf32, #tpu.memory_space<vmem>>, vector<1x8x1xf32>,
    %c0_51 = arith.constant 0 : index
    %c8 = arith.constant 8 : index
    %73 = vector.load %arg4[%c0_51, %c8] : memref<8x32xbf16, #tpu.memory_space<vmem>>, vector<8x4xbf16>
    %cst_52 = arith.constant 5.000000e-01 : bf16
    %74 = vector.broadcast %cst_52 : bf16 to vector<8x4xbf16>
    %75 = arith.mulf %73, %74 : vector<8x4xbf16>
    %c0_53 = arith.constant 0 : index
    %c8_54 = arith.constant 8 : index
    %76 = vector.load %arg5[%c0_53, %c8_54] : memref<8x32xbf16, #tpu.memory_space<vmem>>, vector<8x4xbf16>
    %c0_55 = arith.constant 0 : index
    %c8_56 = arith.constant 8 : index
    %77 = vector.load %arg6[%c0_55, %c8_56] : memref<8x32xbf16, #tpu.memory_space<vmem>>, vector<8x4xbf16>
    %cst_57 = arith.constant dense<0.000000e+00> : vector<8x8xf32>
    %78 = tpu.matmul %75, %76, %cst_57 {dimension_numbers = #tpu.dot_dimension_numbers<[1], [1], [0], [0], [0, 0, 1, 0], [], []>} : vector<8x4xbf16>, vector<8x4xbf16>, vector<8x8xf32> -> vector<8x8xf32>
    %c2 = arith.constant 2 : index
    %c0_58 = arith.constant 0 : index
    %c0_59 = arith.constant 0 : index
    %79 = vector.load %arg8[%c2, %c0_58, %c0_59] : memref<8x8x1xf32, #tpu.memory_space<vmem>>, vector<1x8x1xf32>
    %80 = vector.shape_cast %79 : vector<1x8x1xf32> to vector<8x1xf32>
    %cst_60 = arith.constant dense<0xFF800000> : vector<8xf32>
    %81 = vector.multi_reduction <maximumf>, %78, %cst_60 [1] : vector<8x8xf32> to vector<8xf32>
    %82 = vector.shape_cast %81 : vector<8xf32> to vector<8x1xf32>
    %83 = arith.maximumf %80, %82 : vector<8x1xf32>
    %84 = arith.subf %80, %83 : vector<8x1xf32>
    %85 = math.exp %84 : vector<8x1xf32>
    %86 = vector.broadcast %83 : vector<8x1xf32> to vector<8x8xf32>
    %87 = arith.subf %78, %86 : vector<8x8xf32>
    %88 = math.exp %87 : vector<8x8xf32>
    %c2_61 = arith.constant 2 : index
    %c0_62 = arith.constant 0 : index
    %c0_63 = arith.constant 0 : index
    %89 = vector.load %arg9[%c2_61, %c0_62, %c0_63] : memref<8x8x1xf32, #tpu.memory_space<vmem>>, vector<1x8x1xf32>
    %90 = vector.shape_cast %89 : vector<1x8x1xf32> to vector<8x1xf32>
    %91 = arith.mulf %85, %90 : vector<8x1xf32>
    %cst_64 = arith.constant dense<0.000000e+00> : vector<8xf32>
    %92 = vector.multi_reduction <add>, %88, %cst_64 [1] : vector<8x8xf32> to vector<8xf32>
    %93 = vector.shape_cast %92 : vector<8xf32> to vector<8x1xf32>
    %94 = arith.addf %91, %93 : vector<8x1xf32>
    %c2_65 = arith.constant 2 : index
    %c0_66 = arith.constant 0 : index
    %c0_67 = arith.constant 0 : index
    %95 = vector.load %arg9[%c2_65, %c0_66, %c0_67] : memref<8x8x1xf32, #tpu.memory_space<vmem>>, vector<1x8x1xf32>
    %96 = vector.shape_cast %95 : vector<1x8x1xf32> to vector<8x1xf32>
    %97 = vector.shape_cast %94 : vector<8x1xf32> to vector<1x8x1xf32>
    tpu.vector_store %arg9[%c2_65, %c0_66, %c0_67], %97 {strides = array<i32>} : memref<8x8x1xf32, #tpu.memory_space<vmem>>, vector<1x8x1xf32>,
    %c0_68 = arith.constant 0 : index
    %c8_69 = arith.constant 8 : index
    %98 = vector.load %arg10[%c0_68, %c8_69] : memref<8x32xf32, #tpu.memory_space<vmem>>, vector<8x4xf32>
    %99 = vector.broadcast %85 : vector<8x1xf32> to vector<8x4xf32>
    %100 = arith.mulf %99, %98 : vector<8x4xf32>
    %101 = arith.truncf %88 : vector<8x8xf32> to vector<8x8xbf16>
    %cst_70 = arith.constant dense<0.000000e+00> : vector<8x4xf32>
    %102 = tpu.matmul %101, %77, %cst_70 {dimension_numbers = #tpu.dot_dimension_numbers<[1], [0], [0], [1], [0, 0, 1, 1], [], []>} : vector<8x8xbf16>, vector<8x4xbf16>, vector<8x4xf32> -> vector<8x4xf32>
    %103 = arith.addf %100, %102 : vector<8x4xf32>
    %c0_71 = arith.constant 0 : index
    %c8_72 = arith.constant 8 : index
    %104 = vector.load %arg10[%c0_71, %c8_72] : memref<8x32xf32, #tpu.memory_space<vmem>>, vector<8x4xf32>
    tpu.vector_store %arg10[%c0_71, %c8_72], %103 {strides = array<i32>} : memref<8x32xf32, #tpu.memory_space<vmem>>, vector<8x4xf32>,
    %c2_73 = arith.constant 2 : index
    %c0_74 = arith.constant 0 : index
    %c0_75 = arith.constant 0 : index
    %105 = vector.load %arg8[%c2_73, %c0_74, %c0_75] : memref<8x8x1xf32, #tpu.memory_space<vmem>>, vector<1x8x1xf32>
    %106 = vector.shape_cast %105 : vector<1x8x1xf32> to vector<8x1xf32>
    %107 = vector.shape_cast %83 : vector<8x1xf32> to vector<1x8x1xf32>
    tpu.vector_store %arg8[%c2_73, %c0_74, %c0_75], %107 {strides = array<i32>} : memref<8x8x1xf32, #tpu.memory_space<vmem>>, vector<1x8x1xf32>,
    %c0_76 = arith.constant 0 : index
    %c12 = arith.constant 12 : index
    %108 = vector.load %arg4[%c0_76, %c12] : memref<8x32xbf16, #tpu.memory_space<vmem>>, vector<8x4xbf16>
    %cst_77 = arith.constant 5.000000e-01 : bf16
    %109 = vector.broadcast %cst_77 : bf16 to vector<8x4xbf16>
    %110 = arith.mulf %108, %109 : vector<8x4xbf16>
    %c0_78 = arith.constant 0 : index
    %c12_79 = arith.constant 12 : index
    %111 = vector.load %arg5[%c0_78, %c12_79] : memref<8x32xbf16, #tpu.memory_space<vmem>>, vector<8x4xbf16>
    %c0_80 = arith.constant 0 : index
    %c12_81 = arith.constant 12 : index
    %112 = vector.load %arg6[%c0_80, %c12_81] : memref<8x32xbf16, #tpu.memory_space<vmem>>, vector<8x4xbf16>
    %cst_82 = arith.constant dense<0.000000e+00> : vector<8x8xf32>
    %113 = tpu.matmul %110, %111, %cst_82 {dimension_numbers = #tpu.dot_dimension_numbers<[1], [1], [0], [0], [0, 0, 1, 0], [], []>} : vector<8x4xbf16>, vector<8x4xbf16>, vector<8x8xf32> -> vector<8x8xf32>
    %c3 = arith.constant 3 : index
    %c0_83 = arith.constant 0 : index
    %c0_84 = arith.constant 0 : index
    %114 = vector.load %arg8[%c3, %c0_83, %c0_84] : memref<8x8x1xf32, #tpu.memory_space<vmem>>, vector<1x8x1xf32>
    %115 = vector.shape_cast %114 : vector<1x8x1xf32> to vector<8x1xf32>
    %cst_85 = arith.constant dense<0xFF800000> : vector<8xf32>
    %116 = vector.multi_reduction <maximumf>, %113, %cst_85 [1] : vector<8x8xf32> to vector<8xf32>
    %117 = vector.shape_cast %116 : vector<8xf32> to vector<8x1xf32>
    %118 = arith.maximumf %115, %117 : vector<8x1xf32>
    %119 = arith.subf %115, %118 : vector<8x1xf32>
    %120 = math.exp %119 : vector<8x1xf32>
    %121 = vector.broadcast %118 : vector<8x1xf32> to vector<8x8xf32>
    %122 = arith.subf %113, %121 : vector<8x8xf32>
    %123 = math.exp %122 : vector<8x8xf32>
    %c3_86 = arith.constant 3 : index
    %c0_87 = arith.constant 0 : index
    %c0_88 = arith.constant 0 : index
    %124 = vector.load %arg9[%c3_86, %c0_87, %c0_88] : memref<8x8x1xf32, #tpu.memory_space<vmem>>, vector<1x8x1xf32>
    %125 = vector.shape_cast %124 : vector<1x8x1xf32> to vector<8x1xf32>
    %126 = arith.mulf %120, %125 : vector<8x1xf32>
    %cst_89 = arith.constant dense<0.000000e+00> : vector<8xf32>
    %127 = vector.multi_reduction <add>, %123, %cst_89 [1] : vector<8x8xf32> to vector<8xf32>
    %128 = vector.shape_cast %127 : vector<8xf32> to vector<8x1xf32>
    %129 = arith.addf %126, %128 : vector<8x1xf32>
    %c3_90 = arith.constant 3 : index
    %c0_91 = arith.constant 0 : index
    %c0_92 = arith.constant 0 : index
    %130 = vector.load %arg9[%c3_90, %c0_91, %c0_92] : memref<8x8x1xf32, #tpu.memory_space<vmem>>, vector<1x8x1xf32>
    %131 = vector.shape_cast %130 : vector<1x8x1xf32> to vector<8x1xf32>
    %132 = vector.shape_cast %129 : vector<8x1xf32> to vector<1x8x1xf32>
    tpu.vector_store %arg9[%c3_90, %c0_91, %c0_92], %132 {strides = array<i32>} : memref<8x8x1xf32, #tpu.memory_space<vmem>>, vector<1x8x1xf32>,
    %c0_93 = arith.constant 0 : index
    %c12_94 = arith.constant 12 : index
    %133 = vector.load %arg10[%c0_93, %c12_94] : memref<8x32xf32, #tpu.memory_space<vmem>>, vector<8x4xf32>
    %134 = vector.broadcast %120 : vector<8x1xf32> to vector<8x4xf32>
    %135 = arith.mulf %134, %133 : vector<8x4xf32>
    %136 = arith.truncf %123 : vector<8x8xf32> to vector<8x8xbf16>
    %cst_95 = arith.constant dense<0.000000e+00> : vector<8x4xf32>
    %137 = tpu.matmul %136, %112, %cst_95 {dimension_numbers = #tpu.dot_dimension_numbers<[1], [0], [0], [1], [0, 0, 1, 1], [], []>} : vector<8x8xbf16>, vector<8x4xbf16>, vector<8x4xf32> -> vector<8x4xf32>
    %138 = arith.addf %135, %137 : vector<8x4xf32>
    %c0_96 = arith.constant 0 : index
    %c12_97 = arith.constant 12 : index
    %139 = vector.load %arg10[%c0_96, %c12_97] : memref<8x32xf32, #tpu.memory_space<vmem>>, vector<8x4xf32>
    tpu.vector_store %arg10[%c0_96, %c12_97], %138 {strides = array<i32>} : memref<8x32xf32, #tpu.memory_space<vmem>>, vector<8x4xf32>,
    %c3_98 = arith.constant 3 : index
    %c0_99 = arith.constant 0 : index
    %c0_100 = arith.constant 0 : index
    %140 = vector.load %arg8[%c3_98, %c0_99, %c0_100] : memref<8x8x1xf32, #tpu.memory_space<vmem>>, vector<1x8x1xf32>
    %141 = vector.shape_cast %140 : vector<1x8x1xf32> to vector<8x1xf32>
    %142 = vector.shape_cast %118 : vector<8x1xf32> to vector<1x8x1xf32>
    tpu.vector_store %arg8[%c3_98, %c0_99, %c0_100], %142 {strides = array<i32>} : memref<8x8x1xf32, #tpu.memory_space<vmem>>, vector<1x8x1xf32>,
    %c0_101 = arith.constant 0 : index
    %c16 = arith.constant 16 : index
    %143 = vector.load %arg4[%c0_101, %c16] : memref<8x32xbf16, #tpu.memory_space<vmem>>, vector<8x4xbf16>
    %cst_102 = arith.constant 5.000000e-01 : bf16
    %144 = vector.broadcast %cst_102 : bf16 to vector<8x4xbf16>
    %145 = arith.mulf %143, %144 : vector<8x4xbf16>
    %c0_103 = arith.constant 0 : index
    %c16_104 = arith.constant 16 : index
    %146 = vector.load %arg5[%c0_103, %c16_104] : memref<8x32xbf16, #tpu.memory_space<vmem>>, vector<8x4xbf16>
    %c0_105 = arith.constant 0 : index
    %c16_106 = arith.constant 16 : index
    %147 = vector.load %arg6[%c0_105, %c16_106] : memref<8x32xbf16, #tpu.memory_space<vmem>>, vector<8x4xbf16>
    %cst_107 = arith.constant dense<0.000000e+00> : vector<8x8xf32>
    %148 = tpu.matmul %145, %146, %cst_107 {dimension_numbers = #tpu.dot_dimension_numbers<[1], [1], [0], [0], [0, 0, 1, 0], [], []>} : vector<8x4xbf16>, vector<8x4xbf16>, vector<8x8xf32> -> vector<8x8xf32>
    %c4_108 = arith.constant 4 : index
    %c0_109 = arith.constant 0 : index
    %c0_110 = arith.constant 0 : index
    %149 = vector.load %arg8[%c4_108, %c0_109, %c0_110] : memref<8x8x1xf32, #tpu.memory_space<vmem>>, vector<1x8x1xf32>
    %150 = vector.shape_cast %149 : vector<1x8x1xf32> to vector<8x1xf32>
    %cst_111 = arith.constant dense<0xFF800000> : vector<8xf32>
    %151 = vector.multi_reduction <maximumf>, %148, %cst_111 [1] : vector<8x8xf32> to vector<8xf32>
    %152 = vector.shape_cast %151 : vector<8xf32> to vector<8x1xf32>
    %153 = arith.maximumf %150, %152 : vector<8x1xf32>
    %154 = arith.subf %150, %153 : vector<8x1xf32>
    %155 = math.exp %154 : vector<8x1xf32>
    %156 = vector.broadcast %153 : vector<8x1xf32> to vector<8x8xf32>
    %157 = arith.subf %148, %156 : vector<8x8xf32>
    %158 = math.exp %157 : vector<8x8xf32>
    %c4_112 = arith.constant 4 : index
    %c0_113 = arith.constant 0 : index
    %c0_114 = arith.constant 0 : index
    %159 = vector.load %arg9[%c4_112, %c0_113, %c0_114] : memref<8x8x1xf32, #tpu.memory_space<vmem>>, vector<1x8x1xf32>
    %160 = vector.shape_cast %159 : vector<1x8x1xf32> to vector<8x1xf32>
    %161 = arith.mulf %155, %160 : vector<8x1xf32>
    %cst_115 = arith.constant dense<0.000000e+00> : vector<8xf32>
    %162 = vector.multi_reduction <add>, %158, %cst_115 [1] : vector<8x8xf32> to vector<8xf32>
    %163 = vector.shape_cast %162 : vector<8xf32> to vector<8x1xf32>
    %164 = arith.addf %161, %163 : vector<8x1xf32>
    %c4_116 = arith.constant 4 : index
    %c0_117 = arith.constant 0 : index
    %c0_118 = arith.constant 0 : index
    %165 = vector.load %arg9[%c4_116, %c0_117, %c0_118] : memref<8x8x1xf32, #tpu.memory_space<vmem>>, vector<1x8x1xf32>
    %166 = vector.shape_cast %165 : vector<1x8x1xf32> to vector<8x1xf32>
    %167 = vector.shape_cast %164 : vector<8x1xf32> to vector<1x8x1xf32>
    tpu.vector_store %arg9[%c4_116, %c0_117, %c0_118], %167 {strides = array<i32>} : memref<8x8x1xf32, #tpu.memory_space<vmem>>, vector<1x8x1xf32>,
    %c0_119 = arith.constant 0 : index
    %c16_120 = arith.constant 16 : index
    %168 = vector.load %arg10[%c0_119, %c16_120] : memref<8x32xf32, #tpu.memory_space<vmem>>, vector<8x4xf32>
    %169 = vector.broadcast %155 : vector<8x1xf32> to vector<8x4xf32>
    %170 = arith.mulf %169, %168 : vector<8x4xf32>
    %171 = arith.truncf %158 : vector<8x8xf32> to vector<8x8xbf16>
    %cst_121 = arith.constant dense<0.000000e+00> : vector<8x4xf32>
    %172 = tpu.matmul %171, %147, %cst_121 {dimension_numbers = #tpu.dot_dimension_numbers<[1], [0], [0], [1], [0, 0, 1, 1], [], []>} : vector<8x8xbf16>, vector<8x4xbf16>, vector<8x4xf32> -> vector<8x4xf32>
    %173 = arith.addf %170, %172 : vector<8x4xf32>
    %c0_122 = arith.constant 0 : index
    %c16_123 = arith.constant 16 : index
    %174 = vector.load %arg10[%c0_122, %c16_123] : memref<8x32xf32, #tpu.memory_space<vmem>>, vector<8x4xf32>
    tpu.vector_store %arg10[%c0_122, %c16_123], %173 {strides = array<i32>} : memref<8x32xf32, #tpu.memory_space<vmem>>, vector<8x4xf32>,
    %c4_124 = arith.constant 4 : index
    %c0_125 = arith.constant 0 : index
    %c0_126 = arith.constant 0 : index
    %175 = vector.load %arg8[%c4_124, %c0_125, %c0_126] : memref<8x8x1xf32, #tpu.memory_space<vmem>>, vector<1x8x1xf32>
    %176 = vector.shape_cast %175 : vector<1x8x1xf32> to vector<8x1xf32>
    %177 = vector.shape_cast %153 : vector<8x1xf32> to vector<1x8x1xf32>
    tpu.vector_store %arg8[%c4_124, %c0_125, %c0_126], %177 {strides = array<i32>} : memref<8x8x1xf32, #tpu.memory_space<vmem>>, vector<1x8x1xf32>,
    %c0_127 = arith.constant 0 : index
    %c20 = arith.constant 20 : index
    %178 = vector.load %arg4[%c0_127, %c20] : memref<8x32xbf16, #tpu.memory_space<vmem>>, vector<8x4xbf16>
    %cst_128 = arith.constant 5.000000e-01 : bf16
    %179 = vector.broadcast %cst_128 : bf16 to vector<8x4xbf16>
    %180 = arith.mulf %178, %179 : vector<8x4xbf16>
    %c0_129 = arith.constant 0 : index
    %c20_130 = arith.constant 20 : index
    %181 = vector.load %arg5[%c0_129, %c20_130] : memref<8x32xbf16, #tpu.memory_space<vmem>>, vector<8x4xbf16>
    %c0_131 = arith.constant 0 : index
    %c20_132 = arith.constant 20 : index
    %182 = vector.load %arg6[%c0_131, %c20_132] : memref<8x32xbf16, #tpu.memory_space<vmem>>, vector<8x4xbf16>
    %cst_133 = arith.constant dense<0.000000e+00> : vector<8x8xf32>
    %183 = tpu.matmul %180, %181, %cst_133 {dimension_numbers = #tpu.dot_dimension_numbers<[1], [1], [0], [0], [0, 0, 1, 0], [], []>} : vector<8x4xbf16>, vector<8x4xbf16>, vector<8x8xf32> -> vector<8x8xf32>
    %c5 = arith.constant 5 : index
    %c0_134 = arith.constant 0 : index
    %c0_135 = arith.constant 0 : index
    %184 = vector.load %arg8[%c5, %c0_134, %c0_135] : memref<8x8x1xf32, #tpu.memory_space<vmem>>, vector<1x8x1xf32>
    %185 = vector.shape_cast %184 : vector<1x8x1xf32> to vector<8x1xf32>
    %cst_136 = arith.constant dense<0xFF800000> : vector<8xf32>
    %186 = vector.multi_reduction <maximumf>, %183, %cst_136 [1] : vector<8x8xf32> to vector<8xf32>
    %187 = vector.shape_cast %186 : vector<8xf32> to vector<8x1xf32>
    %188 = arith.maximumf %185, %187 : vector<8x1xf32>
    %189 = arith.subf %185, %188 : vector<8x1xf32>
    %190 = math.exp %189 : vector<8x1xf32>
    %191 = vector.broadcast %188 : vector<8x1xf32> to vector<8x8xf32>
    %192 = arith.subf %183, %191 : vector<8x8xf32>
    %193 = math.exp %192 : vector<8x8xf32>
    %c5_137 = arith.constant 5 : index
    %c0_138 = arith.constant 0 : index
    %c0_139 = arith.constant 0 : index
    %194 = vector.load %arg9[%c5_137, %c0_138, %c0_139] : memref<8x8x1xf32, #tpu.memory_space<vmem>>, vector<1x8x1xf32>
    %195 = vector.shape_cast %194 : vector<1x8x1xf32> to vector<8x1xf32>
    %196 = arith.mulf %190, %195 : vector<8x1xf32>
    %cst_140 = arith.constant dense<0.000000e+00> : vector<8xf32>
    %197 = vector.multi_reduction <add>, %193, %cst_140 [1] : vector<8x8xf32> to vector<8xf32>
    %198 = vector.shape_cast %197 : vector<8xf32> to vector<8x1xf32>
    %199 = arith.addf %196, %198 : vector<8x1xf32>
    %c5_141 = arith.constant 5 : index
    %c0_142 = arith.constant 0 : index
    %c0_143 = arith.constant 0 : index
    %200 = vector.load %arg9[%c5_141, %c0_142, %c0_143] : memref<8x8x1xf32, #tpu.memory_space<vmem>>, vector<1x8x1xf32>
    %201 = vector.shape_cast %200 : vector<1x8x1xf32> to vector<8x1xf32>
    %202 = vector.shape_cast %199 : vector<8x1xf32> to vector<1x8x1xf32>
    tpu.vector_store %arg9[%c5_141, %c0_142, %c0_143], %202 {strides = array<i32>} : memref<8x8x1xf32, #tpu.memory_space<vmem>>, vector<1x8x1xf32>,
    %c0_144 = arith.constant 0 : index
    %c20_145 = arith.constant 20 : index
    %203 = vector.load %arg10[%c0_144, %c20_145] : memref<8x32xf32, #tpu.memory_space<vmem>>, vector<8x4xf32>
    %204 = vector.broadcast %190 : vector<8x1xf32> to vector<8x4xf32>
    %205 = arith.mulf %204, %203 : vector<8x4xf32>
    %206 = arith.truncf %193 : vector<8x8xf32> to vector<8x8xbf16>
    %cst_146 = arith.constant dense<0.000000e+00> : vector<8x4xf32>
    %207 = tpu.matmul %206, %182, %cst_146 {dimension_numbers = #tpu.dot_dimension_numbers<[1], [0], [0], [1], [0, 0, 1, 1], [], []>} : vector<8x8xbf16>, vector<8x4xbf16>, vector<8x4xf32> -> vector<8x4xf32>
    %208 = arith.addf %205, %207 : vector<8x4xf32>
    %c0_147 = arith.constant 0 : index
    %c20_148 = arith.constant 20 : index
    %209 = vector.load %arg10[%c0_147, %c20_148] : memref<8x32xf32, #tpu.memory_space<vmem>>, vector<8x4xf32>
    tpu.vector_store %arg10[%c0_147, %c20_148], %208 {strides = array<i32>} : memref<8x32xf32, #tpu.memory_space<vmem>>, vector<8x4xf32>,
    %c5_149 = arith.constant 5 : index
    %c0_150 = arith.constant 0 : index
    %c0_151 = arith.constant 0 : index
    %210 = vector.load %arg8[%c5_149, %c0_150, %c0_151] : memref<8x8x1xf32, #tpu.memory_space<vmem>>, vector<1x8x1xf32>
    %211 = vector.shape_cast %210 : vector<1x8x1xf32> to vector<8x1xf32>
    %212 = vector.shape_cast %188 : vector<8x1xf32> to vector<1x8x1xf32>
    tpu.vector_store %arg8[%c5_149, %c0_150, %c0_151], %212 {strides = array<i32>} : memref<8x8x1xf32, #tpu.memory_space<vmem>>, vector<1x8x1xf32>,
    %c0_152 = arith.constant 0 : index
    %c24 = arith.constant 24 : index
    %213 = vector.load %arg4[%c0_152, %c24] : memref<8x32xbf16, #tpu.memory_space<vmem>>, vector<8x4xbf16>
    %cst_153 = arith.constant 5.000000e-01 : bf16
    %214 = vector.broadcast %cst_153 : bf16 to vector<8x4xbf16>
    %215 = arith.mulf %213, %214 : vector<8x4xbf16>
    %c0_154 = arith.constant 0 : index
    %c24_155 = arith.constant 24 : index
    %216 = vector.load %arg5[%c0_154, %c24_155] : memref<8x32xbf16, #tpu.memory_space<vmem>>, vector<8x4xbf16>
    %c0_156 = arith.constant 0 : index
    %c24_157 = arith.constant 24 : index
    %217 = vector.load %arg6[%c0_156, %c24_157] : memref<8x32xbf16, #tpu.memory_space<vmem>>, vector<8x4xbf16>
    %cst_158 = arith.constant dense<0.000000e+00> : vector<8x8xf32>
    %218 = tpu.matmul %215, %216, %cst_158 {dimension_numbers = #tpu.dot_dimension_numbers<[1], [1], [0], [0], [0, 0, 1, 0], [], []>} : vector<8x4xbf16>, vector<8x4xbf16>, vector<8x8xf32> -> vector<8x8xf32>
    %c6 = arith.constant 6 : index
    %c0_159 = arith.constant 0 : index
    %c0_160 = arith.constant 0 : index
    %219 = vector.load %arg8[%c6, %c0_159, %c0_160] : memref<8x8x1xf32, #tpu.memory_space<vmem>>, vector<1x8x1xf32>
    %220 = vector.shape_cast %219 : vector<1x8x1xf32> to vector<8x1xf32>
    %cst_161 = arith.constant dense<0xFF800000> : vector<8xf32>
    %221 = vector.multi_reduction <maximumf>, %218, %cst_161 [1] : vector<8x8xf32> to vector<8xf32>
    %222 = vector.shape_cast %221 : vector<8xf32> to vector<8x1xf32>
    %223 = arith.maximumf %220, %222 : vector<8x1xf32>
    %224 = arith.subf %220, %223 : vector<8x1xf32>
    %225 = math.exp %224 : vector<8x1xf32>
    %226 = vector.broadcast %223 : vector<8x1xf32> to vector<8x8xf32>
    %227 = arith.subf %218, %226 : vector<8x8xf32>
    %228 = math.exp %227 : vector<8x8xf32>
    %c6_162 = arith.constant 6 : index
    %c0_163 = arith.constant 0 : index
    %c0_164 = arith.constant 0 : index
    %229 = vector.load %arg9[%c6_162, %c0_163, %c0_164] : memref<8x8x1xf32, #tpu.memory_space<vmem>>, vector<1x8x1xf32>
    %230 = vector.shape_cast %229 : vector<1x8x1xf32> to vector<8x1xf32>
    %231 = arith.mulf %225, %230 : vector<8x1xf32>
    %cst_165 = arith.constant dense<0.000000e+00> : vector<8xf32>
    %232 = vector.multi_reduction <add>, %228, %cst_165 [1] : vector<8x8xf32> to vector<8xf32>
    %233 = vector.shape_cast %232 : vector<8xf32> to vector<8x1xf32>
    %234 = arith.addf %231, %233 : vector<8x1xf32>
    %c6_166 = arith.constant 6 : index
    %c0_167 = arith.constant 0 : index
    %c0_168 = arith.constant 0 : index
    %235 = vector.load %arg9[%c6_166, %c0_167, %c0_168] : memref<8x8x1xf32, #tpu.memory_space<vmem>>, vector<1x8x1xf32>
    %236 = vector.shape_cast %235 : vector<1x8x1xf32> to vector<8x1xf32>
    %237 = vector.shape_cast %234 : vector<8x1xf32> to vector<1x8x1xf32>
    tpu.vector_store %arg9[%c6_166, %c0_167, %c0_168], %237 {strides = array<i32>} : memref<8x8x1xf32, #tpu.memory_space<vmem>>, vector<1x8x1xf32>,
    %c0_169 = arith.constant 0 : index
    %c24_170 = arith.constant 24 : index
    %238 = vector.load %arg10[%c0_169, %c24_170] : memref<8x32xf32, #tpu.memory_space<vmem>>, vector<8x4xf32>
    %239 = vector.broadcast %225 : vector<8x1xf32> to vector<8x4xf32>
    %240 = arith.mulf %239, %238 : vector<8x4xf32>
    %241 = arith.truncf %228 : vector<8x8xf32> to vector<8x8xbf16>
    %cst_171 = arith.constant dense<0.000000e+00> : vector<8x4xf32>
    %242 = tpu.matmul %241, %217, %cst_171 {dimension_numbers = #tpu.dot_dimension_numbers<[1], [0], [0], [1], [0, 0, 1, 1], [], []>} : vector<8x8xbf16>, vector<8x4xbf16>, vector<8x4xf32> -> vector<8x4xf32>
    %243 = arith.addf %240, %242 : vector<8x4xf32>
    %c0_172 = arith.constant 0 : index
    %c24_173 = arith.constant 24 : index
    %244 = vector.load %arg10[%c0_172, %c24_173] : memref<8x32xf32, #tpu.memory_space<vmem>>, vector<8x4xf32>
    tpu.vector_store %arg10[%c0_172, %c24_173], %243 {strides = array<i32>} : memref<8x32xf32, #tpu.memory_space<vmem>>, vector<8x4xf32>,
    %c6_174 = arith.constant 6 : index
    %c0_175 = arith.constant 0 : index
    %c0_176 = arith.constant 0 : index
    %245 = vector.load %arg8[%c6_174, %c0_175, %c0_176] : memref<8x8x1xf32, #tpu.memory_space<vmem>>, vector<1x8x1xf32>
    %246 = vector.shape_cast %245 : vector<1x8x1xf32> to vector<8x1xf32>
    %247 = vector.shape_cast %223 : vector<8x1xf32> to vector<1x8x1xf32>
    tpu.vector_store %arg8[%c6_174, %c0_175, %c0_176], %247 {strides = array<i32>} : memref<8x8x1xf32, #tpu.memory_space<vmem>>, vector<1x8x1xf32>,
    %c0_177 = arith.constant 0 : index
    %c28 = arith.constant 28 : index
    %248 = vector.load %arg4[%c0_177, %c28] : memref<8x32xbf16, #tpu.memory_space<vmem>>, vector<8x4xbf16>
    %cst_178 = arith.constant 5.000000e-01 : bf16
    %249 = vector.broadcast %cst_178 : bf16 to vector<8x4xbf16>
    %250 = arith.mulf %248, %249 : vector<8x4xbf16>
    %c0_179 = arith.constant 0 : index
    %c28_180 = arith.constant 28 : index
    %251 = vector.load %arg5[%c0_179, %c28_180] : memref<8x32xbf16, #tpu.memory_space<vmem>>, vector<8x4xbf16>
    %c0_181 = arith.constant 0 : index
    %c28_182 = arith.constant 28 : index
    %252 = vector.load %arg6[%c0_181, %c28_182] : memref<8x32xbf16, #tpu.memory_space<vmem>>, vector<8x4xbf16>
    %cst_183 = arith.constant dense<0.000000e+00> : vector<8x8xf32>
    %253 = tpu.matmul %250, %251, %cst_183 {dimension_numbers = #tpu.dot_dimension_numbers<[1], [1], [0], [0], [0, 0, 1, 0], [], []>} : vector<8x4xbf16>, vector<8x4xbf16>, vector<8x8xf32> -> vector<8x8xf32>
    %c7 = arith.constant 7 : index
    %c0_184 = arith.constant 0 : index
    %c0_185 = arith.constant 0 : index
    %254 = vector.load %arg8[%c7, %c0_184, %c0_185] : memref<8x8x1xf32, #tpu.memory_space<vmem>>, vector<1x8x1xf32>
    %255 = vector.shape_cast %254 : vector<1x8x1xf32> to vector<8x1xf32>
    %cst_186 = arith.constant dense<0xFF800000> : vector<8xf32>
    %256 = vector.multi_reduction <maximumf>, %253, %cst_186 [1] : vector<8x8xf32> to vector<8xf32>
    %257 = vector.shape_cast %256 : vector<8xf32> to vector<8x1xf32>
    %258 = arith.maximumf %255, %257 : vector<8x1xf32>
    %259 = arith.subf %255, %258 : vector<8x1xf32>
    %260 = math.exp %259 : vector<8x1xf32>
    %261 = vector.broadcast %258 : vector<8x1xf32> to vector<8x8xf32>
    %262 = arith.subf %253, %261 : vector<8x8xf32>
    %263 = math.exp %262 : vector<8x8xf32>
    %c7_187 = arith.constant 7 : index
    %c0_188 = arith.constant 0 : index
    %c0_189 = arith.constant 0 : index
    %264 = vector.load %arg9[%c7_187, %c0_188, %c0_189] : memref<8x8x1xf32, #tpu.memory_space<vmem>>, vector<1x8x1xf32>
    %265 = vector.shape_cast %264 : vector<1x8x1xf32> to vector<8x1xf32>
    %266 = arith.mulf %260, %265 : vector<8x1xf32>
    %cst_190 = arith.constant dense<0.000000e+00> : vector<8xf32>
    %267 = vector.multi_reduction <add>, %263, %cst_190 [1] : vector<8x8xf32> to vector<8xf32>
    %268 = vector.shape_cast %267 : vector<8xf32> to vector<8x1xf32>
    %269 = arith.addf %266, %268 : vector<8x1xf32>
    %c7_191 = arith.constant 7 : index
    %c0_192 = arith.constant 0 : index
    %c0_193 = arith.constant 0 : index
    %270 = vector.load %arg9[%c7_191, %c0_192, %c0_193] : memref<8x8x1xf32, #tpu.memory_space<vmem>>, vector<1x8x1xf32>
    %271 = vector.shape_cast %270 : vector<1x8x1xf32> to vector<8x1xf32>
    %272 = vector.shape_cast %269 : vector<8x1xf32> to vector<1x8x1xf32>
    tpu.vector_store %arg9[%c7_191, %c0_192, %c0_193], %272 {strides = array<i32>} : memref<8x8x1xf32, #tpu.memory_space<vmem>>, vector<1x8x1xf32>,
    %c0_194 = arith.constant 0 : index
    %c28_195 = arith.constant 28 : index
    %273 = vector.load %arg10[%c0_194, %c28_195] : memref<8x32xf32, #tpu.memory_space<vmem>>, vector<8x4xf32>
    %274 = vector.broadcast %260 : vector<8x1xf32> to vector<8x4xf32>
    %275 = arith.mulf %274, %273 : vector<8x4xf32>
    %276 = arith.truncf %263 : vector<8x8xf32> to vector<8x8xbf16>
    %cst_196 = arith.constant dense<0.000000e+00> : vector<8x4xf32>
    %277 = tpu.matmul %276, %252, %cst_196 {dimension_numbers = #tpu.dot_dimension_numbers<[1], [0], [0], [1], [0, 0, 1, 1], [], []>} : vector<8x8xbf16>, vector<8x4xbf16>, vector<8x4xf32> -> vector<8x4xf32>
    %278 = arith.addf %275, %277 : vector<8x4xf32>
    %c0_197 = arith.constant 0 : index
    %c28_198 = arith.constant 28 : index
    %279 = vector.load %arg10[%c0_197, %c28_198] : memref<8x32xf32, #tpu.memory_space<vmem>>, vector<8x4xf32>
    tpu.vector_store %arg10[%c0_197, %c28_198], %278 {strides = array<i32>} : memref<8x32xf32, #tpu.memory_space<vmem>>, vector<8x4xf32>,
    %c7_199 = arith.constant 7 : index
    %c0_200 = arith.constant 0 : index
    %c0_201 = arith.constant 0 : index
    %280 = vector.load %arg8[%c7_199, %c0_200, %c0_201] : memref<8x8x1xf32, #tpu.memory_space<vmem>>, vector<1x8x1xf32>
    %281 = vector.shape_cast %280 : vector<1x8x1xf32> to vector<8x1xf32>
    %282 = vector.shape_cast %258 : vector<8x1xf32> to vector<1x8x1xf32>
    tpu.vector_store %arg8[%c7_199, %c0_200, %c0_201], %282 {strides = array<i32>} : memref<8x8x1xf32, #tpu.memory_space<vmem>>, vector<1x8x1xf32>,
    %c0_i32_202 = arith.constant 0 : i32
    %283 = arith.cmpi eq, %arg3, %c0_i32_202 : i32
    %284 = arith.extui %283 : i1 to i32
    %c0_i32_203 = arith.constant 0 : i32
    %285 = arith.cmpi ne, %284, %c0_i32_203 : i32
    scf.if %285 {
      %c0_204 = arith.constant 0 : index
      %c0_205 = arith.constant 0 : index
      %286 = vector.load %arg10[%c0_204, %c0_205] : memref<8x32xf32, #tpu.memory_space<vmem>>, vector<8x4xf32>
      %c0_206 = arith.constant 0 : index
      %c0_207 = arith.constant 0 : index
      %c0_208 = arith.constant 0 : index
      %287 = vector.load %arg9[%c0_206, %c0_207, %c0_208] : memref<8x8x1xf32, #tpu.memory_space<vmem>>, vector<1x8x1xf32>
      %288 = vector.shape_cast %287 : vector<1x8x1xf32> to vector<8x1xf32>
      %289 = vector.broadcast %288 : vector<8x1xf32> to vector<8x4xf32>
      %290 = arith.divf %286, %289 : vector<8x4xf32>
      %291 = arith.truncf %290 : vector<8x4xf32> to vector<8x4xbf16>
      %c0_209 = arith.constant 0 : index
      %c0_210 = arith.constant 0 : index
      %292 = vector.load %arg7[%c0_209, %c0_210] : memref<8x32xbf16, #tpu.memory_space<vmem>>, vector<8x4xbf16>
      tpu.vector_store %arg7[%c0_209, %c0_210], %291 {strides = array<i32>} : memref<8x32xbf16, #tpu.memory_space<vmem>>, vector<8x4xbf16>,
      %c0_211 = arith.constant 0 : index
      %c4_212 = arith.constant 4 : index
      %293 = vector.load %arg10[%c0_211, %c4_212] : memref<8x32xf32, #tpu.memory_space<vmem>>, vector<8x4xf32>
      %c1_213 = arith.constant 1 : index
      %c0_214 = arith.constant 0 : index
      %c0_215 = arith.constant 0 : index
      %294 = vector.load %arg9[%c1_213, %c0_214, %c0_215] : memref<8x8x1xf32, #tpu.memory_space<vmem>>, vector<1x8x1xf32>
      %295 = vector.shape_cast %294 : vector<1x8x1xf32> to vector<8x1xf32>
      %296 = vector.broadcast %295 : vector<8x1xf32> to vector<8x4xf32>
      %297 = arith.divf %293, %296 : vector<8x4xf32>
      %298 = arith.truncf %297 : vector<8x4xf32> to vector<8x4xbf16>
      %c0_216 = arith.constant 0 : index
      %c4_217 = arith.constant 4 : index
      %299 = vector.load %arg7[%c0_216, %c4_217] : memref<8x32xbf16, #tpu.memory_space<vmem>>, vector<8x4xbf16>
      tpu.vector_store %arg7[%c0_216, %c4_217], %298 {strides = array<i32>} : memref<8x32xbf16, #tpu.memory_space<vmem>>, vector<8x4xbf16>,
      %c0_218 = arith.constant 0 : index
      %c8_219 = arith.constant 8 : index
      %300 = vector.load %arg10[%c0_218, %c8_219] : memref<8x32xf32, #tpu.memory_space<vmem>>, vector<8x4xf32>
      %c2_220 = arith.constant 2 : index
      %c0_221 = arith.constant 0 : index
      %c0_222 = arith.constant 0 : index
      %301 = vector.load %arg9[%c2_220, %c0_221, %c0_222] : memref<8x8x1xf32, #tpu.memory_space<vmem>>, vector<1x8x1xf32>
      %302 = vector.shape_cast %301 : vector<1x8x1xf32> to vector<8x1xf32>
      %303 = vector.broadcast %302 : vector<8x1xf32> to vector<8x4xf32>
      %304 = arith.divf %300, %303 : vector<8x4xf32>
      %305 = arith.truncf %304 : vector<8x4xf32> to vector<8x4xbf16>
      %c0_223 = arith.constant 0 : index
      %c8_224 = arith.constant 8 : index
      %306 = vector.load %arg7[%c0_223, %c8_224] : memref<8x32xbf16, #tpu.memory_space<vmem>>, vector<8x4xbf16>
      tpu.vector_store %arg7[%c0_223, %c8_224], %305 {strides = array<i32>} : memref<8x32xbf16, #tpu.memory_space<vmem>>, vector<8x4xbf16>,
      %c0_225 = arith.constant 0 : index
      %c12_226 = arith.constant 12 : index
      %307 = vector.load %arg10[%c0_225, %c12_226] : memref<8x32xf32, #tpu.memory_space<vmem>>, vector<8x4xf32>
      %c3_227 = arith.constant 3 : index
      %c0_228 = arith.constant 0 : index
      %c0_229 = arith.constant 0 : index
      %308 = vector.load %arg9[%c3_227, %c0_228, %c0_229] : memref<8x8x1xf32, #tpu.memory_space<vmem>>, vector<1x8x1xf32>
      %309 = vector.shape_cast %308 : vector<1x8x1xf32> to vector<8x1xf32>
      %310 = vector.broadcast %309 : vector<8x1xf32> to vector<8x4xf32>
      %311 = arith.divf %307, %310 : vector<8x4xf32>
      %312 = arith.truncf %311 : vector<8x4xf32> to vector<8x4xbf16>
      %c0_230 = arith.constant 0 : index
      %c12_231 = arith.constant 12 : index
      %313 = vector.load %arg7[%c0_230, %c12_231] : memref<8x32xbf16, #tpu.memory_space<vmem>>, vector<8x4xbf16>
      tpu.vector_store %arg7[%c0_230, %c12_231], %312 {strides = array<i32>} : memref<8x32xbf16, #tpu.memory_space<vmem>>, vector<8x4xbf16>,
      %c0_232 = arith.constant 0 : index
      %c16_233 = arith.constant 16 : index
      %314 = vector.load %arg10[%c0_232, %c16_233] : memref<8x32xf32, #tpu.memory_space<vmem>>, vector<8x4xf32>
      %c4_234 = arith.constant 4 : index
      %c0_235 = arith.constant 0 : index
      %c0_236 = arith.constant 0 : index
      %315 = vector.load %arg9[%c4_234, %c0_235, %c0_236] : memref<8x8x1xf32, #tpu.memory_space<vmem>>, vector<1x8x1xf32>
      %316 = vector.shape_cast %315 : vector<1x8x1xf32> to vector<8x1xf32>
      %317 = vector.broadcast %316 : vector<8x1xf32> to vector<8x4xf32>
      %318 = arith.divf %314, %317 : vector<8x4xf32>
      %319 = arith.truncf %318 : vector<8x4xf32> to vector<8x4xbf16>
      %c0_237 = arith.constant 0 : index
      %c16_238 = arith.constant 16 : index
      %320 = vector.load %arg7[%c0_237, %c16_238] : memref<8x32xbf16, #tpu.memory_space<vmem>>, vector<8x4xbf16>
      tpu.vector_store %arg7[%c0_237, %c16_238], %319 {strides = array<i32>} : memref<8x32xbf16, #tpu.memory_space<vmem>>, vector<8x4xbf16>,
      %c0_239 = arith.constant 0 : index
      %c20_240 = arith.constant 20 : index
      %321 = vector.load %arg10[%c0_239, %c20_240] : memref<8x32xf32, #tpu.memory_space<vmem>>, vector<8x4xf32>
      %c5_241 = arith.constant 5 : index
      %c0_242 = arith.constant 0 : index
      %c0_243 = arith.constant 0 : index
      %322 = vector.load %arg9[%c5_241, %c0_242, %c0_243] : memref<8x8x1xf32, #tpu.memory_space<vmem>>, vector<1x8x1xf32>
      %323 = vector.shape_cast %322 : vector<1x8x1xf32> to vector<8x1xf32>
      %324 = vector.broadcast %323 : vector<8x1xf32> to vector<8x4xf32>
      %325 = arith.divf %321, %324 : vector<8x4xf32>
      %326 = arith.truncf %325 : vector<8x4xf32> to vector<8x4xbf16>
      %c0_244 = arith.constant 0 : index
      %c20_245 = arith.constant 20 : index
      %327 = vector.load %arg7[%c0_244, %c20_245] : memref<8x32xbf16, #tpu.memory_space<vmem>>, vector<8x4xbf16>
      tpu.vector_store %arg7[%c0_244, %c20_245], %326 {strides = array<i32>} : memref<8x32xbf16, #tpu.memory_space<vmem>>, vector<8x4xbf16>,
      %c0_246 = arith.constant 0 : index
      %c24_247 = arith.constant 24 : index
      %328 = vector.load %arg10[%c0_246, %c24_247] : memref<8x32xf32, #tpu.memory_space<vmem>>, vector<8x4xf32>
      %c6_248 = arith.constant 6 : index
      %c0_249 = arith.constant 0 : index
      %c0_250 = arith.constant 0 : index
      %329 = vector.load %arg9[%c6_248, %c0_249, %c0_250] : memref<8x8x1xf32, #tpu.memory_space<vmem>>, vector<1x8x1xf32>
      %330 = vector.shape_cast %329 : vector<1x8x1xf32> to vector<8x1xf32>
      %331 = vector.broadcast %330 : vector<8x1xf32> to vector<8x4xf32>
      %332 = arith.divf %328, %331 : vector<8x4xf32>
      %333 = arith.truncf %332 : vector<8x4xf32> to vector<8x4xbf16>
      %c0_251 = arith.constant 0 : index
      %c24_252 = arith.constant 24 : index
      %334 = vector.load %arg7[%c0_251, %c24_252] : memref<8x32xbf16, #tpu.memory_space<vmem>>, vector<8x4xbf16>
      tpu.vector_store %arg7[%c0_251, %c24_252], %333 {strides = array<i32>} : memref<8x32xbf16, #tpu.memory_space<vmem>>, vector<8x4xbf16>,
      %c0_253 = arith.constant 0 : index
      %c28_254 = arith.constant 28 : index
      %335 = vector.load %arg10[%c0_253, %c28_254] : memref<8x32xf32, #tpu.memory_space<vmem>>, vector<8x4xf32>
      %c7_255 = arith.constant 7 : index
      %c0_256 = arith.constant 0 : index
      %c0_257 = arith.constant 0 : index
      %336 = vector.load %arg9[%c7_255, %c0_256, %c0_257] : memref<8x8x1xf32, #tpu.memory_space<vmem>>, vector<1x8x1xf32>
      %337 = vector.shape_cast %336 : vector<1x8x1xf32> to vector<8x1xf32>
      %338 = vector.broadcast %337 : vector<8x1xf32> to vector<8x4xf32>
      %339 = arith.divf %335, %338 : vector<8x4xf32>
      %340 = arith.truncf %339 : vector<8x4xf32> to vector<8x4xbf16>
      %c0_258 = arith.constant 0 : index
      %c28_259 = arith.constant 28 : index
      %341 = vector.load %arg7[%c0_258, %c28_259] : memref<8x32xbf16, #tpu.memory_space<vmem>>, vector<8x4xbf16>
      tpu.vector_store %arg7[%c0_258, %c28_259], %340 {strides = array<i32>} : memref<8x32xbf16, #tpu.memory_space<vmem>>, vector<8x4xbf16>,
    } else {
    }
    return
  }
  func.func @transform_0(%arg0: i32, %arg1: i32, %arg2: i32, %arg3: i32) -> (i32, i32) {
    %c1_i32 = arith.constant 1 : i32
    %0 = arith.muli %arg0, %c1_i32 : i32
    %1 = arith.addi %0, %arg2 : i32
    %c0_i32 = arith.constant 0 : i32
    return %1, %arg1 : i32, i32
  }
  func.func @transform_1(%arg0: i32, %arg1: i32, %arg2: i32, %arg3: i32) -> (i32, i32) {
    %c1_i32 = arith.constant 1 : i32
    %0 = arith.muli %arg0, %c1_i32 : i32
    %1 = arith.addi %0, %arg3 : i32
    %c0_i32 = arith.constant 0 : i32
    return %1, %arg1 : i32, i32
  }
  func.func @transform_2(%arg0: i32, %arg1: i32, %arg2: i32, %arg3: i32) -> (i32, i32) {
    %c1_i32 = arith.constant 1 : i32
    %0 = arith.muli %arg0, %c1_i32 : i32
    %1 = arith.addi %0, %arg3 : i32
    %c0_i32 = arith.constant 0 : i32
    return %1, %arg1 : i32, i32
  }
  func.func @transform_3(%arg0: i32, %arg1: i32, %arg2: i32, %arg3: i32) -> (i32, i32) {
    %c1_i32 = arith.constant 1 : i32
    %0 = arith.muli %arg0, %c1_i32 : i32
    %1 = arith.addi %0, %arg2 : i32
    %c0_i32 = arith.constant 0 : i32
    return %1, %arg1 : i32, i32
  }
}

</mosaic_0001>

<bundles_post_ra>
// kernel: ssast_attention.5
= control target key start
LH: loop header
LB: loop body
LE: loop exit
PB: predicated region body
PF: predicated region fallthrough
CT: control target
= control target key end

     0   :  { %vm19_vm0 = vcmask 261120   ;;  %v708_v1 = vmov 0.0   ;;  %s1028_s1 = inlined_call_operand.vmem [shape: bf16[32,32], index: 1, kind: input, shape index: {}]   ;;  %s1029_s0 = inlined_call_operand.vmem [shape: bf16[256,32], index: 0, kind: input, shape index: {}]   ;;  %s1030_s2 = inlined_call_operand.vmem [shape: f32[1,32], index: 2, kind: input, shape index: {}]   ;;  %s1031_s3 = inlined_call_operand.vmem [shape: f32[256,32], index: 3, kind: output, shape index: {}]  }
   0x1   :  { %v690_v0 = vld [vmem:[%s1028_s1 + $0x8] sm:$0xff]   ;;  %22 = vst.msk [vmem:[#allocation2 + $0x10] sm:$0xff] %vm19_vm0, %v708_v1  ;;  %20 = vst.msk [vmem:[#allocation2] sm:$0xff] %vm19_vm0, %v708_v1  ;;  %v691_v2 = vld [vmem:[%s1028_s1] sm:$0xff]  }
   0x2   :  { %21 = vst.msk [vmem:[#allocation2 + $0x8] sm:$0xff] %vm19_vm0, %v708_v1  ;;  %23 = vst.msk [vmem:[#allocation2 + $0x18] sm:$0xff] %vm19_vm0, %v708_v1  ;;  %649 = vmatprep.subr.bf16.mxu0 %v690_v0  ;;  %685 = vmatprep.subr.bf16.mxu1 %v690_v0  ;;  %v692_v3 = vld [vmem:[%s1029_s0] sm:$0xff]   ;;  %v694_v5 = vld [vmem:[%s1029_s0 + $0x8] sm:$0xff]  }
   0x3   :  { %24 = vst.msk [vmem:[#allocation2 + $0x20] sm:$0xff] %vm19_vm0, %v708_v1  ;;  %25 = vst.msk [vmem:[#allocation2 + $0x28] sm:$0xff] %vm19_vm0, %v708_v1  ;;  %650 = vmatpush3.bf16.msra.mxu0 %v690_v0  ;;  %687 = vmatpush3.bf16.msra.mxu1 %v690_v0  ;;  %v693_v4 = vld [vmem:[%s1029_s0 + $0x40] sm:$0xff]   ;;  %v695_v6 = vld [vmem:[%s1029_s0 + $0x48] sm:$0xff]  }
   0x4   :  { %26 = vst.msk [vmem:[#allocation2 + $0x30] sm:$0xff] %vm19_vm0, %v708_v1  ;;  %27 = vst.msk [vmem:[#allocation2 + $0x38] sm:$0xff] %vm19_vm0, %v708_v1  ;;  %651 = vmatprep.subr.bf16.mxu0 %v691_v2  ;;  %686 = vmatprep.subr.bf16.mxu1 %v691_v2  ;;  %v696_v7 = vld [vmem:[%s1029_s0 + $0x10] sm:$0xff]   ;;  %v698_v9 = vld [vmem:[%s1029_s0 + $0x18] sm:$0xff]  }
   0x5   :  { %28 = vst.msk [vmem:[#allocation2 + $0x40] sm:$0xff] %vm19_vm0, %v708_v1  ;;  %29 = vst.msk [vmem:[#allocation2 + $0x48] sm:$0xff] %vm19_vm0, %v708_v1  ;;  %653 = vmatprep.mubr.msk.bf16.mxu0 %vm19_vm0, %v692_v3  ;;  %669 = vmatprep.mubr.msk.bf16.mxu1 %vm19_vm0, %v693_v4  ;;  %v697_v8 = vld [vmem:[%s1029_s0 + $0x50] sm:$0xff]   ;;  %v699_v10 = vld [vmem:[%s1029_s0 + $0x58] sm:$0xff]  }
   0x6   :  { %30 = vst.msk [vmem:[#allocation2 + $0x50] sm:$0xff] %vm19_vm0, %v708_v1  ;;  %31 = vst.msk [vmem:[#allocation2 + $0x58] sm:$0xff] %vm19_vm0, %v708_v1  ;;  %v700_v11 = vld [vmem:[%s1029_s0 + $0x20] sm:$0xff]   ;;  %v702_v13 = vld [vmem:[%s1029_s0 + $0x28] sm:$0xff]  }
   0x7   :  { %32 = vst.msk [vmem:[#allocation2 + $0x60] sm:$0xff] %vm19_vm0, %v708_v1  ;;  %33 = vst.msk [vmem:[#allocation2 + $0x68] sm:$0xff] %vm19_vm0, %v708_v1  ;;  %652 = vmatpush3.bf16.msra.mxu0 %v691_v2  ;;  %688 = vmatpush3.bf16.msra.mxu1 %v691_v2  ;;  %v701_v12 = vld [vmem:[%s1029_s0 + $0x60] sm:$0xff]   ;;  %v703_v14 = vld [vmem:[%s1029_s0 + $0x68] sm:$0xff]  }
   0x8   :  { %34 = vst.msk [vmem:[#allocation2 + $0x70] sm:$0xff] %vm19_vm0, %v708_v1  ;;  %35 = vst.msk [vmem:[#allocation2 + $0x78] sm:$0xff] %vm19_vm0, %v708_v1  ;;  %v704_v15 = vld [vmem:[%s1029_s0 + $0x30] sm:$0xff]   ;;  %v706_v17 = vld [vmem:[%s1029_s0 + $0x38] sm:$0xff]  }
   0x9   :  { %36 = vst.msk [vmem:[#allocation2 + $0x80] sm:$0xff] %vm19_vm0, %v708_v1  ;;  %37 = vst.msk [vmem:[#allocation2 + $0x88] sm:$0xff] %vm19_vm0, %v708_v1  ;;  %v705_v16 = vld [vmem:[%s1029_s0 + $0x70] sm:$0xff]   ;;  %v707_v18 = vld [vmem:[%s1029_s0 + $0x78] sm:$0xff]  }
   0xa   :  { %38 = vst.msk [vmem:[#allocation2 + $0x90] sm:$0xff] %vm19_vm0, %v708_v1  ;;  %39 = vst.msk [vmem:[#allocation2 + $0x98] sm:$0xff] %vm19_vm0, %v708_v1  ;;  %654 = vmatmul.mubr.msk.bf16.vlgmr.msra.gmra.mxu0 %vm19_vm0, %v694_v5  ;;  %670 = vmatmul.mubr.msk.bf16.vlgmr.msra.gmra.mxu1 %vm19_vm0, %v695_v6  ;;  %v54_v19 = vld [vmem:[#allocation2 + $0x10] sm:$0xff]  ;;  %v52_v23 = vld [vmem:[#allocation2] sm:$0xff] }
   0xb   :  { %40 = vst.msk [vmem:[#allocation2 + $0xa0] sm:$0xff] %vm19_vm0, %v708_v1  ;;  %41 = vst.msk [vmem:[#allocation2 + $0xa8] sm:$0xff] %vm19_vm0, %v708_v1  ;;  %657 = vmatprep.mubr.msk.bf16.mxu0 %vm19_vm0, %v696_v7  ;;  %673 = vmatprep.mubr.msk.bf16.mxu1 %vm19_vm0, %v697_v8  ;;  %v55_v29 = vld [vmem:[#allocation2 + $0x18] sm:$0xff]  ;;  %v53_v35 = vld [vmem:[#allocation2 + $0x8] sm:$0xff] }
   0xc   :  { %42 = vst.msk [vmem:[#allocation2 + $0xb0] sm:$0xff] %vm19_vm0, %v708_v1  ;;  %43 = vst.msk [vmem:[#allocation2 + $0xb8] sm:$0xff] %vm19_vm0, %v708_v1  ;;  %v58_v41 = vld [vmem:[#allocation2 + $0x30] sm:$0xff]  ;;  %v840_v45 = vld [vmem:[%s1030_s2] ss:$0 sm:$0xff] }
   0xd   :  { %44 = vst.msk [vmem:[#allocation2 + $0xc0] sm:$0xff] %vm19_vm0, %v708_v1  ;;  %45 = vst.msk [vmem:[#allocation2 + $0xc8] sm:$0xff] %vm19_vm0, %v708_v1  ;;  %v56_v48 = vld [vmem:[#allocation2 + $0x20] sm:$0xff]  ;;  %v59_v52 = vld [vmem:[#allocation2 + $0x38] sm:$0xff] }
   0xe   :  { %46 = vst.msk [vmem:[#allocation2 + $0xd0] sm:$0xff] %vm19_vm0, %v708_v1  ;;  %47 = vst.msk [vmem:[#allocation2 + $0xd8] sm:$0xff] %vm19_vm0, %v708_v1  ;;  %v57_v62 = vld [vmem:[#allocation2 + $0x28] sm:$0xff]  ;;  %v62_v8 = vld [vmem:[#allocation2 + $0x50] sm:$0xff] }
   0xf   :  { %48 = vst.msk [vmem:[#allocation2 + $0xe0] sm:$0xff] %vm19_vm0, %v708_v1  ;;  %49 = vst.msk [vmem:[#allocation2 + $0xe8] sm:$0xff] %vm19_vm0, %v708_v1 }
  0x10   :  { %50 = vst.msk [vmem:[#allocation2 + $0xf0] sm:$0xff] %vm19_vm0, %v708_v1  ;;  %51 = vst.msk [vmem:[#allocation2 + $0xf8] sm:$0xff] %vm19_vm0, %v708_v1  ;;  %v68_v24 = vld [vmem:[#allocation2 + $0x80] sm:$0xff]  ;;  %v69_v36 = vld [vmem:[#allocation2 + $0x88] sm:$0xff] }
  0x11   :  { %v70_v20 = vld [vmem:[#allocation2 + $0x90] sm:$0xff]  ;;  %v71_v30 = vld [vmem:[#allocation2 + $0x98] sm:$0xff] }
  0x12   :  { %658 = vmatmul.mubr.msk.bf16.gmra.mxu0 %vm19_vm0, %v698_v9  ;;  %674 = vmatmul.mubr.msk.bf16.gmra.mxu1 %vm19_vm0, %v699_v10  ;;  %v72_v49 = vld [vmem:[#allocation2 + $0xa0] sm:$0xff]  ;;  %v73_v3 = vld [vmem:[#allocation2 + $0xa8] sm:$0xff] }
  0x13   :  { %661 = vmatprep.mubr.msk.bf16.mxu0 %vm19_vm0, %v700_v11  ;;  %677 = vmatprep.mubr.msk.bf16.mxu1 %vm19_vm0, %v701_v12  ;;  %v74_v42 = vld [vmem:[#allocation2 + $0xb0] sm:$0xff]  ;;  %v75_v57 = vld [vmem:[#allocation2 + $0xb8] sm:$0xff] }
  0x1a   :  { %662 = vmatmul.mubr.msk.bf16.gmra.mxu0 %vm19_vm0, %v702_v13  ;;  %678 = vmatmul.mubr.msk.bf16.gmra.mxu1 %vm19_vm0, %v703_v14  ;;  %v78_v13 = vld [vmem:[#allocation2 + $0xd0] sm:$0xff] }
  0x1b   :  { %665 = vmatprep.mubr.msk.bf16.mxu0 %vm19_vm0, %v704_v15  ;;  %681 = vmatprep.mubr.msk.bf16.mxu1 %vm19_vm0, %v705_v16 }
  0x22   :  { %666 = vmatmul.mubr.msk.bf16.gmra.mxu0 %vm19_vm0, %v706_v17  ;;  %682 = vmatmul.mubr.msk.bf16.gmra.mxu1 %vm19_vm0, %v707_v18  ;;  %v60_v18 = vld [vmem:[#allocation2 + $0x40] sm:$0xff] }
  0xca   :  { %v655_v21 = vpop.f32.mrf.mxu0  ;;  %v671_v22 = vpop.f32.mrf.mxu1 }
  0xcb   :  { %v424_v25 = vadd.f32 %v655_v21, %v54_v19  ;;  %v440_v26 = vadd.f32 %v671_v22, %v70_v20 }
  0xcc   :  { %v295_v27 = vpop.f32.mrf.mxu0  ;;  %v359_v28 = vpop.f32.mrf.mxu1 }
  0xcd   :  { %456 = vst.msk [vmem:[#allocation2 + $0x10] sm:$0xff] %vm19_vm0, %v424_v25  ;;  %472 = vst.msk [vmem:[#allocation2 + $0x90] sm:$0xff] %vm19_vm0, %v440_v26  ;;  %v422_v31 = vadd.f32 %v295_v27, %v52_v23  ;;  %v438_v32 = vadd.f32 %v359_v28, %v68_v24  ;;  %v76_v23 = vld [vmem:[#allocation2 + $0xc0] sm:$0xff]  ;;  %v63_v28 = vld [vmem:[#allocation2 + $0x58] sm:$0xff] }
  0xce   :  { %v656_v33 = vpop.f32.mrf.mxu0  ;;  %v672_v34 = vpop.f32.mrf.mxu1 }
  0xcf   :  { %454 = vst.msk [vmem:[#allocation2] sm:$0xff] %vm19_vm0, %v422_v31  ;;  %470 = vst.msk [vmem:[#allocation2 + $0x80] sm:$0xff] %vm19_vm0, %v438_v32  ;;  %v425_v37 = vadd.f32 %v656_v33, %v55_v29  ;;  %v441_v38 = vadd.f32 %v672_v34, %v71_v30  ;;  %v79_v33 = vld [vmem:[#allocation2 + $0xd8] sm:$0xff] }
  0xd0   :  { %v298_v39 = vpop.f32.mrf.mxu0  ;;  %v362_v40 = vpop.f32.mrf.mxu1 }
  0xd1   :  { %457 = vst.msk [vmem:[#allocation2 + $0x18] sm:$0xff] %vm19_vm0, %v425_v37  ;;  %473 = vst.msk [vmem:[#allocation2 + $0x98] sm:$0xff] %vm19_vm0, %v441_v38  ;;  %v423_v43 = vadd.f32 %v298_v39, %v53_v35  ;;  %v439_v44 = vadd.f32 %v362_v40, %v69_v36  ;;  %v61_v38 = vld [vmem:[#allocation2 + $0x48] sm:$0xff] }
  0xd2   :  { %v659_v46 = vpop.f32.mrf.mxu0  ;;  %v675_v47 = vpop.f32.mrf.mxu1 }
  0xd3   :  { %455 = vst.msk [vmem:[#allocation2 + $0x8] sm:$0xff] %vm19_vm0, %v423_v43  ;;  %471 = vst.msk [vmem:[#allocation2 + $0x88] sm:$0xff] %vm19_vm0, %v439_v44  ;;  %v428_v50 = vadd.f32 %v659_v46, %v58_v41  ;;  %v444_v51 = vadd.f32 %v675_v47, %v74_v42  ;;  %v77_v43 = vld [vmem:[#allocation2 + $0xc8] sm:$0xff] }
  0xd4   :  { %v491_v53 = vld [vmem:[#allocation2 + $0x10] sm:$0xff]  ;;  %v311_v55 = vpop.f32.mrf.mxu0  ;;  %v375_v56 = vpop.f32.mrf.mxu1 }
  0xd5   :  { %v507_v54 = vld [vmem:[#allocation2 + $0x90] sm:$0xff]  ;;  %v530_v58 = vadd.f32 %v840_v45, %v491_v53  ;;  %460 = vst.msk [vmem:[#allocation2 + $0x30] sm:$0xff] %vm19_vm0, %v428_v50  ;;  %476 = vst.msk [vmem:[#allocation2 + $0xb0] sm:$0xff] %vm19_vm0, %v444_v51  ;;  %v426_v60 = vadd.f32 %v311_v55, %v56_v48  ;;  %v442_v61 = vadd.f32 %v375_v56, %v72_v49 }
  0xd6   :  { %v546_v59 = vadd.f32 %v840_v45, %v507_v54  ;;  %v489_v63 = vld [vmem:[#allocation2] sm:$0xff]  ;;  %v660_v1 = vpop.f32.mrf.mxu0  ;;  %v676_v2 = vpop.f32.mrf.mxu1  ;;  %v66_v49 = vld [vmem:[#allocation2 + $0x70] sm:$0xff] }
  0xd7   :  { %v505_v0 = vld [vmem:[#allocation2 + $0x80] sm:$0xff]  ;;  %562 = vst.msk [vmem:[%s1031_s3 + $0x10] sm:$0xff] %vm19_vm0, %v530_v58  ;;  %v528_v4 = vadd.f32 %v840_v45, %v489_v63  ;;  %458 = vst.msk [vmem:[#allocation2 + $0x20] sm:$0xff] %vm19_vm0, %v426_v60  ;;  %v429_v6 = vadd.f32 %v660_v1, %v59_v52  ;;  %v445_v7 = vadd.f32 %v676_v2, %v75_v57  ;;  %v82_v54 = vld [vmem:[#allocation2 + $0xf0] sm:$0xff] }
  0xd8   :  { %578 = vst.msk [vmem:[%s1031_s3 + $0x90] sm:$0xff] %vm19_vm0, %v546_v59  ;;  %v544_v5 = vadd.f32 %v840_v45, %v505_v0  ;;  %474 = vst.msk [vmem:[#allocation2 + $0xa0] sm:$0xff] %vm19_vm0, %v442_v61  ;;  %v492_v9 = vld [vmem:[#allocation2 + $0x18] sm:$0xff]  ;;  %v314_v11 = vpop.f32.mrf.mxu0  ;;  %v378_v12 = vpop.f32.mrf.mxu1  ;;  %v64_v59 = vld [vmem:[#allocation2 + $0x60] sm:$0xff] }
  0xd9   :  { %v508_v10 = vld [vmem:[#allocation2 + $0x98] sm:$0xff]  ;;  %560 = vst.msk [vmem:[%s1031_s3] sm:$0xff] %vm19_vm0, %v528_v4  ;;  %v531_v14 = vadd.f32 %v840_v45, %v492_v9  ;;  %461 = vst.msk [vmem:[#allocation2 + $0x38] sm:$0xff] %vm19_vm0, %v429_v6  ;;  %v427_v16 = vadd.f32 %v314_v11, %v57_v62  ;;  %v443_v17 = vadd.f32 %v378_v12, %v73_v3  ;;  %v80_v0 = vld [vmem:[#allocation2 + $0xe0] sm:$0xff] }
  0xda   :  { %576 = vst.msk [vmem:[%s1031_s3 + $0x80] sm:$0xff] %vm19_vm0, %v544_v5  ;;  %v547_v15 = vadd.f32 %v840_v45, %v508_v10  ;;  %477 = vst.msk [vmem:[#allocation2 + $0xb8] sm:$0xff] %vm19_vm0, %v445_v7  ;;  %v490_v19 = vld [vmem:[#allocation2 + $0x8] sm:$0xff]  ;;  %v663_v21 = vpop.f32.mrf.mxu0  ;;  %v679_v22 = vpop.f32.mrf.mxu1  ;;  %v67_v5 = vld [vmem:[#allocation2 + $0x78] sm:$0xff] }
  0xdb   :  { %v506_v20 = vld [vmem:[#allocation2 + $0x88] sm:$0xff]  ;;  %563 = vst.msk [vmem:[%s1031_s3 + $0x18] sm:$0xff] %vm19_vm0, %v531_v14  ;;  %v529_v24 = vadd.f32 %v840_v45, %v490_v19  ;;  %459 = vst.msk [vmem:[#allocation2 + $0x28] sm:$0xff] %vm19_vm0, %v427_v16  ;;  %v432_v26 = vadd.f32 %v663_v21, %v62_v8  ;;  %v448_v27 = vadd.f32 %v679_v22, %v78_v13  ;;  %v83_v10 = vld [vmem:[#allocation2 + $0xf8] sm:$0xff] }
  0xdc   :  { %579 = vst.msk [vmem:[%s1031_s3 + $0x98] sm:$0xff] %vm19_vm0, %v547_v15  ;;  %v545_v25 = vadd.f32 %v840_v45, %v506_v20  ;;  %475 = vst.msk [vmem:[#allocation2 + $0xa8] sm:$0xff] %vm19_vm0, %v443_v17  ;;  %v495_v29 = vld [vmem:[#allocation2 + $0x30] sm:$0xff]  ;;  %v327_v31 = vpop.f32.mrf.mxu0  ;;  %v391_v32 = vpop.f32.mrf.mxu1  ;;  %v65_v15 = vld [vmem:[#allocation2 + $0x68] sm:$0xff] }
  0xdd   :  { %v511_v30 = vld [vmem:[#allocation2 + $0xb0] sm:$0xff]  ;;  %561 = vst.msk [vmem:[%s1031_s3 + $0x8] sm:$0xff] %vm19_vm0, %v529_v24  ;;  %v534_v34 = vadd.f32 %v840_v45, %v495_v29  ;;  %464 = vst.msk [vmem:[#allocation2 + $0x50] sm:$0xff] %vm19_vm0, %v432_v26  ;;  %v430_v36 = vadd.f32 %v327_v31, %v60_v18  ;;  %v446_v37 = vadd.f32 %v391_v32, %v76_v23  ;;  %v81_v20 = vld [vmem:[#allocation2 + $0xe8] sm:$0xff] }
  0xde   :  { %577 = vst.msk [vmem:[%s1031_s3 + $0x88] sm:$0xff] %vm19_vm0, %v545_v25  ;;  %v550_v35 = vadd.f32 %v840_v45, %v511_v30  ;;  %480 = vst.msk [vmem:[#allocation2 + $0xd0] sm:$0xff] %vm19_vm0, %v448_v27  ;;  %v493_v39 = vld [vmem:[#allocation2 + $0x20] sm:$0xff]  ;;  %v664_v41 = vpop.f32.mrf.mxu0  ;;  %v680_v42 = vpop.f32.mrf.mxu1 }
  0xdf   :  { %v509_v40 = vld [vmem:[#allocation2 + $0xa0] sm:$0xff]  ;;  %566 = vst.msk [vmem:[%s1031_s3 + $0x30] sm:$0xff] %vm19_vm0, %v534_v34  ;;  %v532_v44 = vadd.f32 %v840_v45, %v493_v39  ;;  %462 = vst.msk [vmem:[#allocation2 + $0x40] sm:$0xff] %vm19_vm0, %v430_v36  ;;  %v433_v47 = vadd.f32 %v664_v41, %v63_v28  ;;  %v449_v48 = vadd.f32 %v680_v42, %v79_v33 }
  0xe0   :  { %582 = vst.msk [vmem:[%s1031_s3 + $0xb0] sm:$0xff] %vm19_vm0, %v550_v35  ;;  %v548_v46 = vadd.f32 %v840_v45, %v509_v40  ;;  %478 = vst.msk [vmem:[#allocation2 + $0xc0] sm:$0xff] %vm19_vm0, %v446_v37  ;;  %v496_v50 = vld [vmem:[#allocation2 + $0x38] sm:$0xff]  ;;  %v330_v52 = vpop.f32.mrf.mxu0  ;;  %v394_v53 = vpop.f32.mrf.mxu1 }
  0xe1   :  { %v512_v51 = vld [vmem:[#allocation2 + $0xb8] sm:$0xff]  ;;  %564 = vst.msk [vmem:[%s1031_s3 + $0x20] sm:$0xff] %vm19_vm0, %v532_v44  ;;  %v535_v55 = vadd.f32 %v840_v45, %v496_v50  ;;  %465 = vst.msk [vmem:[#allocation2 + $0x58] sm:$0xff] %vm19_vm0, %v433_v47  ;;  %v431_v57 = vadd.f32 %v330_v52, %v61_v38  ;;  %v447_v58 = vadd.f32 %v394_v53, %v77_v43 }
  0xe2   :  { %580 = vst.msk [vmem:[%s1031_s3 + $0xa0] sm:$0xff] %vm19_vm0, %v548_v46  ;;  %v551_v56 = vadd.f32 %v840_v45, %v512_v51  ;;  %481 = vst.msk [vmem:[#allocation2 + $0xd8] sm:$0xff] %vm19_vm0, %v449_v48  ;;  %v494_v60 = vld [vmem:[#allocation2 + $0x28] sm:$0xff]  ;;  %v667_v62 = vpop.f32.mrf.mxu0  ;;  %v683_v63 = vpop.f32.mrf.mxu1 }
  0xe3   :  { %v510_v61 = vld [vmem:[#allocation2 + $0xa8] sm:$0xff]  ;;  %567 = vst.msk [vmem:[%s1031_s3 + $0x38] sm:$0xff] %vm19_vm0, %v535_v55  ;;  %v533_v1 = vadd.f32 %v840_v45, %v494_v60  ;;  %463 = vst.msk [vmem:[#allocation2 + $0x48] sm:$0xff] %vm19_vm0, %v431_v57  ;;  %v436_v3 = vadd.f32 %v667_v62, %v66_v49  ;;  %v452_v4 = vadd.f32 %v683_v63, %v82_v54 }
  0xe4   :  { %583 = vst.msk [vmem:[%s1031_s3 + $0xb8] sm:$0xff] %vm19_vm0, %v551_v56  ;;  %v549_v2 = vadd.f32 %v840_v45, %v510_v61  ;;  %479 = vst.msk [vmem:[#allocation2 + $0xc8] sm:$0xff] %vm19_vm0, %v447_v58  ;;  %v499_v6 = vld [vmem:[#allocation2 + $0x50] sm:$0xff]  ;;  %v343_v8 = vpop.f32.mrf.mxu0  ;;  %v407_v9 = vpop.f32.mrf.mxu1 }
  0xe5   :  { %v515_v7 = vld [vmem:[#allocation2 + $0xd0] sm:$0xff]  ;;  %565 = vst.msk [vmem:[%s1031_s3 + $0x28] sm:$0xff] %vm19_vm0, %v533_v1  ;;  %v538_v11 = vadd.f32 %v840_v45, %v499_v6  ;;  %468 = vst.msk [vmem:[#allocation2 + $0x70] sm:$0xff] %vm19_vm0, %v436_v3  ;;  %v434_v13 = vadd.f32 %v343_v8, %v64_v59  ;;  %v450_v14 = vadd.f32 %v407_v9, %v80_v0 }
  0xe6   :  { %581 = vst.msk [vmem:[%s1031_s3 + $0xa8] sm:$0xff] %vm19_vm0, %v549_v2  ;;  %v554_v12 = vadd.f32 %v840_v45, %v515_v7  ;;  %484 = vst.msk [vmem:[#allocation2 + $0xf0] sm:$0xff] %vm19_vm0, %v452_v4  ;;  %v497_v16 = vld [vmem:[#allocation2 + $0x40] sm:$0xff]  ;;  %v668_v18 = vpop.f32.mrf.mxu0  ;;  %v684_v19 = vpop.f32.mrf.mxu1 }
  0xe7   :  { %v513_v17 = vld [vmem:[#allocation2 + $0xc0] sm:$0xff]  ;;  %570 = vst.msk [vmem:[%s1031_s3 + $0x50] sm:$0xff] %vm19_vm0, %v538_v11  ;;  %v536_v21 = vadd.f32 %v840_v45, %v497_v16  ;;  %466 = vst.msk [vmem:[#allocation2 + $0x60] sm:$0xff] %vm19_vm0, %v434_v13  ;;  %v437_v23 = vadd.f32 %v668_v18, %v67_v5  ;;  %v453_v24 = vadd.f32 %v684_v19, %v83_v10 }
  0xe8   :  { %586 = vst.msk [vmem:[%s1031_s3 + $0xd0] sm:$0xff] %vm19_vm0, %v554_v12  ;;  %v552_v22 = vadd.f32 %v840_v45, %v513_v17  ;;  %482 = vst.msk [vmem:[#allocation2 + $0xe0] sm:$0xff] %vm19_vm0, %v450_v14  ;;  %v500_v25 = vld [vmem:[#allocation2 + $0x58] sm:$0xff]  ;;  %v346_v27 = vpop.f32.mrf.mxu0  ;;  %v410_v28 = vpop.f32.mrf.mxu1 }
  0xe9   :  { %v516_v26 = vld [vmem:[#allocation2 + $0xd8] sm:$0xff]  ;;  %568 = vst.msk [vmem:[%s1031_s3 + $0x40] sm:$0xff] %vm19_vm0, %v536_v21  ;;  %v539_v29 = vadd.f32 %v840_v45, %v500_v25  ;;  %469 = vst.msk [vmem:[#allocation2 + $0x78] sm:$0xff] %vm19_vm0, %v437_v23  ;;  %v435_v31 = vadd.f32 %v346_v27, %v65_v15  ;;  %v451_v32 = vadd.f32 %v410_v28, %v81_v20 }
  0xea   :  { %584 = vst.msk [vmem:[%s1031_s3 + $0xc0] sm:$0xff] %vm19_vm0, %v552_v22  ;;  %v555_v30 = vadd.f32 %v840_v45, %v516_v26  ;;  %485 = vst.msk [vmem:[#allocation2 + $0xf8] sm:$0xff] %vm19_vm0, %v453_v24  ;;  %v498_v33 = vld [vmem:[#allocation2 + $0x48] sm:$0xff] }
  0xeb   :  { %v514_v34 = vld [vmem:[#allocation2 + $0xc8] sm:$0xff]  ;;  %571 = vst.msk [vmem:[%s1031_s3 + $0x58] sm:$0xff] %vm19_vm0, %v539_v29  ;;  %v537_v35 = vadd.f32 %v840_v45, %v498_v33  ;;  %467 = vst.msk [vmem:[#allocation2 + $0x68] sm:$0xff] %vm19_vm0, %v435_v31 }
  0xec   :  { %587 = vst.msk [vmem:[%s1031_s3 + $0xd8] sm:$0xff] %vm19_vm0, %v555_v30  ;;  %v553_v36 = vadd.f32 %v840_v45, %v514_v34  ;;  %483 = vst.msk [vmem:[#allocation2 + $0xe8] sm:$0xff] %vm19_vm0, %v451_v32  ;;  %v503_v37 = vld [vmem:[#allocation2 + $0x70] sm:$0xff] }
  0xed   :  { %v519_v38 = vld [vmem:[#allocation2 + $0xf0] sm:$0xff]  ;;  %569 = vst.msk [vmem:[%s1031_s3 + $0x48] sm:$0xff] %vm19_vm0, %v537_v35  ;;  %v542_v39 = vadd.f32 %v840_v45, %v503_v37 }
  0xee   :  { %585 = vst.msk [vmem:[%s1031_s3 + $0xc8] sm:$0xff] %vm19_vm0, %v553_v36  ;;  %v558_v40 = vadd.f32 %v840_v45, %v519_v38  ;;  %v501_v41 = vld [vmem:[#allocation2 + $0x60] sm:$0xff] }
  0xef   :  { %v517_v42 = vld [vmem:[#allocation2 + $0xe0] sm:$0xff]  ;;  %574 = vst.msk [vmem:[%s1031_s3 + $0x70] sm:$0xff] %vm19_vm0, %v542_v39  ;;  %v540_v43 = vadd.f32 %v840_v45, %v501_v41 }
  0xf0   :  { %590 = vst.msk [vmem:[%s1031_s3 + $0xf0] sm:$0xff] %vm19_vm0, %v558_v40  ;;  %v556_v44 = vadd.f32 %v840_v45, %v517_v42  ;;  %v504_v46 = vld [vmem:[#allocation2 + $0x78] sm:$0xff] }
  0xf1   :  { %v520_v47 = vld [vmem:[#allocation2 + $0xf8] sm:$0xff]  ;;  %572 = vst.msk [vmem:[%s1031_s3 + $0x60] sm:$0xff] %vm19_vm0, %v540_v43  ;;  %v543_v48 = vadd.f32 %v840_v45, %v504_v46 }
  0xf2   :  { %588 = vst.msk [vmem:[%s1031_s3 + $0xe0] sm:$0xff] %vm19_vm0, %v556_v44  ;;  %v559_v49 = vadd.f32 %v840_v45, %v520_v47  ;;  %v502_v50 = vld [vmem:[#allocation2 + $0x68] sm:$0xff] }
  0xf3   :  { %v518_v51 = vld [vmem:[#allocation2 + $0xe8] sm:$0xff]  ;;  %575 = vst.msk [vmem:[%s1031_s3 + $0x78] sm:$0xff] %vm19_vm0, %v543_v48  ;;  %v541_v52 = vadd.f32 %v840_v45, %v502_v50 }
  0xf4   :  { %591 = vst.msk [vmem:[%s1031_s3 + $0xf8] sm:$0xff] %vm19_vm0, %v559_v49  ;;  %v557_v53 = vadd.f32 %v840_v45, %v518_v51 }
  0xf5   :  { %573 = vst.msk [vmem:[%s1031_s3 + $0x68] sm:$0xff] %vm19_vm0, %v541_v52 }
  0xf6   :  { %589 = vst.msk [vmem:[%s1031_s3 + $0xe8] sm:$0xff] %vm19_vm0, %v557_v53 }

// kernel: ssast_attention.4
= control target key start
LH: loop header
LB: loop body
LE: loop exit
PB: predicated region body
PF: predicated region fallthrough
CT: control target
= control target key end

     0   :  { %s2073_s12 = smov 0   ;;  %s2075_s13 = smov 0   ;;  %s2433_s0 = inlined_call_operand.vmem [shape: bf16[256,32], index: 0, kind: input, shape index: {}]   ;;  %s2434_s1 = inlined_call_operand.vmem [shape: bf16[256,32], index: 1, kind: input, shape index: {}]   ;;  %s2435_s2 = inlined_call_operand.vmem [shape: bf16[256,32], index: 2, kind: input, shape index: {}]   ;;  %s2436_s3 = inlined_call_operand.vmem [shape: bf16[256,32], index: 3, kind: output, shape index: {}]  }
   0x1   :  { %s2077_s14 = smov 0  }
   0x2 LB: > { %s39_s15 = sadd.s32 1, %s2029_s13  ;;  %p1733_p0 = scmp.ge.s32.totalorder %s2033_s14, 1  ;;  %s2033_s14 = sphi %s2077_s14, %s13_s14   ;;  %s2029_s13 = sphi %s2075_s13, %s2438_s13   ;;  %s2025_s12 = sphi %s2073_s12, %s2437_s12  }
   0x3   : > { %p41_p1 = scmp.ge.s32.totalorder %s39_s15, 2  ;;  %p211_p2 = scmp.lt.s32.totalorder %s2033_s14, 3 }
   0x5   : > { %s2440_s15 = smov (%p41_p1, %s39_s15), 0  ;;  %p212_p3 = pnand %p1733_p0, %p211_p2 }
   0x6   : > { %p258_p4 = scmp.lt.s32.totalorder (!%p212_p3), %s2025_s12, 31  ;;  %s2039_s23 = smov (!%p212_p3), 124  }
   0x7   : > { %215 = sbr.rel (%p212_p3) target bundleno = 1682 (0x692), region = 32  ;;  %s2040_s27 = smov (!%p212_p3), 120  }
   0x8   : > { %s2041_s28 = smov (!%p212_p3), 116   ;;  %s2042_s29 = smov (!%p212_p3), 112  }
   0x9   : > { %s2043_s30 = smov (!%p212_p3), 108   ;;  %s2044_s4 = smov (!%p212_p3), 104  }
   0xa   : > { %s2045_s5 = smov (!%p212_p3), 100   ;;  %s2046_s6 = smov (!%p212_p3), 4  }
   0xb   : > { %s2047_s7 = smov (!%p212_p3), 8   ;;  %s2048_s8 = smov (!%p212_p3), 12  }
   0xc   : > { %v2035_v0 = vmov 0.0   ;;  %vm2036_vm0 = vmmov 0   ;;  %s2442_s12 = smov (!%p258_p4, %s2025_s12), 31  ;;  %vm322_vm1 = vcmask 31744   ;;  %vm299_vm2 = vcmask 7168   ;;  %s2049_s9 = smov 16  }
   0xd   : > { %1809 = vmatprep.subr.bf16.mxu0 %v2035_v0  ;;  %1811 = vmatprep.mubr.msk.bf16.mxu0 %vm2036_vm0, %v2035_v0  ;;  %s2097_s16 = sshll.u32 %s2442_s12, 2  ;;  %v2037_v5 = vmov -inf   ;;  %308 = vst.msk [vmem:[#allocation3] sm:$0xff] %vm299_vm2, %v2035_v0  ;;  %309 = vst.msk [vmem:[#allocation3 + $0x8] sm:$0xff] %vm299_vm2, %v2035_v0  ;;  %vm370_vm3 = vcmask 64512   ;;  %v2038_v11 = vmov 0  }
   0xe   : > { %1815 = vmatprep.subr.bf16.mxu1 %v2035_v0  ;;  %1817 = vmatprep.mubr.msk.bf16.mxu1 %vm2036_vm0, %v2035_v0  ;;  %s2103_s19 = scalar_lea.vmem %s2434_s1, %s2097_s16  ;;  %s2110_s22 = scalar_lea.vmem %s2433_s0, %s2097_s16  ;;  %300 = vst.msk [vmem:[#allocation2] sm:$0xff] %vm299_vm2, %v2037_v5  ;;  %301 = vst.msk [vmem:[#allocation2 + $0x8] sm:$0xff] %vm299_vm2, %v2037_v5  ;;  %vm405_vm4 = vcmask 1043456   ;;  %vm316_vm5 = vcmask 261120   ;;  %vm601_vm6 = vcmask 64544   ;;  %vm753_vm7 = vcmask 97344  }
   0xf   : > { %v320_v1 = vld [vmem:[%s2103_s19] sm:$0xf]  ;;  %302 = vst.msk [vmem:[#allocation2 + $0x10] sm:$0xff] %vm299_vm2, %v2037_v5  ;;  %303 = vst.msk [vmem:[#allocation2 + $0x18] sm:$0xff] %vm299_vm2, %v2037_v5  ;;  %1947 = vset.pattern.permute.xlu0 %v2038_v11  ;;  %1948 = vset.pattern.permute.xlu1 %v2038_v11  ;;  %s2156_s26 = scalar_lea.vmem %s2435_s2, %s2097_s16  ;;  %s2050_s10 = smov 20   ;;  %vm905_vm8 = vcmask 130144  }
  0x10   : > { %v327_v2 = vsel %vm322_vm1, %v320_v1, 0  ;;  %v318_v3 = vld [vmem:[%s2110_s22] sm:$0xf]  ;;  %304 = vst.msk [vmem:[#allocation2 + $0x20] sm:$0xff] %vm299_vm2, %v2037_v5  ;;  %305 = vst.msk [vmem:[#allocation2 + $0x28] sm:$0xff] %vm299_vm2, %v2037_v5  ;;  %s2051_s11 = smov 24  }
  0x11   : > { %1810 = vmatpush3.bf16.xpose.msra.mxu0 %v327_v2  ;;  %v319_v4 = vmul.bf16 1056980736, %v318_v3  ;;  %306 = vst.msk [vmem:[#allocation2 + $0x30] sm:$0xff] %vm299_vm2, %v2037_v5  ;;  %307 = vst.msk [vmem:[#allocation2 + $0x38] sm:$0xff] %vm299_vm2, %v2037_v5  ;;  %v1949_v12 = vld [vmem:[%s2103_s19] ss:$0 sps:$4 sm:$0xff]  }
  0x12   : > { %1827 = vmatprep.subr.bf16.mxu0 %v2035_v0  ;;  %310 = vst.msk [vmem:[#allocation3 + $0x10] sm:$0xff] %vm299_vm2, %v2035_v0  ;;  %311 = vst.msk [vmem:[#allocation3 + $0x18] sm:$0xff] %vm299_vm2, %v2035_v0  ;;  %v452_v13 = vld [vmem:[%s2110_s22] sm:$0xf]  ;;  %464 = vrot.lane.b32.xlu1 %v1949_v12, %s2039_s23  ;;  %vm1057_vm9 = vcmask 162944   ;;  %vm1209_vm10 = vcmask 195744  }
  0x13   : > { %312 = vst.msk [vmem:[#allocation3 + $0x20] sm:$0xff] %vm299_vm2, %v2035_v0  ;;  %313 = vst.msk [vmem:[#allocation3 + $0x28] sm:$0xff] %vm299_vm2, %v2035_v0  ;;  %v453_v14 = vmul.bf16 1056980736, %v452_v13  ;;  %v604_v16 = vld [vmem:[%s2110_s22] sm:$0xf] }
  0x14   : > { %314 = vst.msk [vmem:[#allocation3 + $0x30] sm:$0xff] %vm299_vm2, %v2035_v0  ;;  %315 = vst.msk [vmem:[#allocation3 + $0x38] sm:$0xff] %vm299_vm2, %v2035_v0  ;;  %v1950_v17 = vld [vmem:[%s2103_s19] ss:$0 sps:$4 sm:$0xff]   ;;  %v605_v18 = vmul.bf16 1056980736, %v604_v16 }
  0x15   : > { %v1740_v15 = vcombine.low %v453_v14, %v453_v14  ;;  %v756_v20 = vld [vmem:[%s2110_s22] sm:$0xf]  ;;  %317 = vst.msk [vmem:[#allocation4] sm:$0xff] %vm316_vm5, %v2035_v0  ;;  %s2052_s12 = smov 28   ;;  %vm1361_vm11 = vcmask 228544   ;;  %vm1513_vm12 = vcmask 261344  }
  0x16   : > { %v1745_v19 = vcombine.low %v605_v18, %v605_v18  ;;  %v1951_v21 = vld [vmem:[%s2103_s19] ss:$0 sps:$4 sm:$0xff]   ;;  %v757_v22 = vmul.bf16 1056980736, %v756_v20  ;;  %vm1529_vm13 = vcmask 27648   ;;  %vm1541_vm14 = vcmask 60448  }
  0x17   : > { %459 = vrot.lane.b32.xlu1 %v1740_v15, %s2039_s23  ;;  %v908_v24 = vld [vmem:[%s2110_s22] sm:$0xf]  ;;  %vm1553_vm15 = vcmask 93248  }
  0x18   : > { %1812 = vmatmul.mubr.msk.bf16.vlgmr.msra.gmra.mxu0 %vm322_vm1, %v319_v4  ;;  %v1750_v23 = vcombine.low %v757_v22, %v757_v22  ;;  %v1952_v25 = vld [vmem:[%s2103_s19] ss:$0 sps:$4 sm:$0xff]   ;;  %v909_v26 = vmul.bf16 1056980736, %v908_v24 }
  0x19   : > { %1829 = vmatprep.mubr.msk.bf16.mxu0 %vm2036_vm0, %v2035_v0  ;;  %v1060_v28 = vld [vmem:[%s2110_s22] sm:$0xf] }
  0x1a   : > { %v1755_v27 = vcombine.low %v909_v26, %v909_v26  ;;  %v1953_v29 = vld [vmem:[%s2103_s19] ss:$0 sps:$4 sm:$0xff]   ;;  %v1061_v30 = vmul.bf16 1056980736, %v1060_v28 }
  0x1b   : > { %616 = vrot.lane.b32.xlu1 %v1950_v17, %s2040_s27  ;;  %v1212_v32 = vld [vmem:[%s2110_s22] sm:$0xf] }
  0x1c   : > { %v1760_v31 = vcombine.low %v1061_v30, %v1061_v30  ;;  %v1954_v33 = vld [vmem:[%s2103_s19] ss:$0 sps:$4 sm:$0xff]   ;;  %v1213_v34 = vmul.bf16 1056980736, %v1212_v32 }
  0x1d   : > { %v2176_v36 = vld [vmem:[#allocation2] sm:$0xff] }
  0x1e   : > { %v1765_v35 = vcombine.low %v1213_v34, %v1213_v34  ;;  %v1955_v40 = vld [vmem:[%s2103_s19] ss:$0 sps:$4 sm:$0xff]   ;;  %s2414_s19 = scalar_lea.vmem %s2436_s3, %s2097_s16 }
  0x1f   : > { %611 = vrot.lane.b32.xlu1 %v1745_v19, %s2040_s27  ;;  %v321_v41 = vld [vmem:[%s2156_s26] sm:$0xf] }
  0x20   : > { %v407_v42 = vsel %vm405_vm4, %v321_v41, 0  ;;  %v1956_v43 = vld [vmem:[%s2156_s26] ss:$0 sps:$4 sm:$0xff]  }
  0x21   : > { %1816 = vmatpush3.bf16.msra.mxu1 %v407_v42  ;;  %v1364_v44 = vld [vmem:[%s2110_s22] sm:$0xf] }
  0x22   : > { %1821 = vmatprep.subr.bf16.mxu1 %v2035_v0  ;;  %v1365_v45 = vmul.bf16 1056980736, %v1364_v44  ;;  %v386_v15 = vld [vmem:[#allocation3] sm:$0xff] }
  0x23   : > { %768 = vrot.lane.b32.xlu1 %v1951_v21, %s2041_s28 }
  0x24   : > { %v1770_v46 = vcombine.low %v1365_v45, %v1365_v45 }
  0x27   : > { %763 = vrot.lane.b32.xlu1 %v1750_v23, %s2041_s28 }
  0x2b   : > { %920 = vrot.lane.b32.xlu1 %v1952_v25, %s2042_s29 }
  0x2f   : > { %915 = vrot.lane.b32.xlu1 %v1755_v27, %s2042_s29 }
  0x33   : > { %1072 = vrot.lane.b32.xlu1 %v1953_v29, %s2043_s30 }
  0x37   : > { %1067 = vrot.lane.b32.xlu1 %v1760_v31, %s2043_s30 }
  0x3b   : > { %1224 = vrot.lane.b32.xlu1 %v1954_v33, %s2044_s4 }
  0x3f   : > { %1219 = vrot.lane.b32.xlu1 %v1765_v35, %s2044_s4 }
  0x43   : > { %1371 = vrot.lane.b32.xlu1 %v1770_v46, %s2045_s5 }
  0x84   : > { %v465_v47 = vpop.permute.xlu1 %464 }
  0x85   : > { %v470_v58 = vsel %vm322_vm1, %v465_v47, 0 }
  0x89   : > { %v460_v50 = vpop.permute.xlu1 %459 }
  0x8d   : > { %v617_v53 = vpop.permute.xlu1 %616 }
  0x8e   : > { %v622_v63 = vsel %vm322_vm1, %v617_v53, 0 }
  0x91   : > { %v612_v56 = vpop.permute.xlu1 %611 }
  0x95   : > { %v769_v61 = vpop.permute.xlu1 %768 }
  0x96   : > { %v774_v2 = vsel %vm322_vm1, %v769_v61, 0 }
  0x99   : > { %v764_v62 = vpop.permute.xlu1 %763 }
  0x9d   : > { %v921_v1 = vpop.permute.xlu1 %920 }
  0x9e   : > { %v926_v4 = vsel %vm322_vm1, %v921_v1, 0 }
  0xa1   : > { %v916_v3 = vpop.permute.xlu1 %915 }
  0xa5   : > { %v1073_v5 = vpop.permute.xlu1 %1072 }
  0xd8   : > { %v2142_v6 = vpop.f32.mrf.mxu0 }
  0xd9   : > { %v371_v7 = vsel %vm370_vm3, %v2142_v6, -inf }
  0xda   : > { %372 = vmax.xlane.f32.xlu0 %v371_v7  ;;  %v1813_v8 = vpop.f32.mrf.mxu0  ;;  %v1078_v7 = vsel %vm322_vm1, %v1073_v5, 0 }
  0xdc   : > { %v366_v9 = vpop.f32.mrf.mxu0 }
  0xde   : > { %v1814_v10 = vpop.f32.mrf.mxu0 }
 0x163   : > { %v373_v37 = vpop.xlane.xlu0 %372 }
 0x164   : > { %v2179_v38 = vmax.f32 %v2176_v36, %v373_v37 }
 0x166   : > { %v375_v39 = vsub.f32 %v2176_v36, %v2179_v38  ;;  %451 = vst.msk [vmem:[#allocation2] sm:$0xff] %vm299_vm2, %v2179_v38  ;;  %380 = vperm.xlu0 %1947, %v2179_v38  }
 0x168   : > { %v376_v13 = vmul.f32 1.442695, %v375_v39 }
 0x16a   : > { %1376 = vrot.lane.b32.xlu0 %v1955_v40, %s2045_s5 }
 0x16e   : > { %548 = vrot.lane.b32.xlu0 %v1956_v43, %s2039_s23 }
 0x1e1   : > { %v381_v48 = vpop.permute.xlu0 %380 }
 0x1e2   : > { %v383_v49 = vsub.f32 %v2142_v6, %v381_v48  ;;  %v1068_v6 = vpop.permute.xlu1 %1067 }
 0x1e4   : > { %v384_v51 = vmul.f32 1.442695, %v383_v49 }
 0x1e5   : > { %v1377_v52 = vpop.permute.xlu0 %1376 }
 0x1e6   : > { %1963 = vpow2.f32 %v384_v51  ;;  %v1225_v8 = vpop.permute.xlu1 %1224  ;;  %v1382_v11 = vsel %vm322_vm1, %v1377_v52, 0 }
 0x1e7   : > { %v1230_v9 = vsel %vm322_vm1, %v1225_v8, 0  ;;  %1965 = vpow2.f32 %v376_v13 }
 0x1e9   : > { %v549_v54 = vpop.permute.xlu0 %548 }
 0x1ea   : > { %v554_v55 = vsel %vm405_vm4, %v549_v54, 0  ;;  %v1220_v10 = vpop.permute.xlu1 %1219 }
 0x1eb   : > { %1828 = vmatpush3.bf16.msra.mxu0 %v554_v55 }
 0x1ec   : > { %1839 = vmatprep.subr.bf16.mxu0 %v2035_v0 }
 0x1ee   : > { %v1372_v12 = vpop.permute.xlu1 %1371 }
 0x1f3   : > { %v1964_v57 = vpop.eup %1963 }
 0x1f4   : > { %v388_v59 = vsel %vm370_vm3, %v1964_v57, 0.0  ;;  %v401_v60 = vpack.c.bf16 %v1964_v57, %v1964_v57  ;;  %v1966_v14 = vpop.eup %1965 }
 0x1f5   : > { %389 = vadd.xlane.f32.xlu0 %v388_v59  ;;  %v387_v16 = vmul.f32 %v1966_v14, %v386_v15  ;;  %v665_v59 = vld [vmem:[#allocation2 + $0x10] sm:$0xff] }
 0x1f6   : > { %1818 = vmatmul.mubr.msk.bf16.vlgmr.msra.gmra.mxu1 %vm370_vm3, %v401_v60 }
 0x1f7   : > { %1822 = vmatpush3.bf16.xpose.msra.mxu1 %v470_v58  ;;  %1823 = vmatprep.mubr.msk.bf16.mxu1 %vm2036_vm0, %v2035_v0 }
 0x1f8   : > { %1833 = vmatprep.subr.bf16.mxu1 %v2035_v0 }
 0x1fe   : > { %1824 = vmatmul.mubr.msk.bf16.vlgmr.msra.gmra.mxu1 %vm322_vm1, %v460_v50 }
 0x1ff   : > { %1834 = vmatpush3.bf16.xpose.msra.mxu1 %v622_v63  ;;  %1835 = vmatprep.mubr.msk.bf16.mxu1 %vm2036_vm0, %v2035_v0 }
 0x200   : > { %1845 = vmatprep.subr.bf16.mxu1 %v2035_v0 }
 0x206   : > { %1836 = vmatmul.mubr.msk.bf16.vlgmr.msra.gmra.mxu1 %vm322_vm1, %v612_v56  ;;  %v513_v56 = vld [vmem:[#allocation2 + $0x8] sm:$0xff] }
 0x207   : > { %1846 = vmatpush3.bf16.xpose.msra.mxu1 %v774_v2  ;;  %1847 = vmatprep.mubr.msk.bf16.mxu1 %vm2036_vm0, %v2035_v0  ;;  %v2268_v2 = vld [vmem:[#allocation2 + $0x28] sm:$0xff] }
 0x208   : > { %1857 = vmatprep.subr.bf16.mxu1 %v2035_v0 }
 0x20e   : > { %1848 = vmatmul.mubr.msk.bf16.vlgmr.msra.gmra.mxu1 %vm322_vm1, %v764_v62  ;;  %v817_v62 = vld [vmem:[#allocation2 + $0x18] sm:$0xff] }
 0x20f   : > { %1858 = vmatpush3.bf16.xpose.msra.mxu1 %v926_v4  ;;  %1859 = vmatprep.mubr.msk.bf16.mxu1 %vm2036_vm0, %v2035_v0 }
 0x210   : > { %1869 = vmatprep.subr.bf16.mxu1 %v2035_v0 }
 0x216   : > { %1860 = vmatmul.mubr.msk.bf16.vlgmr.msra.gmra.mxu1 %vm322_vm1, %v916_v3 }
 0x217   : > { %1870 = vmatpush3.bf16.xpose.msra.mxu1 %v1078_v7  ;;  %1871 = vmatprep.mubr.msk.bf16.mxu1 %vm2036_vm0, %v2035_v0  ;;  %v2277_v7 = vld [vmem:[#allocation2 + $0x30] sm:$0xff] }
 0x218   : > { %1881 = vmatprep.subr.bf16.mxu1 %v2035_v0 }
 0x21e   : > { %1872 = vmatmul.mubr.msk.bf16.vlgmr.msra.gmra.mxu1 %vm322_vm1, %v1068_v6 }
 0x21f   : > { %1882 = vmatpush3.bf16.xpose.msra.mxu1 %v1230_v9  ;;  %1883 = vmatprep.mubr.msk.bf16.mxu1 %vm2036_vm0, %v2035_v0 }
 0x220   : > { %1893 = vmatprep.subr.bf16.mxu1 %v2035_v0 }
 0x226   : > { %1884 = vmatmul.mubr.msk.bf16.vlgmr.msra.gmra.mxu1 %vm322_vm1, %v1220_v10 }
 0x227   : > { %1894 = vmatpush3.bf16.xpose.msra.mxu1 %v1382_v11  ;;  %1895 = vmatprep.mubr.msk.bf16.mxu1 %vm2036_vm0, %v2035_v0 }
 0x22e   : > { %1896 = vmatmul.mubr.msk.bf16.vlgmr.msra.gmra.mxu1 %vm322_vm1, %v1372_v12  ;;  %v394_v12 = vld [vmem:[#allocation4] sm:$0xff] }
 0x27e   : > { %v390_v17 = vpop.xlane.xlu0 %389 }
 0x27f   : > { %v391_v18 = vadd.f32 %v390_v17, %v387_v16 }
 0x281   : > { %393 = vst.msk [vmem:[#allocation3] sm:$0xff] %vm299_vm2, %v391_v18 }
 0x2b6   : > { %v2238_v19 = vpop.f32.mrf.mxu1 }
 0x2b8   : > { %v1819_v20 = vpop.f32.mrf.mxu1 }
 0x2ba   : > { %v446_v21 = vpop.f32.mrf.mxu1 }
 0x2bc   : > { %v1820_v22 = vpop.f32.mrf.mxu1 }
 0x2bd   : > { %v1957_v22 = vld [vmem:[%s2156_s26] ss:$0 sps:$4 sm:$0xff]  }
 0x2be   : > { %v2240_v23 = vpop.f32.mrf.mxu1 }
 0x2bf   : > { %v514_v24 = vsel %vm370_vm3, %v2240_v23, -inf }
 0x2c0   : > { %515 = vmax.xlane.f32.xlu1 %v514_v24  ;;  %v1825_v25 = vpop.f32.mrf.mxu1 }
 0x2c2   : > { %v509_v26 = vpop.f32.mrf.mxu1 }
 0x2c4   : > { %v1826_v27 = vpop.f32.mrf.mxu1 }
 0x2c6   : > { %v2244_v28 = vpop.f32.mrf.mxu1 }
 0x2c7   : > { %v666_v29 = vsel %vm370_vm3, %v2244_v28, -inf }
 0x2c8   : > { %v1837_v30 = vpop.f32.mrf.mxu1  ;;  %667 = vmax.xlane.f32.xlu0 %v666_v29 }
 0x2ca   : > { %v661_v31 = vpop.f32.mrf.mxu1 }
 0x2cc   : > { %v1838_v32 = vpop.f32.mrf.mxu1 }
 0x2ce   : > { %v2248_v33 = vpop.f32.mrf.mxu1 }
 0x2cf   : > { %v818_v34 = vsel %vm370_vm3, %v2248_v33, -inf }
 0x2d0   : > { %v1849_v35 = vpop.f32.mrf.mxu1  ;;  %819 = vmax.xlane.f32.xlu1 %v818_v34  ;;  %v969_v34 = vld [vmem:[#allocation2 + $0x20] sm:$0xff] }
 0x2d2   : > { %v813_v36 = vpop.f32.mrf.mxu1 }
 0x2d4   : > { %v1850_v37 = vpop.f32.mrf.mxu1 }
 0x2d6   : > { %v2252_v38 = vpop.f32.mrf.mxu1 }
 0x2d7   : > { %v970_v4 = vsel %vm370_vm3, %v2252_v38, -inf }
 0x2d8   : > { %v1861_v39 = vpop.f32.mrf.mxu1 }
 0x2da   : > { %v965_v40 = vpop.f32.mrf.mxu1 }
 0x2dc   : > { %v1862_v41 = vpop.f32.mrf.mxu1 }
 0x2dd   : > { %v2308_v41 = vld [vmem:[#allocation2 + $0x38] sm:$0xff] }
 0x2de   : > { %v2254_v42 = vpop.f32.mrf.mxu1 }
 0x2df   : > { %v1122_v43 = vsel %vm370_vm3, %v2254_v42, -inf }
 0x2e0   : > { %v1873_v44 = vpop.f32.mrf.mxu1  ;;  %1123 = vmax.xlane.f32.xlu1 %v1122_v43 }
 0x2e2   : > { %v1117_v45 = vpop.f32.mrf.mxu1 }
 0x2e4   : > { %v1874_v46 = vpop.f32.mrf.mxu1 }
 0x2e6   : > { %v2258_v47 = vpop.f32.mrf.mxu1 }
 0x2e7   : > { %v1274_v48 = vsel %vm370_vm3, %v2258_v47, -inf }
 0x2e8   : > { %1275 = vmax.xlane.f32.xlu1 %v1274_v48  ;;  %v1885_v49 = vpop.f32.mrf.mxu1 }
 0x2ea   : > { %v1269_v50 = vpop.f32.mrf.mxu1 }
 0x2eb   : > { %v1960_v50 = vld [vmem:[%s2156_s26] ss:$0 sps:$4 sm:$0xff]  }
 0x2ec   : > { %v1886_v51 = vpop.f32.mrf.mxu1 }
 0x2ee   : > { %v2263_v52 = vpop.f32.mrf.mxu1 }
 0x2ef   : > { %v1426_v15 = vsel %vm370_vm3, %v2263_v52, -inf }
 0x2f0   : > { %v1897_v53 = vpop.f32.mrf.mxu1 }
 0x2f2   : > { %v1421_v54 = vpop.f32.mrf.mxu1 }
 0x2f3   : > { %v1961_v54 = vld [vmem:[%s2156_s26] ss:$0 sps:$4 sm:$0xff]  }
 0x2f4   : > { %v1898_v55 = vpop.f32.mrf.mxu1 }
 0x2f9   : > { %397 = vperm.xlu1 %1948, %v1966_v14  }
 0x349   : > { %v516_v57 = vpop.xlane.xlu1 %515 }
 0x34a   : > { %v517_v58 = vmax.f32 %v513_v56, %v516_v57  ;;  %v1962_v57 = vld [vmem:[%s2156_s26] ss:$0 sps:$4 sm:$0xff]  }
 0x34c   : > { %603 = vst.msk [vmem:[#allocation2 + $0x8] sm:$0xff] %vm299_vm2, %v517_v58  ;;  %523 = vperm.xlu0 %1947, %v517_v58   ;;  %v518_v17 = vsub.f32 %v513_v56, %v517_v58 }
 0x34e   : > { %v519_v20 = vmul.f32 1.442695, %v518_v17 }
 0x351   : > { %v668_v60 = vpop.xlane.xlu0 %667 }
 0x352   : > { %v669_v61 = vmax.f32 %v665_v59, %v668_v60 }
 0x354   : > { %755 = vst.msk [vmem:[#allocation2 + $0x10] sm:$0xff] %vm299_vm2, %v669_v61  ;;  %675 = vperm.xlu1 %1948, %v669_v61   ;;  %v670_v6 = vsub.f32 %v665_v59, %v669_v61 }
 0x356   : > { %v671_v8 = vmul.f32 1.442695, %v670_v6 }
 0x358   : > { %1967 = vpow2.f32 %v671_v8 }
 0x359   : > { %v820_v63 = vpop.xlane.xlu1 %819 }
 0x35a   : > { %v821_v1 = vmax.f32 %v817_v62, %v820_v63 }
 0x35c   : > { %907 = vst.msk [vmem:[#allocation2 + $0x18] sm:$0xff] %vm299_vm2, %v821_v1  ;;  %v822_v9 = vsub.f32 %v817_v62, %v821_v1 }
 0x35e   : > { %v823_v13 = vmul.f32 1.442695, %v822_v9 }
 0x360   : > { %1969 = vpow2.f32 %v823_v13 }
 0x361   : > { %1971 = vpow2.f32 %v519_v20 }
 0x365   : > { %v2288_v21 = vpop.eup %1967 }
 0x369   : > { %v1124_v3 = vpop.xlane.xlu1 %1123 }
 0x36a   : > { %v2273_v5 = vmax.f32 %v2268_v2, %v1124_v3 }
 0x36b   : > { %971 = vmax.xlane.f32.xlu0 %v970_v4 }
 0x36c   : > { %1211 = vst.msk [vmem:[#allocation2 + $0x28] sm:$0xff] %vm299_vm2, %v2273_v5 }
 0x36d   : > { %v2292_v24 = vpop.eup %1969 }
 0x36e   : > { %v2296_v25 = vpop.eup %1971 }
 0x371   : > { %v1276_v10 = vpop.xlane.xlu1 %1275 }
 0x372   : > { %v2280_v11 = vmax.f32 %v2277_v7, %v1276_v10 }
 0x374   : > { %1363 = vst.msk [vmem:[#allocation2 + $0x30] sm:$0xff] %vm299_vm2, %v2280_v11 }
 0x375   : > { %v398_v14 = vpop.permute.xlu1 %397 }
 0x376   : > { %v400_v16 = vmul.f32 %v398_v14, %v394_v12 }
 0x378   : > { %v449_v18 = vadd.f32 %v2238_v19, %v400_v16  ;;  %1427 = vmax.xlane.f32.xlu1 %v1426_v15 }
 0x37a   : > { %450 = vst.msk [vmem:[#allocation4] sm:$0xff] %vm322_vm1, %v449_v18  ;;  %vm1577_vm1 = vcmask 158848  }
 0x381   : > { %827 = vperm.xlu0 %1947, %v821_v1  }
 0x385   : > { %692 = vperm.xlu0 %1947, %v2288_v21  }
 0x389   : > { %844 = vperm.xlu0 %1947, %v2292_v24   ;;  %700 = vrot.lane.b32.xlu1 %v1957_v22, %s2040_s27 }
 0x38d   : > { %540 = vperm.xlu1 %1948, %v2296_v25  }
 0x3c7   : > { %v524_v19 = vpop.permute.xlu0 %523 }
 0x3c8   : > { %v526_v26 = vsub.f32 %v2240_v23, %v524_v19  ;;  %v1958_v23 = vld [vmem:[%s2156_s26] ss:$0 sps:$4 sm:$0xff]  }
 0x3ca   : > { %v527_v27 = vmul.f32 1.442695, %v526_v26 }
 0x3cc   : > { %1973 = vpow2.f32 %v527_v27 }
 0x3cf   : > { %v676_v31 = vpop.permute.xlu1 %675 }
 0x3d0   : > { %v678_v32 = vsub.f32 %v2244_v28, %v676_v31  ;;  %v1959_v28 = vld [vmem:[%s2156_s26] ss:$0 sps:$4 sm:$0xff]  }
 0x3d2   : > { %v679_v35 = vmul.f32 1.442695, %v678_v32 }
 0x3d4   : > { %1975 = vpow2.f32 %v679_v35 }
 0x3d9   : > { %v1974_v29 = vpop.eup %1973 }
 0x3da   : > { %v544_v30 = vpack.c.bf16 %v1974_v29, %v1974_v29  ;;  %v532_v62 = vsel %vm370_vm3, %v1974_v29, 0.0 }
 0x3dc   : > { %1830 = vmatmul.mubr.msk.bf16.vlgmr.msra.gmra.mxu0 %vm370_vm3, %v544_v30 }
 0x3dd   : > { %1841 = vmatprep.mubr.msk.bf16.mxu0 %vm2036_vm0, %v2035_v0 }
 0x3e1   : > { %v1976_v46 = vpop.eup %1975 }
 0x3e2   : > { %v696_v53 = vpack.c.bf16 %v1976_v46, %v1976_v46  ;;  %v684_v59 = vsel %vm370_vm3, %v1976_v46, 0.0 }
 0x3f4   : > { %v972_v36 = vpop.xlane.xlu0 %971 }
 0x3f5   : > { %v973_v37 = vmax.f32 %v969_v34, %v972_v36 }
 0x3f7   : > { %v974_v39 = vsub.f32 %v969_v34, %v973_v37  ;;  %1059 = vst.msk [vmem:[#allocation2 + $0x20] sm:$0xff] %vm299_vm2, %v973_v37  ;;  %979 = vperm.xlu1 %1948, %v973_v37  }
 0x3f9   : > { %v975_v40 = vmul.f32 1.442695, %v974_v39 }
 0x3fb   : > { %1977 = vpow2.f32 %v975_v40  ;;  %852 = vrot.lane.b32.xlu1 %v1958_v23, %s2041_s28 }
 0x3fc   : > { %v828_v55 = vpop.permute.xlu0 %827 }
 0x3fd   : > { %v830_v56 = vsub.f32 %v2248_v33, %v828_v55 }
 0x3ff   : > { %1131 = vperm.xlu1 %1948, %v2273_v5   ;;  %v831_v58 = vmul.f32 1.442695, %v830_v56 }
 0x400   : > { %v693_v46 = vpop.permute.xlu0 %692 }
 0x401   : > { %v1428_v43 = vpop.xlane.xlu1 %1427  ;;  %1979 = vpow2.f32 %v831_v58 }
 0x402   : > { %v2312_v44 = vmax.f32 %v2308_v41, %v1428_v43 }
 0x403   : > { %1004 = vrot.lane.b32.xlu1 %v1959_v28, %s2042_s29 }
 0x404   : > { %v1430_v45 = vsub.f32 %v2308_v41, %v2312_v44  ;;  %1515 = vst.msk [vmem:[#allocation2 + $0x38] sm:$0xff] %vm299_vm2, %v2312_v44 }
 0x405   : > { %v701_v48 = vpop.permute.xlu1 %700 }
 0x406   : > { %v706_v49 = vsel %vm405_vm4, %v701_v48, 0  ;;  %v2377_v48 = vpop.permute.xlu0 %844 }
 0x407   : > { %1283 = vperm.xlu1 %1948, %v2280_v11   ;;  %1840 = vmatpush3.bf16.msra.mxu0 %v706_v49 }
 0x408   : > { %v2322_v51 = vpop.eup %1977  ;;  %1851 = vmatprep.subr.bf16.mxu0 %v2035_v0 }
 0x409   : > { %996 = vperm.xlu0 %1947, %v2322_v51   ;;  %v2339_v63 = vpop.permute.xlu1 %540 }
 0x40a   : > { %1842 = vmatmul.mubr.msk.bf16.vlgmr.msra.gmra.mxu0 %vm370_vm3, %v696_v53 }
 0x40b   : > { %1156 = vrot.lane.b32.xlu1 %v1960_v50, %s2043_s30  ;;  %1853 = vmatprep.mubr.msk.bf16.mxu0 %vm2036_vm0, %v2035_v0  ;;  %v682_v50 = vld [vmem:[#allocation3 + $0x10] sm:$0xff] }
 0x40e   : > { %v1980_v60 = vpop.eup %1979 }
 0x40f   : > { %1435 = vperm.xlu1 %1948, %v2312_v44   ;;  %v836_v61 = vsel %vm370_vm3, %v1980_v60, 0.0  ;;  %v848_v8 = vpack.c.bf16 %v1980_v60, %v1980_v60 }
 0x413   : > { %1308 = vrot.lane.b32.xlu1 %v1961_v54, %s2044_s4  ;;  %v834_v54 = vld [vmem:[#allocation3 + $0x18] sm:$0xff] }
 0x414   : > { %v835_v56 = vmul.f32 %v2292_v24, %v834_v54 }
 0x417   : > { %1460 = vrot.lane.b32.xlu1 %v1962_v57, %s2045_s5 }
 0x428   : > { %685 = vadd.xlane.f32.xlu0 %v684_v59  ;;  %v1278_v59 = vsub.f32 %v2277_v7, %v2280_v11  ;;  %v1126_v7 = vsub.f32 %v2268_v2, %v2273_v5 }
 0x42a   : > { %v1279_v60 = vmul.f32 1.442695, %v1278_v59  ;;  %v1127_v11 = vmul.f32 1.442695, %v1126_v7 }
 0x42c   : > { %837 = vadd.xlane.f32.xlu0 %v836_v61  ;;  %v530_v61 = vld [vmem:[#allocation3 + $0x8] sm:$0xff] }
 0x43b   : > { %533 = vadd.xlane.f32.xlu1 %v532_v62  ;;  %v531_v62 = vmul.f32 %v2296_v25, %v530_v61  ;;  %v986_v25 = vld [vmem:[#allocation3 + $0x20] sm:$0xff] }
 0x472   : > { %v980_v33 = vpop.permute.xlu1 %979 }
 0x473   : > { %v982_v1 = vsub.f32 %v2252_v38, %v980_v33 }
 0x475   : > { %v983_v3 = vmul.f32 1.442695, %v982_v1 }
 0x476   : > { %v853_v4 = vpop.permute.xlu1 %852 }
 0x477   : > { %1981 = vpow2.f32 %v983_v3  ;;  %v858_v6 = vsel %vm405_vm4, %v853_v4, 0 }
 0x478   : > { %1852 = vmatpush3.bf16.msra.mxu0 %v858_v6 }
 0x479   : > { %1863 = vmatprep.subr.bf16.mxu0 %v2035_v0 }
 0x47a   : > { %v1132_v9 = vpop.permute.xlu1 %1131 }
 0x47b   : > { %v1134_v10 = vsub.f32 %v2254_v42, %v1132_v9  ;;  %1854 = vmatmul.mubr.msk.bf16.vlgmr.msra.gmra.mxu0 %vm370_vm3, %v848_v8  ;;  %v987_v8 = vmul.f32 %v2322_v51, %v986_v25 }
 0x47c   : > { %1865 = vmatprep.mubr.msk.bf16.mxu0 %vm2036_vm0, %v2035_v0 }
 0x47d   : > { %v1135_v12 = vmul.f32 1.442695, %v1134_v10 }
 0x47e   : > { %v1005_v13 = vpop.permute.xlu1 %1004 }
 0x47f   : > { %1983 = vpow2.f32 %v1135_v12  ;;  %v1010_v38 = vsel %vm405_vm4, %v1005_v13, 0  ;;  %v1138_v13 = vld [vmem:[#allocation3 + $0x28] sm:$0xff] }
 0x480   : > { %1864 = vmatpush3.bf16.msra.mxu0 %v1010_v38 }
 0x481   : > { %1875 = vmatprep.subr.bf16.mxu0 %v2035_v0 }
 0x482   : > { %v1284_v14 = vpop.permute.xlu1 %1283 }
 0x483   : > { %v1286_v15 = vsub.f32 %v2258_v47, %v1284_v14 }
 0x484   : > { %v1982_v16 = vpop.eup %1981  ;;  %v2379_v49 = vpop.permute.xlu0 %996 }
 0x485   : > { %v1287_v17 = vmul.f32 1.442695, %v1286_v15  ;;  %v988_v42 = vsel %vm370_vm3, %v1982_v16, 0.0  ;;  %v1000_v18 = vpack.c.bf16 %v1982_v16, %v1982_v16  ;;  %v537_v16 = vld [vmem:[#allocation4] sm:$0xff] }
 0x486   : > { %989 = vadd.xlane.f32.xlu1 %v988_v42  ;;  %v1157_v20 = vpop.permute.xlu1 %1156 }
 0x487   : > { %1985 = vpow2.f32 %v1287_v17  ;;  %v1162_v22 = vsel %vm405_vm4, %v1157_v20, 0  ;;  %1866 = vmatmul.mubr.msk.bf16.vlgmr.msra.gmra.mxu0 %vm370_vm3, %v1000_v18  ;;  %v543_v17 = vmul.f32 %v2339_v63, %v537_v16 }
 0x488   : > { %1876 = vmatpush3.bf16.msra.mxu0 %v1162_v22  ;;  %1877 = vmatprep.mubr.msk.bf16.mxu0 %vm2036_vm0, %v2035_v0 }
 0x489   : > { %1887 = vmatprep.subr.bf16.mxu0 %v2035_v0 }
 0x48a   : > { %v1436_v19 = vpop.permute.xlu1 %1435 }
 0x48b   : > { %v1438_v47 = vsub.f32 %v2263_v52, %v1436_v19 }
 0x48c   : > { %v1984_v26 = vpop.eup %1983 }
 0x48d   : > { %v1439_v27 = vmul.f32 1.442695, %v1438_v47  ;;  %v1140_v29 = vsel %vm370_vm3, %v1984_v26, 0.0  ;;  %v1152_v30 = vpack.c.bf16 %v1984_v26, %v1984_v26 }
 0x48e   : > { %1141 = vadd.xlane.f32.xlu0 %v1140_v29  ;;  %v1309_v31 = vpop.permute.xlu1 %1308 }
 0x48f   : > { %1987 = vpow2.f32 %v1439_v27  ;;  %1878 = vmatmul.mubr.msk.bf16.vlgmr.msra.gmra.mxu0 %vm370_vm3, %v1152_v30  ;;  %v1314_v32 = vsel %vm405_vm4, %v1309_v31, 0 }
 0x490   : > { %1888 = vmatpush3.bf16.msra.mxu0 %v1314_v32  ;;  %1889 = vmatprep.mubr.msk.bf16.mxu0 %vm2036_vm0, %v2035_v0  ;;  %1989 = vpow2.f32 %v1279_v60 }
 0x491   : > { %1899 = vmatprep.subr.bf16.mxu0 %v2035_v0  ;;  %1991 = vpow2.f32 %v1127_v11 }
 0x492   : > { %v1461_v34 = vpop.permute.xlu1 %1460 }
 0x493   : > { %v1466_v36 = vsel %vm405_vm4, %v1461_v34, 0  ;;  %vm1613_vm4 = vcmask 257248  }
 0x494   : > { %v2364_v52 = vpop.eup %1985 }
 0x495   : > { %v1304_v35 = vpack.c.bf16 %v2364_v52, %v2364_v52 }
 0x497   : > { %1890 = vmatmul.mubr.msk.bf16.vlgmr.msra.gmra.mxu0 %vm370_vm3, %v1304_v35 }
 0x498   : > { %1900 = vmatpush3.bf16.msra.mxu0 %v1466_v36  ;;  %1901 = vmatprep.mubr.msk.bf16.mxu0 %vm2036_vm0, %v2035_v0  ;;  %v683_v0 = vmul.f32 %v2288_v21, %v682_v50  ;;  %v1431_v50 = vmul.f32 1.442695, %v1430_v45  ;;  %vm1565_vm0 = vcmask 126048  }
 0x49a   : > { %1993 = vpow2.f32 %v1431_v50 }
 0x49c   : > { %v2372_v37 = vpop.eup %1987  ;;  %v590_v39 = vpop.f32.mrf.mxu0 }
 0x49d   : > { %v1456_v23 = vpack.c.bf16 %v2372_v37, %v2372_v37  ;;  %v2389_v3 = vpop.eup %1989  ;;  %v1444_v54 = vsel %vm370_vm3, %v2372_v37, 0.0 }
 0x49e   : > { %v1831_v40 = vpop.f32.mrf.mxu0  ;;  %v1992_v12 = vpop.eup %1991 }
 0x49f   : > { %1902 = vmatmul.mubr.msk.bf16.vlgmr.msra.gmra.mxu0 %vm370_vm3, %v1456_v23  ;;  %v1139_v38 = vmul.f32 %v1992_v12, %v1138_v13 }
 0x4a0   : > { %v593_v28 = vpop.f32.mrf.mxu0 }
 0x4a2   : > { %v1832_v43 = vpop.f32.mrf.mxu0 }
 0x4a3   : > { %v1292_v43 = vsel %vm370_vm3, %v2364_v52, 0.0  ;;  %vm1601_vm3 = vcmask 224448  }
 0x4a4   : > { %597 = vrot.lane.b32.xlu0 %v590_v39, %s2046_s6 }
 0x4b1   : > { %v686_v53 = vpop.xlane.xlu0 %685 }
 0x4b2   : > { %v687_v55 = vadd.f32 %v686_v53, %v683_v0 }
 0x4b4   : > { %688 = vst.msk [vmem:[#allocation3 + $0x10] sm:$0xff] %vm299_vm2, %v687_v55  ;;  %v1994_v55 = vpop.eup %1993 }
 0x4b5   : > { %v838_v57 = vpop.xlane.xlu0 %837 }
 0x4b6   : > { %v839_v58 = vadd.f32 %v838_v57, %v835_v56  ;;  %v1520_v56 = vld [vmem:[#allocation3] sm:$0xff] }
 0x4b8   : > { %840 = vst.msk [vmem:[#allocation3 + $0x18] sm:$0xff] %vm299_vm2, %v839_v58 }
 0x4bb   : > { %v1544_v57 = vld [vmem:[#allocation3 + $0x10] sm:$0xff] }
 0x4bf   : > { %v1556_v52 = vld [vmem:[#allocation3 + $0x18] sm:$0xff] }
 0x4c4   : > { %v534_v21 = vpop.xlane.xlu1 %533 }
 0x4c5   : > { %v535_v33 = vadd.f32 %v534_v21, %v531_v62 }
 0x4c7   : > { %536 = vst.msk [vmem:[#allocation3 + $0x8] sm:$0xff] %vm299_vm2, %v535_v33 }
 0x4ca   : > { %v742_v1 = vpop.f32.mrf.mxu0 }
 0x4cb   : > { %749 = vrot.lane.b32.xlu0 %v742_v1, %s2047_s7 }
 0x4cc   : > { %v1843_v24 = vpop.f32.mrf.mxu0 }
 0x4cd   : > { %v1290_v24 = vld [vmem:[#allocation3 + $0x30] sm:$0xff] }
 0x4ce   : > { %v745_v4 = vpop.f32.mrf.mxu0  ;;  %v1532_v44 = vld [vmem:[#allocation3 + $0x8] sm:$0xff] }
 0x4cf   : > { %1300 = vperm.xlu0 %1947, %v2389_v3   ;;  %v1291_v4 = vmul.f32 %v2389_v3, %v1290_v24 }
 0x4d0   : > { %v1844_v6 = vpop.f32.mrf.mxu0 }
 0x50f   : > { %v990_v9 = vpop.xlane.xlu1 %989 }
 0x510   : > { %v991_v10 = vadd.f32 %v990_v9, %v987_v8 }
 0x512   : > { %992 = vst.msk [vmem:[#allocation3 + $0x20] sm:$0xff] %vm299_vm2, %v991_v10 }
 0x517   : > { %v1142_v14 = vpop.xlane.xlu0 %1141 }
 0x518   : > { %v1143_v15 = vadd.f32 %v1142_v14, %v1139_v38 }
 0x519   : > { %v1568_v58 = vld [vmem:[#allocation3 + $0x20] sm:$0xff] }
 0x51a   : > { %1144 = vst.msk [vmem:[#allocation3 + $0x28] sm:$0xff] %vm299_vm2, %v1143_v15 }
 0x51b   : > { %v598_v2 = vpop.permute.xlu0 %597 }
 0x51c   : > { %v600_v5 = vadd.f32 %v598_v2, %v543_v17 }
 0x51e   : > { %602 = vst.msk [vmem:[#allocation4] sm:$0xff] %vm601_vm6, %v600_v5 }
 0x521   : > { %v1580_v41 = vld [vmem:[#allocation3 + $0x28] sm:$0xff] }
 0x525   : > { %v689_v42 = vld [vmem:[#allocation4] sm:$0xff] }
 0x526   : > { %v695_v18 = vmul.f32 %v693_v46, %v689_v42 }
 0x53b   : > { %v894_v51 = vpop.f32.mrf.mxu0 }
 0x53c   : > { %901 = vrot.lane.b32.xlu1 %v894_v51, %s2048_s8 }
 0x53d   : > { %v750_v20 = vpop.permute.xlu0 %749  ;;  %v1855_v22 = vpop.f32.mrf.mxu0 }
 0x53e   : > { %v752_v19 = vadd.f32 %v750_v20, %v695_v18 }
 0x53f   : > { %v897_v47 = vpop.f32.mrf.mxu0 }
 0x540   : > { %754 = vst.msk [vmem:[#allocation4] sm:$0xff] %vm753_vm7, %v752_v19 }
 0x541   : > { %v1856_v26 = vpop.f32.mrf.mxu0 }
 0x547   : > { %v1046_v27 = vpop.f32.mrf.mxu0  ;;  %v841_v45 = vld [vmem:[#allocation4] sm:$0xff] }
 0x548   : > { %1053 = vrot.lane.b32.xlu0 %v1046_v27, %s2049_s9  ;;  %v847_v37 = vmul.f32 %v2377_v48, %v841_v45 }
 0x549   : > { %v1867_v63 = vpop.f32.mrf.mxu0 }
 0x54a   : > { %v1301_v61 = vpop.permute.xlu0 %1300 }
 0x54b   : > { %v1049_v29 = vpop.f32.mrf.mxu0 }
 0x54d   : > { %v1868_v30 = vpop.f32.mrf.mxu0 }
 0x54f   : > { %v1198_v31 = vpop.f32.mrf.mxu0 }
 0x550   : > { %1205 = vrot.lane.b32.xlu0 %v1198_v31, %s2050_s10 }
 0x551   : > { %v1879_v32 = vpop.f32.mrf.mxu0 }
 0x553   : > { %v1201_v34 = vpop.f32.mrf.mxu0 }
 0x555   : > { %v1880_v35 = vpop.f32.mrf.mxu0 }
 0x557   : > { %v1350_v36 = vpop.f32.mrf.mxu0 }
 0x559   : > { %v1891_v39 = vpop.f32.mrf.mxu0 }
 0x55b   : > { %v1353_v23 = vpop.f32.mrf.mxu0 }
 0x55d   : > { %v1892_v40 = vpop.f32.mrf.mxu0 }
 0x55f   : > { %v1502_v28 = vpop.f32.mrf.mxu0 }
 0x560   : > { %1293 = vadd.xlane.f32.xlu1 %v1292_v43 }
 0x561   : > { %v1903_v46 = vpop.f32.mrf.mxu0 }
 0x563   : > { %v1505_v0 = vpop.f32.mrf.mxu0 }
 0x565   : > { %v1904_v53 = vpop.f32.mrf.mxu0 }
 0x56f   : > { %1445 = vadd.xlane.f32.xlu0 %v1444_v54 }
 0x571   : > { %1148 = vperm.xlu1 %1948, %v1992_v12  }
 0x575   : > { %1452 = vperm.xlu1 %1948, %v1994_v55  }
 0x579   : > { %1523 = vperm.xlu1 %1948, %v1520_v56  }
 0x57d   : > { %1547 = vperm.xlu1 %1948, %v1544_v57  }
 0x581   : > { %1559 = vperm.xlu1 %1948, %v1556_v52  }
 0x585   : > { %1571 = vperm.xlu1 %1948, %v1568_v58   ;;  %1357 = vrot.lane.b32.xlu0 %v1350_v36, %s2051_s11 }
 0x589   : > { %1583 = vperm.xlu1 %1948, %v1580_v41   ;;  %1535 = vperm.xlu0 %1947, %v1532_v44  }
 0x5ae   : > { %v902_v59 = vpop.permute.xlu1 %901 }
 0x5af   : > { %v904_v60 = vadd.f32 %v902_v59, %v847_v37 }
 0x5b1   : > { %906 = vst.msk [vmem:[#allocation4] sm:$0xff] %vm905_vm8, %v904_v60 }
 0x5b8   : > { %v993_v62 = vld [vmem:[#allocation4] sm:$0xff] }
 0x5b9   : > { %v999_v21 = vmul.f32 %v2379_v49, %v993_v62  ;;  %v1442_v49 = vld [vmem:[#allocation3 + $0x38] sm:$0xff] }
 0x5ba   : > { %v1054_v33 = vpop.permute.xlu0 %1053  ;;  %v1443_v12 = vmul.f32 %v1994_v55, %v1442_v49 }
 0x5bb   : > { %v1056_v1 = vadd.f32 %v1054_v33, %v999_v21 }
 0x5bd   : > { %1058 = vst.msk [vmem:[#allocation4] sm:$0xff] %vm1057_vm9, %v1056_v1 }
 0x5c2   : > { %v1206_v8 = vpop.permute.xlu0 %1205 }
 0x5c4   : > { %v1145_v11 = vld [vmem:[#allocation4] sm:$0xff] }
 0x5e9   : > { %v1294_v6 = vpop.xlane.xlu1 %1293 }
 0x5ea   : > { %v1295_v7 = vadd.f32 %v1294_v6, %v1291_v4 }
 0x5ec   : > { %1296 = vst.msk [vmem:[#allocation3 + $0x30] sm:$0xff] %vm299_vm2, %v1295_v7 }
 0x5ed   : > { %v1149_v48 = vpop.permute.xlu1 %1148 }
 0x5ee   : > { %v1151_v25 = vmul.f32 %v1149_v48, %v1145_v11 }
 0x5f0   : > { %v1208_v9 = vadd.f32 %v1206_v8, %v1151_v25 }
 0x5f1   : > { %v1453_v2 = vpop.permute.xlu1 %1452 }
 0x5f2   : > { %1210 = vst.msk [vmem:[#allocation4] sm:$0xff] %vm1209_vm10, %v1208_v9 }
 0x5f3   : > { %v1592_v10 = vld [vmem:[#allocation3 + $0x30] sm:$0xff] }
 0x5f4   : > { %1595 = vperm.xlu1 %1948, %v1592_v10  }
 0x5f5   : > { %v1524_v5 = vpop.permute.xlu1 %1523 }
 0x5f6   : > { %1995 = vrcp.f32 %v1524_v5 }
 0x5f8   : > { %v1446_v13 = vpop.xlane.xlu0 %1445  ;;  %1509 = vrot.lane.b32.xlu1 %v1502_v28, %s2052_s12 }
 0x5f9   : > { %v1447_v38 = vadd.f32 %v1446_v13, %v1443_v12  ;;  %v1297_v3 = vld [vmem:[#allocation4] sm:$0xff]  ;;  %v1548_v42 = vpop.permute.xlu1 %1547 }
 0x5fa   : > { %v1303_v14 = vmul.f32 %v1301_v61, %v1297_v3  ;;  %1997 = vrcp.f32 %v1548_v42 }
 0x5fb   : > { %1448 = vst.msk [vmem:[#allocation3 + $0x38] sm:$0xff] %vm299_vm2, %v1447_v38  ;;  %vm1589_vm2 = vcmask 191648  }
 0x5fc   : > { %v1358_v15 = vpop.permute.xlu0 %1357 }
 0x5fd   : > { %v1360_v16 = vadd.f32 %v1358_v15, %v1303_v14  ;;  %v1560_v51 = vpop.permute.xlu1 %1559 }
 0x5fe   : > { %1999 = vrcp.f32 %v1560_v51 }
 0x5ff   : > { %1362 = vst.msk [vmem:[#allocation4] sm:$0xff] %vm1361_vm11, %v1360_v16 }
 0x601   : > { %v1572_v18 = vpop.permute.xlu1 %1571 }
 0x602   : > { %v1604_v17 = vld [vmem:[#allocation3 + $0x38] sm:$0xff] }
 0x603   : > { %1607 = vperm.xlu1 %1948, %v1604_v17   ;;  %v1996_v29 = vpop.eup %1995 }
 0x604   : > { %v1536_v22 = vpop.permute.xlu0 %1535 }
 0x605   : > { %v1584_v20 = vpop.permute.xlu1 %1583  ;;  %2001 = vrcp.f32 %v1536_v22 }
 0x606   : > { %v1449_v47 = vld [vmem:[#allocation4] sm:$0xff]  ;;  %2003 = vrcp.f32 %v1572_v18 }
 0x607   : > { %v1455_v26 = vmul.f32 %v1453_v2, %v1449_v47  ;;  %v1998_v30 = vpop.eup %1997 }
 0x60b   : > { %v2000_v31 = vpop.eup %1999 }
 0x612   : > { %v2002_v32 = vpop.eup %2001 }
 0x613   : > { %v2004_v35 = vpop.eup %2003 }
 0x66f   : > { %v1596_v19 = vpop.permute.xlu1 %1595 }
 0x670   : > { %2005 = vrcp.f32 %v1596_v19 }
 0x671   : > { %2007 = vrcp.f32 %v1584_v20 }
 0x673   : > { %v1510_v27 = vpop.permute.xlu1 %1509 }
 0x674   : > { %v1512_v63 = vadd.f32 %v1510_v27, %v1455_v26 }
 0x676   : > { %1514 = vst.msk [vmem:[#allocation4] sm:$0xff] %vm1513_vm12, %v1512_v63 }
 0x67d   : > { %v1519_v34 = vld [vmem:[#allocation4] sm:$0xff]  ;;  %v2006_v28 = vpop.eup %2005 }
 0x67e   : > { %v1527_v36 = vmul.f32 %v1996_v29, %v1519_v34  ;;  %v1539_v39 = vmul.f32 %v2002_v32, %v1519_v34  ;;  %v1551_v23 = vmul.f32 %v1998_v30, %v1519_v34  ;;  %v1608_v40 = vpop.permute.xlu1 %1607  ;;  %v1563_v43 = vmul.f32 %v2000_v31, %v1519_v34  ;;  %v2008_v46 = vpop.eup %2007 }
 0x67f   : > { %2009 = vrcp.f32 %v1608_v40  ;;  %v1575_v53 = vmul.f32 %v2004_v35, %v1519_v34  ;;  %v1587_v54 = vmul.f32 %v2008_v46, %v1519_v34  ;;  %v1599_v56 = vmul.f32 %v2006_v28, %v1519_v34 }
 0x680   : > { %v1528_v50 = vpack.c.bf16 %v1527_v36, %v1527_v36  ;;  %v1540_v0 = vpack.c.bf16 %v1539_v39, %v1539_v39  ;;  %v1552_v55 = vpack.c.bf16 %v1551_v23, %v1551_v23  ;;  %v1564_v57 = vpack.c.bf16 %v1563_v43, %v1563_v43 }
 0x681   : > { %v1576_v52 = vpack.c.bf16 %v1575_v53, %v1575_v53  ;;  %v1588_v58 = vpack.c.bf16 %v1587_v54, %v1587_v54  ;;  %v1600_v41 = vpack.c.bf16 %v1599_v56, %v1599_v56 }
 0x682   : > { %1530 = vst.msk [vmem:[%s2414_s19] sm:$0xf] %vm1529_vm13, %v1528_v50 }
 0x683   : > { %1542 = vst.msk [vmem:[%s2414_s19] sm:$0xf] %vm1541_vm14, %v1540_v0 }
 0x684   : > { %1554 = vst.msk [vmem:[%s2414_s19] sm:$0xf] %vm1553_vm15, %v1552_v55 }
 0x685   : > { %1566 = vst.msk [vmem:[%s2414_s19] sm:$0xf] %vm1565_vm0, %v1564_v57 }
 0x686   : > { %1578 = vst.msk [vmem:[%s2414_s19] sm:$0xf] %vm1577_vm1, %v1576_v52 }
 0x687   : > { %1590 = vst.msk [vmem:[%s2414_s19] sm:$0xf] %vm1589_vm2, %v1588_v58 }
 0x688   : > { %1602 = vst.msk [vmem:[%s2414_s19] sm:$0xf] %vm1601_vm3, %v1600_v41 }
 0x68c   : > { %v2010_v44 = vpop.eup %2009 }
 0x68d   : > { %v1611_v45 = vmul.f32 %v2010_v44, %v1519_v34 }
 0x68f   : > { %v1612_v37 = vpack.c.bf16 %v1611_v45, %v1611_v45 }
 0x691   : > { %1614 = vst.msk [vmem:[%s2414_s19] sm:$0xf] %vm1613_vm4, %v1612_v37 }
 0x692 PF: > { %s13_s14 = sadd.s32 1, %s2033_s14   ;;  %s2437_s12 = smov %s2029_s13 }
 0x693   : > { %p10_p5 = scmp.ge.s32.totalorder %s13_s14, 4   ;;  %s2438_s13 = smov %s2440_s15 }
 0x695   :  { %12 = sbr.rel (!%p10_p5) target bundleno = 2 (0x2), region = 90 }

// kernel: ssast_attention.3
= control target key start
LH: loop header
LB: loop body
LE: loop exit
PB: predicated region body
PF: predicated region fallthrough
CT: control target
= control target key end

     0   :  { %vm25_vm0 = vcmask 261120   ;;  %v2145_v1 = vmov 0.0   ;;  %vm1265_vm1 = vcmask 257024   ;;  %s2978_s1 = inlined_call_operand.vmem [shape: bf16[32,32], index: 1, kind: input, shape index: {}]   ;;  %s2979_s0 = inlined_call_operand.vmem [shape: bf16[256,32], index: 0, kind: input, shape index: {}]   ;;  %s2980_s2 = inlined_call_operand.vmem [shape: bf16[32,32], index: 2, kind: input, shape index: {}]   ;;  %s2981_s3 = inlined_call_operand.vmem [shape: bf16[32,32], index: 3, kind: input, shape index: {}]   ;;  %s2982_s4 = inlined_call_operand.vmem [shape: bf16[256,32], index: 4, kind: output, shape index: {0}]   ;;  %s2983_s5 = inlined_call_operand.vmem [shape: bf16[256,32], index: 5, kind: output, shape index: {1}]   ;;  %s2984_s6 = inlined_call_operand.vmem [shape: bf16[256,32], index: 6, kind: output, shape index: {2}]  }
   0x1   :  { %v2184_v0 = vld [vmem:[%s2978_s1 + $0x8] sm:$0xff]   ;;  %28 = vst.msk [vmem:[#allocation2 + $0x10] sm:$0xff] %vm25_vm0, %v2145_v1  ;;  %26 = vst.msk [vmem:[#allocation2] sm:$0xff] %vm25_vm0, %v2145_v1  ;;  %v2124_v2 = vld [vmem:[%s2978_s1] sm:$0xff]  }
   0x2   :  { %27 = vst.msk [vmem:[#allocation2 + $0x8] sm:$0xff] %vm25_vm0, %v2145_v1  ;;  %29 = vst.msk [vmem:[#allocation2 + $0x18] sm:$0xff] %vm25_vm0, %v2145_v1  ;;  %2010 = vmatprep.subr.bf16.mxu0 %v2184_v0  ;;  %2118 = vmatprep.subr.bf16.mxu1 %v2184_v0  ;;  %v2125_v3 = vld [vmem:[%s2979_s0] sm:$0xff]   ;;  %v2127_v5 = vld [vmem:[%s2979_s0 + $0x8] sm:$0xff]  }
   0x3   :  { %30 = vst.msk [vmem:[#allocation2 + $0x20] sm:$0xff] %vm25_vm0, %v2145_v1  ;;  %31 = vst.msk [vmem:[#allocation2 + $0x28] sm:$0xff] %vm25_vm0, %v2145_v1  ;;  %2011 = vmatpush3.bf16.msra.mxu0 %v2184_v0  ;;  %2120 = vmatpush3.bf16.msra.mxu1 %v2184_v0  ;;  %v2391_v4 = vld [vmem:[%s2979_s0 + $0x40] sm:$0xff]   ;;  %v2128_v6 = vld [vmem:[%s2979_s0 + $0x48] sm:$0xff]  }
   0x4   :  { %32 = vst.msk [vmem:[#allocation2 + $0x30] sm:$0xff] %vm25_vm0, %v2145_v1  ;;  %33 = vst.msk [vmem:[#allocation2 + $0x38] sm:$0xff] %vm25_vm0, %v2145_v1  ;;  %2012 = vmatprep.subr.bf16.mxu0 %v2124_v2  ;;  %2119 = vmatprep.subr.bf16.mxu1 %v2124_v2  ;;  %v2129_v7 = vld [vmem:[%s2980_s2 + $0x8] sm:$0xff]   ;;  %v2131_v9 = vld [vmem:[%s2979_s0 + $0x10] sm:$0xff]  }
   0x5   :  { %34 = vst.msk [vmem:[#allocation2 + $0x40] sm:$0xff] %vm25_vm0, %v2145_v1  ;;  %35 = vst.msk [vmem:[#allocation2 + $0x48] sm:$0xff] %vm25_vm0, %v2145_v1  ;;  %2014 = vmatprep.mubr.msk.bf16.mxu0 %vm25_vm0, %v2125_v3  ;;  %2030 = vmatprep.mubr.msk.bf16.mxu1 %vm25_vm0, %v2391_v4  ;;  %v2130_v8 = vld [vmem:[%s2981_s3 + $0x8] sm:$0xff]   ;;  %v2132_v10 = vld [vmem:[%s2979_s0 + $0x50] sm:$0xff]  }
   0x6   :  { %36 = vst.msk [vmem:[#allocation2 + $0x50] sm:$0xff] %vm25_vm0, %v2145_v1  ;;  %37 = vst.msk [vmem:[#allocation2 + $0x58] sm:$0xff] %vm25_vm0, %v2145_v1  ;;  %v2133_v11 = vld [vmem:[%s2979_s0 + $0x18] sm:$0xff]   ;;  %v2135_v13 = vld [vmem:[%s2979_s0 + $0x20] sm:$0xff]  }
   0x7   :  { %38 = vst.msk [vmem:[#allocation2 + $0x60] sm:$0xff] %vm25_vm0, %v2145_v1  ;;  %39 = vst.msk [vmem:[#allocation2 + $0x68] sm:$0xff] %vm25_vm0, %v2145_v1  ;;  %2013 = vmatpush3.bf16.msra.mxu0 %v2124_v2  ;;  %2121 = vmatpush3.bf16.msra.mxu1 %v2124_v2  ;;  %v2134_v12 = vld [vmem:[%s2979_s0 + $0x58] sm:$0xff]   ;;  %v2136_v14 = vld [vmem:[%s2979_s0 + $0x60] sm:$0xff]  }
   0x8   :  { %40 = vst.msk [vmem:[#allocation2 + $0x70] sm:$0xff] %vm25_vm0, %v2145_v1  ;;  %41 = vst.msk [vmem:[#allocation2 + $0x78] sm:$0xff] %vm25_vm0, %v2145_v1  ;;  %2046 = vmatprep.subr.bf16.mxu1 %v2129_v7  ;;  %2082 = vmatprep.subr.bf16.mxu0 %v2130_v8  ;;  %v2139_v15 = vld [vmem:[%s2980_s2] sm:$0xff]   ;;  %v2137_v17 = vld [vmem:[%s2979_s0 + $0x28] sm:$0xff]  }
   0x9   :  { %42 = vst.msk [vmem:[#allocation2 + $0x80] sm:$0xff] %vm25_vm0, %v2145_v1  ;;  %43 = vst.msk [vmem:[#allocation2 + $0x88] sm:$0xff] %vm25_vm0, %v2145_v1  ;;  %v2140_v16 = vld [vmem:[%s2981_s3] sm:$0xff]   ;;  %v2138_v18 = vld [vmem:[%s2979_s0 + $0x68] sm:$0xff]  }
   0xa   :  { %44 = vst.msk [vmem:[#allocation2 + $0x90] sm:$0xff] %vm25_vm0, %v2145_v1  ;;  %45 = vst.msk [vmem:[#allocation2 + $0x98] sm:$0xff] %vm25_vm0, %v2145_v1  ;;  %2015 = vmatmul.mubr.msk.bf16.vlgmr.msra.gmra.mxu0 %vm25_vm0, %v2127_v5  ;;  %2031 = vmatmul.mubr.msk.bf16.vlgmr.msra.gmra.mxu1 %vm25_vm0, %v2128_v6  ;;  %v2141_v19 = vld [vmem:[%s2979_s0 + $0x30] sm:$0xff]   ;;  %v2143_v21 = vld [vmem:[%s2979_s0 + $0x38] sm:$0xff]  }
   0xb   :  { %46 = vst.msk [vmem:[#allocation2 + $0xa0] sm:$0xff] %vm25_vm0, %v2145_v1  ;;  %47 = vst.msk [vmem:[#allocation2 + $0xa8] sm:$0xff] %vm25_vm0, %v2145_v1  ;;  %2047 = vmatpush3.bf16.msra.mxu1 %v2129_v7  ;;  %2083 = vmatpush3.bf16.msra.mxu0 %v2130_v8  ;;  %v2142_v20 = vld [vmem:[%s2979_s0 + $0x70] sm:$0xff]   ;;  %v2144_v22 = vld [vmem:[%s2979_s0 + $0x78] sm:$0xff]  }
   0xc   :  { %48 = vst.msk [vmem:[#allocation2 + $0xb0] sm:$0xff] %vm25_vm0, %v2145_v1  ;;  %49 = vst.msk [vmem:[#allocation2 + $0xb8] sm:$0xff] %vm25_vm0, %v2145_v1  ;;  %2018 = vmatprep.mubr.msk.bf16.mxu0 %vm25_vm0, %v2131_v9  ;;  %2034 = vmatprep.mubr.msk.bf16.mxu1 %vm25_vm0, %v2132_v10  ;;  %v156_v23 = vld [vmem:[#allocation2 + $0x10] sm:$0xff]  ;;  %v154_v27 = vld [vmem:[#allocation2] sm:$0xff] }
   0xd   :  { %50 = vst.msk [vmem:[#allocation2 + $0xc0] sm:$0xff] %vm25_vm0, %v2145_v1  ;;  %51 = vst.msk [vmem:[#allocation2 + $0xc8] sm:$0xff] %vm25_vm0, %v2145_v1  ;;  %2048 = vmatprep.subr.bf16.mxu1 %v2139_v15  ;;  %2084 = vmatprep.subr.bf16.mxu0 %v2140_v16  ;;  %v157_v33 = vld [vmem:[#allocation2 + $0x18] sm:$0xff]  ;;  %v155_v39 = vld [vmem:[#allocation2 + $0x8] sm:$0xff] }
   0xe   :  { %52 = vst.msk [vmem:[#allocation2 + $0xd0] sm:$0xff] %vm25_vm0, %v2145_v1  ;;  %53 = vst.msk [vmem:[#allocation2 + $0xd8] sm:$0xff] %vm25_vm0, %v2145_v1  ;;  %v160_v45 = vld [vmem:[#allocation2 + $0x30] sm:$0xff]  ;;  %v158_v51 = vld [vmem:[#allocation2 + $0x20] sm:$0xff] }
   0xf   :  { %54 = vst.msk [vmem:[#allocation2 + $0xe0] sm:$0xff] %vm25_vm0, %v2145_v1  ;;  %55 = vst.msk [vmem:[#allocation2 + $0xe8] sm:$0xff] %vm25_vm0, %v2145_v1  ;;  %2049 = vmatpush3.bf16.msra.mxu1 %v2139_v15  ;;  %2085 = vmatpush3.bf16.msra.mxu0 %v2140_v16  ;;  %v161_v55 = vld [vmem:[#allocation2 + $0x38] sm:$0xff] }
  0x10   :  { %56 = vst.msk [vmem:[#allocation2 + $0xf0] sm:$0xff] %vm25_vm0, %v2145_v1  ;;  %57 = vst.msk [vmem:[#allocation2 + $0xf8] sm:$0xff] %vm25_vm0, %v2145_v1  ;;  %v170_v28 = vld [vmem:[#allocation2 + $0x80] sm:$0xff]  ;;  %v171_v40 = vld [vmem:[#allocation2 + $0x88] sm:$0xff] }
  0x11   :  { %58 = vst.msk [vmem:[#allocation3] sm:$0xff] %vm25_vm0, %v2145_v1  ;;  %59 = vst.msk [vmem:[#allocation3 + $0x8] sm:$0xff] %vm25_vm0, %v2145_v1  ;;  %v172_v24 = vld [vmem:[#allocation2 + $0x90] sm:$0xff]  ;;  %v173_v34 = vld [vmem:[#allocation2 + $0x98] sm:$0xff] }
  0x12   :  { %60 = vst.msk [vmem:[#allocation3 + $0x10] sm:$0xff] %vm25_vm0, %v2145_v1  ;;  %61 = vst.msk [vmem:[#allocation3 + $0x18] sm:$0xff] %vm25_vm0, %v2145_v1  ;;  %2019 = vmatmul.mubr.msk.bf16.gmra.mxu0 %vm25_vm0, %v2133_v11  ;;  %2035 = vmatmul.mubr.msk.bf16.gmra.mxu1 %vm25_vm0, %v2134_v12  ;;  %v174_v52 = vld [vmem:[#allocation2 + $0xa0] sm:$0xff] }
  0x13   :  { %62 = vst.msk [vmem:[#allocation3 + $0x20] sm:$0xff] %vm25_vm0, %v2145_v1  ;;  %63 = vst.msk [vmem:[#allocation3 + $0x28] sm:$0xff] %vm25_vm0, %v2145_v1  ;;  %2022 = vmatprep.mubr.msk.bf16.mxu0 %vm25_vm0, %v2135_v13  ;;  %2038 = vmatprep.mubr.msk.bf16.mxu1 %vm25_vm0, %v2136_v14  ;;  %v176_v46 = vld [vmem:[#allocation2 + $0xb0] sm:$0xff]  ;;  %v177_v60 = vld [vmem:[#allocation2 + $0xb8] sm:$0xff] }
  0x14   :  { %64 = vst.msk [vmem:[#allocation3 + $0x30] sm:$0xff] %vm25_vm0, %v2145_v1  ;;  %65 = vst.msk [vmem:[#allocation3 + $0x38] sm:$0xff] %vm25_vm0, %v2145_v1 }
  0x15   :  { %66 = vst.msk [vmem:[#allocation3 + $0x40] sm:$0xff] %vm25_vm0, %v2145_v1  ;;  %67 = vst.msk [vmem:[#allocation3 + $0x48] sm:$0xff] %vm25_vm0, %v2145_v1  ;;  %v180_v16 = vld [vmem:[#allocation2 + $0xd0] sm:$0xff] }
  0x16   :  { %68 = vst.msk [vmem:[#allocation3 + $0x50] sm:$0xff] %vm25_vm0, %v2145_v1  ;;  %69 = vst.msk [vmem:[#allocation3 + $0x58] sm:$0xff] %vm25_vm0, %v2145_v1 }
  0x17   :  { %70 = vst.msk [vmem:[#allocation3 + $0x60] sm:$0xff] %vm25_vm0, %v2145_v1  ;;  %71 = vst.msk [vmem:[#allocation3 + $0x68] sm:$0xff] %vm25_vm0, %v2145_v1 }
  0x18   :  { %72 = vst.msk [vmem:[#allocation3 + $0x70] sm:$0xff] %vm25_vm0, %v2145_v1  ;;  %73 = vst.msk [vmem:[#allocation3 + $0x78] sm:$0xff] %vm25_vm0, %v2145_v1 }
  0x19   :  { %74 = vst.msk [vmem:[#allocation3 + $0x80] sm:$0xff] %vm25_vm0, %v2145_v1  ;;  %75 = vst.msk [vmem:[#allocation3 + $0x88] sm:$0xff] %vm25_vm0, %v2145_v1 }
  0x1a   :  { %76 = vst.msk [vmem:[#allocation3 + $0x90] sm:$0xff] %vm25_vm0, %v2145_v1  ;;  %77 = vst.msk [vmem:[#allocation3 + $0x98] sm:$0xff] %vm25_vm0, %v2145_v1  ;;  %2023 = vmatmul.mubr.msk.bf16.gmra.mxu0 %vm25_vm0, %v2137_v17  ;;  %2039 = vmatmul.mubr.msk.bf16.gmra.mxu1 %vm25_vm0, %v2138_v18 }
  0x1b   :  { %78 = vst.msk [vmem:[#allocation3 + $0xa0] sm:$0xff] %vm25_vm0, %v2145_v1  ;;  %79 = vst.msk [vmem:[#allocation3 + $0xa8] sm:$0xff] %vm25_vm0, %v2145_v1  ;;  %2026 = vmatprep.mubr.msk.bf16.mxu0 %vm25_vm0, %v2141_v19  ;;  %2042 = vmatprep.mubr.msk.bf16.mxu1 %vm25_vm0, %v2142_v20 }
  0x1c   :  { %80 = vst.msk [vmem:[#allocation3 + $0xb0] sm:$0xff] %vm25_vm0, %v2145_v1  ;;  %81 = vst.msk [vmem:[#allocation3 + $0xb8] sm:$0xff] %vm25_vm0, %v2145_v1 }
  0x1d   :  { %82 = vst.msk [vmem:[#allocation3 + $0xc0] sm:$0xff] %vm25_vm0, %v2145_v1  ;;  %83 = vst.msk [vmem:[#allocation3 + $0xc8] sm:$0xff] %vm25_vm0, %v2145_v1 }
  0x1e   :  { %84 = vst.msk [vmem:[#allocation3 + $0xd0] sm:$0xff] %vm25_vm0, %v2145_v1  ;;  %85 = vst.msk [vmem:[#allocation3 + $0xd8] sm:$0xff] %vm25_vm0, %v2145_v1 }
  0x1f   :  { %86 = vst.msk [vmem:[#allocation3 + $0xe0] sm:$0xff] %vm25_vm0, %v2145_v1  ;;  %87 = vst.msk [vmem:[#allocation3 + $0xe8] sm:$0xff] %vm25_vm0, %v2145_v1 }
  0x20   :  { %88 = vst.msk [vmem:[#allocation3 + $0xf0] sm:$0xff] %vm25_vm0, %v2145_v1  ;;  %89 = vst.msk [vmem:[#allocation3 + $0xf8] sm:$0xff] %vm25_vm0, %v2145_v1 }
  0x21   :  { %90 = vst.msk [vmem:[#allocation4] sm:$0xff] %vm25_vm0, %v2145_v1  ;;  %91 = vst.msk [vmem:[#allocation4 + $0x8] sm:$0xff] %vm25_vm0, %v2145_v1 }
  0x22   :  { %92 = vst.msk [vmem:[#allocation4 + $0x10] sm:$0xff] %vm25_vm0, %v2145_v1  ;;  %93 = vst.msk [vmem:[#allocation4 + $0x18] sm:$0xff] %vm25_vm0, %v2145_v1  ;;  %2027 = vmatmul.mubr.msk.bf16.gmra.mxu0 %vm25_vm0, %v2143_v21  ;;  %2043 = vmatmul.mubr.msk.bf16.gmra.mxu1 %vm25_vm0, %v2144_v22 }
  0x23   :  { %94 = vst.msk [vmem:[#allocation4 + $0x20] sm:$0xff] %vm25_vm0, %v2145_v1  ;;  %95 = vst.msk [vmem:[#allocation4 + $0x28] sm:$0xff] %vm25_vm0, %v2145_v1  ;;  %2050 = vmatprep.mubr.msk.bf16.mxu1 %vm25_vm0, %v2125_v3  ;;  %2086 = vmatprep.mubr.msk.bf16.mxu0 %vm25_vm0, %v2125_v3 }
  0x24   :  { %96 = vst.msk [vmem:[#allocation4 + $0x30] sm:$0xff] %vm25_vm0, %v2145_v1  ;;  %97 = vst.msk [vmem:[#allocation4 + $0x38] sm:$0xff] %vm25_vm0, %v2145_v1 }
  0x25   :  { %98 = vst.msk [vmem:[#allocation4 + $0x40] sm:$0xff] %vm25_vm0, %v2145_v1  ;;  %99 = vst.msk [vmem:[#allocation4 + $0x48] sm:$0xff] %vm25_vm0, %v2145_v1 }
  0x26   :  { %100 = vst.msk [vmem:[#allocation4 + $0x50] sm:$0xff] %vm25_vm0, %v2145_v1  ;;  %101 = vst.msk [vmem:[#allocation4 + $0x58] sm:$0xff] %vm25_vm0, %v2145_v1 }
  0x27   :  { %102 = vst.msk [vmem:[#allocation4 + $0x60] sm:$0xff] %vm25_vm0, %v2145_v1  ;;  %103 = vst.msk [vmem:[#allocation4 + $0x68] sm:$0xff] %vm25_vm0, %v2145_v1 }
  0x28   :  { %104 = vst.msk [vmem:[#allocation4 + $0x70] sm:$0xff] %vm25_vm0, %v2145_v1  ;;  %105 = vst.msk [vmem:[#allocation4 + $0x78] sm:$0xff] %vm25_vm0, %v2145_v1 }
  0x29   :  { %106 = vst.msk [vmem:[#allocation4 + $0x80] sm:$0xff] %vm25_vm0, %v2145_v1  ;;  %107 = vst.msk [vmem:[#allocation4 + $0x88] sm:$0xff] %vm25_vm0, %v2145_v1 }
  0x2a   :  { %108 = vst.msk [vmem:[#allocation4 + $0x90] sm:$0xff] %vm25_vm0, %v2145_v1  ;;  %109 = vst.msk [vmem:[#allocation4 + $0x98] sm:$0xff] %vm25_vm0, %v2145_v1  ;;  %2051 = vmatmul.mubr.msk.bf16.vlgmr.msra.gmra.mxu1 %vm25_vm0, %v2127_v5  ;;  %2087 = vmatmul.mubr.msk.bf16.vlgmr.msra.gmra.mxu0 %vm25_vm0, %v2127_v5 }
  0x2b   :  { %110 = vst.msk [vmem:[#allocation4 + $0xa0] sm:$0xff] %vm25_vm0, %v2145_v1  ;;  %111 = vst.msk [vmem:[#allocation4 + $0xa8] sm:$0xff] %vm25_vm0, %v2145_v1  ;;  %2054 = vmatprep.mubr.msk.bf16.mxu1 %vm25_vm0, %v2131_v9  ;;  %2090 = vmatprep.mubr.msk.bf16.mxu0 %vm25_vm0, %v2131_v9 }
  0x2c   :  { %112 = vst.msk [vmem:[#allocation4 + $0xb0] sm:$0xff] %vm25_vm0, %v2145_v1  ;;  %113 = vst.msk [vmem:[#allocation4 + $0xb8] sm:$0xff] %vm25_vm0, %v2145_v1 }
  0x2d   :  { %114 = vst.msk [vmem:[#allocation4 + $0xc0] sm:$0xff] %vm25_vm0, %v2145_v1  ;;  %115 = vst.msk [vmem:[#allocation4 + $0xc8] sm:$0xff] %vm25_vm0, %v2145_v1 }
  0x2e   :  { %116 = vst.msk [vmem:[#allocation4 + $0xd0] sm:$0xff] %vm25_vm0, %v2145_v1  ;;  %117 = vst.msk [vmem:[#allocation4 + $0xd8] sm:$0xff] %vm25_vm0, %v2145_v1 }
  0x2f   :  { %118 = vst.msk [vmem:[#allocation4 + $0xe0] sm:$0xff] %vm25_vm0, %v2145_v1  ;;  %119 = vst.msk [vmem:[#allocation4 + $0xe8] sm:$0xff] %vm25_vm0, %v2145_v1 }
  0x30   :  { %120 = vst.msk [vmem:[#allocation4 + $0xf0] sm:$0xff] %vm25_vm0, %v2145_v1  ;;  %121 = vst.msk [vmem:[#allocation4 + $0xf8] sm:$0xff] %vm25_vm0, %v2145_v1  ;;  %v159_v1 = vld [vmem:[#allocation2 + $0x28] sm:$0xff] }
  0x32   :  { %2055 = vmatmul.mubr.msk.bf16.gmra.mxu1 %vm25_vm0, %v2133_v11  ;;  %2091 = vmatmul.mubr.msk.bf16.gmra.mxu0 %vm25_vm0, %v2133_v11  ;;  %v164_v11 = vld [vmem:[#allocation2 + $0x50] sm:$0xff] }
  0x33   :  { %2058 = vmatprep.mubr.msk.bf16.mxu1 %vm25_vm0, %v2135_v13  ;;  %2094 = vmatprep.mubr.msk.bf16.mxu0 %vm25_vm0, %v2135_v13 }
  0x3a   :  { %2059 = vmatmul.mubr.msk.bf16.gmra.mxu1 %vm25_vm0, %v2137_v17  ;;  %2095 = vmatmul.mubr.msk.bf16.gmra.mxu0 %vm25_vm0, %v2137_v17 }
  0x3b   :  { %2062 = vmatprep.mubr.msk.bf16.mxu1 %vm25_vm0, %v2141_v19  ;;  %2098 = vmatprep.mubr.msk.bf16.mxu0 %vm25_vm0, %v2141_v19 }
  0x42   :  { %2063 = vmatmul.mubr.msk.bf16.gmra.mxu1 %vm25_vm0, %v2143_v21  ;;  %2099 = vmatmul.mubr.msk.bf16.gmra.mxu0 %vm25_vm0, %v2143_v21  ;;  %v162_v21 = vld [vmem:[#allocation2 + $0x40] sm:$0xff] }
  0x43   :  { %2066 = vmatprep.mubr.msk.bf16.mxu1 %vm25_vm0, %v2391_v4  ;;  %2102 = vmatprep.mubr.msk.bf16.mxu0 %vm25_vm0, %v2391_v4 }
  0x4a   :  { %2067 = vmatmul.mubr.msk.bf16.gmra.mxu1 %vm25_vm0, %v2128_v6  ;;  %2103 = vmatmul.mubr.msk.bf16.gmra.mxu0 %vm25_vm0, %v2128_v6  ;;  %v175_v6 = vld [vmem:[#allocation2 + $0xa8] sm:$0xff] }
  0x4b   :  { %2070 = vmatprep.mubr.msk.bf16.mxu1 %vm25_vm0, %v2132_v10  ;;  %2106 = vmatprep.mubr.msk.bf16.mxu0 %vm25_vm0, %v2132_v10 }
  0x52   :  { %2071 = vmatmul.mubr.msk.bf16.gmra.mxu1 %vm25_vm0, %v2134_v12  ;;  %2107 = vmatmul.mubr.msk.bf16.gmra.mxu0 %vm25_vm0, %v2134_v12 }
  0x53   :  { %2074 = vmatprep.mubr.msk.bf16.mxu1 %vm25_vm0, %v2136_v14  ;;  %2110 = vmatprep.mubr.msk.bf16.mxu0 %vm25_vm0, %v2136_v14 }
  0x5a   :  { %2075 = vmatmul.mubr.msk.bf16.gmra.mxu1 %vm25_vm0, %v2138_v18  ;;  %2111 = vmatmul.mubr.msk.bf16.gmra.mxu0 %vm25_vm0, %v2138_v18 }
  0x5b   :  { %2078 = vmatprep.mubr.msk.bf16.mxu1 %vm25_vm0, %v2142_v20  ;;  %2114 = vmatprep.mubr.msk.bf16.mxu0 %vm25_vm0, %v2142_v20 }
  0x62   :  { %2079 = vmatmul.mubr.msk.bf16.gmra.mxu1 %vm25_vm0, %v2144_v22  ;;  %2115 = vmatmul.mubr.msk.bf16.gmra.mxu0 %vm25_vm0, %v2144_v22 }
  0xca   :  { %v2016_v25 = vpop.f32.mrf.mxu0  ;;  %v2032_v26 = vpop.f32.mrf.mxu1 }
  0xcb   :  { %v494_v29 = vadd.f32 %v2016_v25, %v156_v23  ;;  %v510_v30 = vadd.f32 %v2032_v26, %v172_v24  ;;  %v178_v26 = vld [vmem:[#allocation2 + $0xc0] sm:$0xff] }
  0xcc   :  { %v365_v31 = vpop.f32.mrf.mxu0  ;;  %v429_v32 = vpop.f32.mrf.mxu1 }
  0xcd   :  { %526 = vst.msk [vmem:[#allocation2 + $0x10] sm:$0xff] %vm25_vm0, %v494_v29  ;;  %542 = vst.msk [vmem:[#allocation2 + $0x90] sm:$0xff] %vm25_vm0, %v510_v30  ;;  %v492_v35 = vadd.f32 %v365_v31, %v154_v27  ;;  %v508_v36 = vadd.f32 %v429_v32, %v170_v28  ;;  %v165_v31 = vld [vmem:[#allocation2 + $0x58] sm:$0xff] }
  0xce   :  { %v2017_v37 = vpop.f32.mrf.mxu0  ;;  %v2033_v38 = vpop.f32.mrf.mxu1 }
  0xcf   :  { %524 = vst.msk [vmem:[#allocation2] sm:$0xff] %vm25_vm0, %v492_v35  ;;  %540 = vst.msk [vmem:[#allocation2 + $0x80] sm:$0xff] %vm25_vm0, %v508_v36  ;;  %v495_v41 = vadd.f32 %v2017_v37, %v157_v33  ;;  %v511_v42 = vadd.f32 %v2033_v38, %v173_v34  ;;  %v181_v36 = vld [vmem:[#allocation2 + $0xd8] sm:$0xff] }
  0xd0   :  { %v368_v43 = vpop.f32.mrf.mxu0  ;;  %v432_v44 = vpop.f32.mrf.mxu1 }
  0xd1   :  { %527 = vst.msk [vmem:[#allocation2 + $0x18] sm:$0xff] %vm25_vm0, %v495_v41  ;;  %543 = vst.msk [vmem:[#allocation2 + $0x98] sm:$0xff] %vm25_vm0, %v511_v42  ;;  %v493_v47 = vadd.f32 %v368_v43, %v155_v39  ;;  %v509_v48 = vadd.f32 %v432_v44, %v171_v40  ;;  %v163_v41 = vld [vmem:[#allocation2 + $0x48] sm:$0xff] }
  0xd2   :  { %v2020_v49 = vpop.f32.mrf.mxu0  ;;  %v2036_v50 = vpop.f32.mrf.mxu1 }
  0xd3   :  { %525 = vst.msk [vmem:[#allocation2 + $0x8] sm:$0xff] %vm25_vm0, %v493_v47  ;;  %541 = vst.msk [vmem:[#allocation2 + $0x88] sm:$0xff] %vm25_vm0, %v509_v48  ;;  %v498_v53 = vadd.f32 %v2020_v49, %v160_v45  ;;  %v514_v54 = vadd.f32 %v2036_v50, %v176_v46  ;;  %v179_v46 = vld [vmem:[#allocation2 + $0xc8] sm:$0xff] }
  0xd4   :  { %v1107_v56 = vld [vmem:[#allocation2 + $0x10] sm:$0xff]  ;;  %v381_v58 = vpop.f32.mrf.mxu0  ;;  %v445_v59 = vpop.f32.mrf.mxu1 }
  0xd5   :  { %v1123_v57 = vld [vmem:[#allocation2 + $0x90] sm:$0xff]  ;;  %v1862_v61 = vpack.c.bf16 %v1107_v56, %v1107_v56  ;;  %530 = vst.msk [vmem:[#allocation2 + $0x30] sm:$0xff] %vm25_vm0, %v498_v53  ;;  %546 = vst.msk [vmem:[#allocation2 + $0xb0] sm:$0xff] %vm25_vm0, %v514_v54  ;;  %v496_v63 = vadd.f32 %v381_v58, %v158_v51  ;;  %v512_v0 = vadd.f32 %v445_v59, %v174_v52 }
  0xd6   :  { %v1878_v62 = vpack.c.bf16 %v1123_v57, %v1123_v57  ;;  %v1105_v2 = vld [vmem:[#allocation2] sm:$0xff]  ;;  %v2021_v4 = vpop.f32.mrf.mxu0  ;;  %v2037_v5 = vpop.f32.mrf.mxu1  ;;  %v168_v51 = vld [vmem:[#allocation2 + $0x70] sm:$0xff] }
  0xd7   :  { %v1121_v3 = vld [vmem:[#allocation2 + $0x80] sm:$0xff]  ;;  %1268 = vst.msk [vmem:[%s2982_s4 + $0x8] sm:$0xf] %vm1265_vm1, %v1862_v61  ;;  %v1860_v7 = vpack.c.bf16 %v1105_v2, %v1105_v2  ;;  %v499_v9 = vadd.f32 %v2021_v4, %v161_v55  ;;  %v515_v10 = vadd.f32 %v2037_v5, %v177_v60  ;;  %v184_v56 = vld [vmem:[#allocation2 + $0xf0] sm:$0xff] }
  0xd8   :  { %1284 = vst.msk [vmem:[%s2982_s4 + $0x48] sm:$0xf] %vm1265_vm1, %v1878_v62  ;;  %v1876_v8 = vpack.c.bf16 %v1121_v3, %v1121_v3  ;;  %v1108_v12 = vld [vmem:[#allocation2 + $0x18] sm:$0xff]  ;;  %v384_v14 = vpop.f32.mrf.mxu0  ;;  %v448_v15 = vpop.f32.mrf.mxu1  ;;  %v166_v61 = vld [vmem:[#allocation2 + $0x60] sm:$0xff] }
  0xd9   :  { %528 = vst.msk [vmem:[#allocation2 + $0x20] sm:$0xff] %vm25_vm0, %v496_v63  ;;  %544 = vst.msk [vmem:[#allocation2 + $0xa0] sm:$0xff] %vm25_vm0, %v512_v0  ;;  %v1124_v13 = vld [vmem:[#allocation2 + $0x98] sm:$0xff]  ;;  %v1863_v17 = vpack.c.bf16 %v1108_v12, %v1108_v12  ;;  %v497_v19 = vadd.f32 %v384_v14, %v159_v1  ;;  %v513_v20 = vadd.f32 %v448_v15, %v175_v6  ;;  %v182_v2 = vld [vmem:[#allocation2 + $0xe0] sm:$0xff] }
  0xda   :  { %1266 = vst.msk [vmem:[%s2982_s4] sm:$0xf] %vm1265_vm1, %v1860_v7  ;;  %1282 = vst.msk [vmem:[%s2982_s4 + $0x40] sm:$0xf] %vm1265_vm1, %v1876_v8  ;;  %v1879_v18 = vpack.c.bf16 %v1124_v13, %v1124_v13  ;;  %v1106_v22 = vld [vmem:[#allocation2 + $0x8] sm:$0xff]  ;;  %v2024_v24 = vpop.f32.mrf.mxu0  ;;  %v2040_v25 = vpop.f32.mrf.mxu1  ;;  %v169_v7 = vld [vmem:[#allocation2 + $0x78] sm:$0xff] }
  0xdb   :  { %531 = vst.msk [vmem:[#allocation2 + $0x38] sm:$0xff] %vm25_vm0, %v499_v9  ;;  %547 = vst.msk [vmem:[#allocation2 + $0xb8] sm:$0xff] %vm25_vm0, %v515_v10  ;;  %v1122_v23 = vld [vmem:[#allocation2 + $0x88] sm:$0xff]  ;;  %v1861_v27 = vpack.c.bf16 %v1106_v22, %v1106_v22  ;;  %v502_v29 = vadd.f32 %v2024_v24, %v164_v11  ;;  %v518_v30 = vadd.f32 %v2040_v25, %v180_v16  ;;  %v185_v12 = vld [vmem:[#allocation2 + $0xf8] sm:$0xff] }
  0xdc   :  { %1269 = vst.msk [vmem:[%s2982_s4 + $0xc] sm:$0xf] %vm1265_vm1, %v1863_v17  ;;  %1285 = vst.msk [vmem:[%s2982_s4 + $0x4c] sm:$0xf] %vm1265_vm1, %v1879_v18  ;;  %v1877_v28 = vpack.c.bf16 %v1122_v23, %v1122_v23  ;;  %v1111_v32 = vld [vmem:[#allocation2 + $0x30] sm:$0xff]  ;;  %v397_v34 = vpop.f32.mrf.mxu0  ;;  %v461_v35 = vpop.f32.mrf.mxu1  ;;  %v167_v17 = vld [vmem:[#allocation2 + $0x68] sm:$0xff] }
  0xdd   :  { %529 = vst.msk [vmem:[#allocation2 + $0x28] sm:$0xff] %vm25_vm0, %v497_v19  ;;  %545 = vst.msk [vmem:[#allocation2 + $0xa8] sm:$0xff] %vm25_vm0, %v513_v20  ;;  %v1127_v33 = vld [vmem:[#allocation2 + $0xb0] sm:$0xff]  ;;  %v1866_v37 = vpack.c.bf16 %v1111_v32, %v1111_v32  ;;  %v500_v39 = vadd.f32 %v397_v34, %v162_v21  ;;  %v516_v40 = vadd.f32 %v461_v35, %v178_v26  ;;  %v183_v22 = vld [vmem:[#allocation2 + $0xe8] sm:$0xff] }
  0xde   :  { %1267 = vst.msk [vmem:[%s2982_s4 + $0x4] sm:$0xf] %vm1265_vm1, %v1861_v27  ;;  %1283 = vst.msk [vmem:[%s2982_s4 + $0x44] sm:$0xf] %vm1265_vm1, %v1877_v28  ;;  %v1882_v38 = vpack.c.bf16 %v1127_v33, %v1127_v33  ;;  %v2025_v44 = vpop.f32.mrf.mxu0  ;;  %v2041_v45 = vpop.f32.mrf.mxu1  ;;  %v558_v27 = vld [vmem:[#allocation3 + $0x10] sm:$0xff] }
  0xdf   :  { %534 = vst.msk [vmem:[#allocation2 + $0x50] sm:$0xff] %vm25_vm0, %v502_v29  ;;  %550 = vst.msk [vmem:[#allocation2 + $0xd0] sm:$0xff] %vm25_vm0, %v518_v30  ;;  %v503_v49 = vadd.f32 %v2025_v44, %v165_v31  ;;  %v519_v50 = vadd.f32 %v2041_v45, %v181_v36  ;;  %v831_v32 = vld [vmem:[#allocation4 + $0x10] sm:$0xff] }
  0xe0   :  { %v1109_v42 = vld [vmem:[#allocation2 + $0x20] sm:$0xff]  ;;  %1272 = vst.msk [vmem:[%s2982_s4 + $0x18] sm:$0xf] %vm1265_vm1, %v1866_v37  ;;  %1288 = vst.msk [vmem:[%s2982_s4 + $0x58] sm:$0xf] %vm1265_vm1, %v1882_v38  ;;  %v400_v54 = vpop.f32.mrf.mxu0  ;;  %v464_v55 = vpop.f32.mrf.mxu1 }
  0xe1   :  { %v1125_v43 = vld [vmem:[#allocation2 + $0xa0] sm:$0xff]  ;;  %v1864_v47 = vpack.c.bf16 %v1109_v42, %v1109_v42  ;;  %532 = vst.msk [vmem:[#allocation2 + $0x40] sm:$0xff] %vm25_vm0, %v500_v39  ;;  %548 = vst.msk [vmem:[#allocation2 + $0xc0] sm:$0xff] %vm25_vm0, %v516_v40  ;;  %v501_v59 = vadd.f32 %v400_v54, %v163_v41  ;;  %v517_v60 = vadd.f32 %v464_v55, %v179_v46 }
  0xe2   :  { %v1880_v48 = vpack.c.bf16 %v1125_v43, %v1125_v43  ;;  %v1112_v52 = vld [vmem:[#allocation2 + $0x38] sm:$0xff]  ;;  %535 = vst.msk [vmem:[#allocation2 + $0x58] sm:$0xff] %vm25_vm0, %v503_v49  ;;  %551 = vst.msk [vmem:[#allocation2 + $0xd8] sm:$0xff] %vm25_vm0, %v519_v50  ;;  %v2028_v0 = vpop.f32.mrf.mxu0  ;;  %v2044_v1 = vpop.f32.mrf.mxu1  ;;  %v556_v37 = vld [vmem:[#allocation3] sm:$0xff] }
  0xe3   :  { %v1128_v53 = vld [vmem:[#allocation2 + $0xb8] sm:$0xff]  ;;  %1270 = vst.msk [vmem:[%s2982_s4 + $0x10] sm:$0xf] %vm1265_vm1, %v1864_v47  ;;  %v1867_v57 = vpack.c.bf16 %v1112_v52, %v1112_v52  ;;  %v506_v5 = vadd.f32 %v2028_v0, %v168_v51  ;;  %v522_v6 = vadd.f32 %v2044_v1, %v184_v56  ;;  %v829_v42 = vld [vmem:[#allocation4] sm:$0xff] }
  0xe4   :  { %1286 = vst.msk [vmem:[%s2982_s4 + $0x50] sm:$0xf] %vm1265_vm1, %v1880_v48  ;;  %v1883_v58 = vpack.c.bf16 %v1128_v53, %v1128_v53  ;;  %v1110_v62 = vld [vmem:[#allocation2 + $0x28] sm:$0xff]  ;;  %v413_v10 = vpop.f32.mrf.mxu0  ;;  %v477_v11 = vpop.f32.mrf.mxu1  ;;  %v559_v47 = vld [vmem:[#allocation3 + $0x18] sm:$0xff] }
  0xe5   :  { %v1126_v63 = vld [vmem:[#allocation2 + $0xa8] sm:$0xff]  ;;  %1273 = vst.msk [vmem:[%s2982_s4 + $0x1c] sm:$0xf] %vm1265_vm1, %v1867_v57  ;;  %v1865_v3 = vpack.c.bf16 %v1110_v62, %v1110_v62  ;;  %v504_v15 = vadd.f32 %v413_v10, %v166_v61  ;;  %v520_v16 = vadd.f32 %v477_v11, %v182_v2  ;;  %v832_v52 = vld [vmem:[#allocation4 + $0x18] sm:$0xff] }
  0xe6   :  { %1289 = vst.msk [vmem:[%s2982_s4 + $0x5c] sm:$0xf] %vm1265_vm1, %v1883_v58  ;;  %v1881_v4 = vpack.c.bf16 %v1126_v63, %v1126_v63  ;;  %v1115_v8 = vld [vmem:[#allocation2 + $0x50] sm:$0xff]  ;;  %v2029_v20 = vpop.f32.mrf.mxu0  ;;  %v2045_v21 = vpop.f32.mrf.mxu1  ;;  %v557_v57 = vld [vmem:[#allocation3 + $0x8] sm:$0xff] }
  0xe7   :  { %533 = vst.msk [vmem:[#allocation2 + $0x48] sm:$0xff] %vm25_vm0, %v501_v59  ;;  %549 = vst.msk [vmem:[#allocation2 + $0xc8] sm:$0xff] %vm25_vm0, %v517_v60  ;;  %v1131_v9 = vld [vmem:[#allocation2 + $0xd0] sm:$0xff]  ;;  %v1870_v13 = vpack.c.bf16 %v1115_v8, %v1115_v8  ;;  %v507_v25 = vadd.f32 %v2029_v20, %v169_v7  ;;  %v523_v26 = vadd.f32 %v2045_v21, %v185_v12  ;;  %v830_v62 = vld [vmem:[#allocation4 + $0x8] sm:$0xff] }
  0xe8   :  { %1271 = vst.msk [vmem:[%s2982_s4 + $0x14] sm:$0xf] %vm1265_vm1, %v1865_v3  ;;  %1287 = vst.msk [vmem:[%s2982_s4 + $0x54] sm:$0xf] %vm1265_vm1, %v1881_v4  ;;  %v1886_v14 = vpack.c.bf16 %v1131_v9, %v1131_v9  ;;  %v1113_v18 = vld [vmem:[#allocation2 + $0x40] sm:$0xff]  ;;  %v416_v30 = vpop.f32.mrf.mxu0  ;;  %v480_v31 = vpop.f32.mrf.mxu1  ;;  %v562_v3 = vld [vmem:[#allocation3 + $0x30] sm:$0xff] }
  0xe9   :  { %538 = vst.msk [vmem:[#allocation2 + $0x70] sm:$0xff] %vm25_vm0, %v506_v5  ;;  %554 = vst.msk [vmem:[#allocation2 + $0xf0] sm:$0xff] %vm25_vm0, %v522_v6  ;;  %v1129_v19 = vld [vmem:[#allocation2 + $0xc0] sm:$0xff]  ;;  %v1868_v23 = vpack.c.bf16 %v1113_v18, %v1113_v18  ;;  %v1116_v28 = vld [vmem:[#allocation2 + $0x58] sm:$0xff]  ;;  %v505_v35 = vadd.f32 %v416_v30, %v167_v17  ;;  %v521_v36 = vadd.f32 %v480_v31, %v183_v22 }
  0xea   :  { %1276 = vst.msk [vmem:[%s2982_s4 + $0x28] sm:$0xf] %vm1265_vm1, %v1870_v13  ;;  %1292 = vst.msk [vmem:[%s2982_s4 + $0x68] sm:$0xf] %vm1265_vm1, %v1886_v14  ;;  %v1884_v24 = vpack.c.bf16 %v1129_v19, %v1129_v19  ;;  %v1132_v29 = vld [vmem:[#allocation2 + $0xd8] sm:$0xff]  ;;  %v1871_v33 = vpack.c.bf16 %v1116_v28, %v1116_v28  ;;  %v2052_v40 = vpop.f32.mrf.mxu1  ;;  %v2088_v41 = vpop.f32.mrf.mxu0  ;;  %v835_v8 = vld [vmem:[#allocation4 + $0x30] sm:$0xff] }
  0xeb   :  { %536 = vst.msk [vmem:[#allocation2 + $0x60] sm:$0xff] %vm25_vm0, %v504_v15  ;;  %552 = vst.msk [vmem:[#allocation2 + $0xe0] sm:$0xff] %vm25_vm0, %v520_v16  ;;  %v1887_v34 = vpack.c.bf16 %v1132_v29, %v1132_v29  ;;  %v767_v45 = vadd.f32 %v2052_v40, %v558_v27  ;;  %v1040_v46 = vadd.f32 %v2088_v41, %v831_v32  ;;  %v560_v13 = vld [vmem:[#allocation3 + $0x20] sm:$0xff]  ;;  %v836_v28 = vld [vmem:[#allocation4 + $0x38] sm:$0xff] }
  0xec   :  { %1274 = vst.msk [vmem:[%s2982_s4 + $0x20] sm:$0xf] %vm1265_vm1, %v1868_v23  ;;  %1290 = vst.msk [vmem:[%s2982_s4 + $0x60] sm:$0xf] %vm1265_vm1, %v1884_v24  ;;  %v638_v50 = vpop.f32.mrf.mxu1  ;;  %v911_v51 = vpop.f32.mrf.mxu0  ;;  %v833_v18 = vld [vmem:[#allocation4 + $0x20] sm:$0xff]  ;;  %v563_v23 = vld [vmem:[#allocation3 + $0x38] sm:$0xff] }
  0xed   :  { %539 = vst.msk [vmem:[#allocation2 + $0x78] sm:$0xff] %vm25_vm0, %v507_v25  ;;  %555 = vst.msk [vmem:[#allocation2 + $0xf8] sm:$0xff] %vm25_vm0, %v523_v26  ;;  %v765_v55 = vadd.f32 %v638_v50, %v556_v37  ;;  %v1038_v56 = vadd.f32 %v911_v51, %v829_v42 }
  0xee   :  { %v1114_v38 = vld [vmem:[#allocation2 + $0x48] sm:$0xff]  ;;  %1277 = vst.msk [vmem:[%s2982_s4 + $0x2c] sm:$0xf] %vm1265_vm1, %v1871_v33  ;;  %1293 = vst.msk [vmem:[%s2982_s4 + $0x6c] sm:$0xf] %vm1265_vm1, %v1887_v34  ;;  %v2053_v60 = vpop.f32.mrf.mxu1  ;;  %v2089_v61 = vpop.f32.mrf.mxu0 }
  0xef   :  { %v1130_v39 = vld [vmem:[#allocation2 + $0xc8] sm:$0xff]  ;;  %v1869_v43 = vpack.c.bf16 %v1114_v38, %v1114_v38  ;;  %537 = vst.msk [vmem:[#allocation2 + $0x68] sm:$0xff] %vm25_vm0, %v505_v35  ;;  %553 = vst.msk [vmem:[#allocation2 + $0xe8] sm:$0xff] %vm25_vm0, %v521_v36  ;;  %v768_v1 = vadd.f32 %v2053_v60, %v559_v47  ;;  %v1041_v2 = vadd.f32 %v2089_v61, %v832_v52 }
  0xf0   :  { %v1885_v44 = vpack.c.bf16 %v1130_v39, %v1130_v39  ;;  %v1119_v48 = vld [vmem:[#allocation2 + $0x70] sm:$0xff]  ;;  %799 = vst.msk [vmem:[#allocation3 + $0x10] sm:$0xff] %vm25_vm0, %v767_v45  ;;  %1072 = vst.msk [vmem:[#allocation4 + $0x10] sm:$0xff] %vm25_vm0, %v1040_v46  ;;  %v641_v6 = vpop.f32.mrf.mxu1  ;;  %v914_v7 = vpop.f32.mrf.mxu0  ;;  %v561_v33 = vld [vmem:[#allocation3 + $0x28] sm:$0xff] }
  0xf1   :  { %v1135_v49 = vld [vmem:[#allocation2 + $0xf0] sm:$0xff]  ;;  %1275 = vst.msk [vmem:[%s2982_s4 + $0x24] sm:$0xf] %vm1265_vm1, %v1869_v43  ;;  %v1874_v53 = vpack.c.bf16 %v1119_v48, %v1119_v48  ;;  %v766_v11 = vadd.f32 %v641_v6, %v557_v57  ;;  %v1039_v12 = vadd.f32 %v914_v7, %v830_v62  ;;  %v834_v38 = vld [vmem:[#allocation4 + $0x28] sm:$0xff] }
  0xf2   :  { %1291 = vst.msk [vmem:[%s2982_s4 + $0x64] sm:$0xf] %vm1265_vm1, %v1885_v44  ;;  %v1890_v54 = vpack.c.bf16 %v1135_v49, %v1135_v49  ;;  %v1117_v58 = vld [vmem:[#allocation2 + $0x60] sm:$0xff]  ;;  %v2056_v16 = vpop.f32.mrf.mxu1  ;;  %v2092_v17 = vpop.f32.mrf.mxu0  ;;  %v566_v43 = vld [vmem:[#allocation3 + $0x50] sm:$0xff] }
  0xf3   :  { %v1133_v59 = vld [vmem:[#allocation2 + $0xe0] sm:$0xff]  ;;  %1280 = vst.msk [vmem:[%s2982_s4 + $0x38] sm:$0xf] %vm1265_vm1, %v1874_v53  ;;  %v1872_v63 = vpack.c.bf16 %v1117_v58, %v1117_v58  ;;  %v771_v21 = vadd.f32 %v2056_v16, %v562_v3  ;;  %v1044_v22 = vadd.f32 %v2092_v17, %v835_v8  ;;  %v839_v48 = vld [vmem:[#allocation4 + $0x50] sm:$0xff] }
  0xf4   :  { %1296 = vst.msk [vmem:[%s2982_s4 + $0x78] sm:$0xf] %vm1265_vm1, %v1890_v54  ;;  %v1888_v0 = vpack.c.bf16 %v1133_v59, %v1133_v59  ;;  %v1120_v4 = vld [vmem:[#allocation2 + $0x78] sm:$0xff]  ;;  %v654_v26 = vpop.f32.mrf.mxu1  ;;  %v927_v27 = vpop.f32.mrf.mxu0  ;;  %v564_v53 = vld [vmem:[#allocation3 + $0x40] sm:$0xff] }
  0xf5   :  { %797 = vst.msk [vmem:[#allocation3] sm:$0xff] %vm25_vm0, %v765_v55  ;;  %1070 = vst.msk [vmem:[#allocation4] sm:$0xff] %vm25_vm0, %v1038_v56  ;;  %v1136_v5 = vld [vmem:[#allocation2 + $0xf8] sm:$0xff]  ;;  %v1875_v9 = vpack.c.bf16 %v1120_v4, %v1120_v4  ;;  %v769_v31 = vadd.f32 %v654_v26, %v560_v13  ;;  %v1042_v32 = vadd.f32 %v927_v27, %v833_v18  ;;  %v837_v58 = vld [vmem:[#allocation4 + $0x40] sm:$0xff] }
  0xf6   :  { %1278 = vst.msk [vmem:[%s2982_s4 + $0x30] sm:$0xf] %vm1265_vm1, %v1872_v63  ;;  %1294 = vst.msk [vmem:[%s2982_s4 + $0x70] sm:$0xf] %vm1265_vm1, %v1888_v0  ;;  %v1891_v10 = vpack.c.bf16 %v1136_v5, %v1136_v5  ;;  %v1118_v14 = vld [vmem:[#allocation2 + $0x68] sm:$0xff]  ;;  %v2057_v36 = vpop.f32.mrf.mxu1  ;;  %v2093_v37 = vpop.f32.mrf.mxu0  ;;  %v567_v63 = vld [vmem:[#allocation3 + $0x58] sm:$0xff] }
  0xf7   :  { %800 = vst.msk [vmem:[#allocation3 + $0x18] sm:$0xff] %vm25_vm0, %v768_v1  ;;  %1073 = vst.msk [vmem:[#allocation4 + $0x18] sm:$0xff] %vm25_vm0, %v1041_v2  ;;  %v1134_v15 = vld [vmem:[#allocation2 + $0xe8] sm:$0xff]  ;;  %v1873_v19 = vpack.c.bf16 %v1118_v14, %v1118_v14  ;;  %v1300_v24 = vld [vmem:[#allocation3 + $0x10] sm:$0xff]  ;;  %v772_v41 = vadd.f32 %v2057_v36, %v563_v23  ;;  %v1045_v42 = vadd.f32 %v2093_v37, %v836_v28 }
  0xf8   :  { %1281 = vst.msk [vmem:[%s2982_s4 + $0x3c] sm:$0xf] %vm1265_vm1, %v1875_v9  ;;  %1297 = vst.msk [vmem:[%s2982_s4 + $0x7c] sm:$0xf] %vm1265_vm1, %v1891_v10  ;;  %v1889_v20 = vpack.c.bf16 %v1134_v15, %v1134_v15  ;;  %v1492_v25 = vld [vmem:[#allocation4 + $0x10] sm:$0xff]  ;;  %v1894_v29 = vpack.c.bf16 %v1300_v24, %v1300_v24  ;;  %v657_v46 = vpop.f32.mrf.mxu1  ;;  %v930_v47 = vpop.f32.mrf.mxu0  ;;  %v840_v4 = vld [vmem:[#allocation4 + $0x58] sm:$0xff] }
  0xf9   :  { %798 = vst.msk [vmem:[#allocation3 + $0x8] sm:$0xff] %vm25_vm0, %v766_v11  ;;  %1071 = vst.msk [vmem:[#allocation4 + $0x8] sm:$0xff] %vm25_vm0, %v1039_v12  ;;  %v1926_v30 = vpack.c.bf16 %v1492_v25, %v1492_v25  ;;  %v770_v51 = vadd.f32 %v657_v46, %v561_v33  ;;  %v1043_v52 = vadd.f32 %v930_v47, %v834_v38  ;;  %v565_v9 = vld [vmem:[#allocation3 + $0x48] sm:$0xff]  ;;  %v843_v24 = vld [vmem:[#allocation4 + $0x70] sm:$0xff] }
  0xfa   :  { %1279 = vst.msk [vmem:[%s2982_s4 + $0x34] sm:$0xf] %vm1265_vm1, %v1873_v19  ;;  %1295 = vst.msk [vmem:[%s2982_s4 + $0x74] sm:$0xf] %vm1265_vm1, %v1889_v20  ;;  %v2060_v56 = vpop.f32.mrf.mxu1  ;;  %v2096_v57 = vpop.f32.mrf.mxu0  ;;  %v838_v14 = vld [vmem:[#allocation4 + $0x48] sm:$0xff]  ;;  %v570_v19 = vld [vmem:[#allocation3 + $0x70] sm:$0xff] }
  0xfb   :  { %803 = vst.msk [vmem:[#allocation3 + $0x30] sm:$0xff] %vm25_vm0, %v771_v21  ;;  %1076 = vst.msk [vmem:[#allocation4 + $0x30] sm:$0xff] %vm25_vm0, %v1044_v22  ;;  %v775_v61 = vadd.f32 %v2060_v56, %v566_v43  ;;  %v1048_v62 = vadd.f32 %v2096_v57, %v839_v48 }
  0xfc   :  { %v1298_v34 = vld [vmem:[#allocation3] sm:$0xff]  ;;  %1460 = vst.msk [vmem:[%s2983_s5 + $0x8] sm:$0xf] %vm1265_vm1, %v1894_v29  ;;  %1652 = vst.msk [vmem:[%s2984_s6 + $0x8] sm:$0xf] %vm1265_vm1, %v1926_v30  ;;  %v670_v2 = vpop.f32.mrf.mxu1  ;;  %v943_v3 = vpop.f32.mrf.mxu0 }
  0xfd   :  { %v1490_v35 = vld [vmem:[#allocation4] sm:$0xff]  ;;  %v1892_v39 = vpack.c.bf16 %v1298_v34, %v1298_v34  ;;  %801 = vst.msk [vmem:[#allocation3 + $0x20] sm:$0xff] %vm25_vm0, %v769_v31  ;;  %1074 = vst.msk [vmem:[#allocation4 + $0x20] sm:$0xff] %vm25_vm0, %v1042_v32  ;;  %v773_v7 = vadd.f32 %v670_v2, %v564_v53  ;;  %v1046_v8 = vadd.f32 %v943_v3, %v837_v58 }
  0xfe   :  { %v1924_v40 = vpack.c.bf16 %v1490_v35, %v1490_v35  ;;  %v1301_v44 = vld [vmem:[#allocation3 + $0x18] sm:$0xff]  ;;  %804 = vst.msk [vmem:[#allocation3 + $0x38] sm:$0xff] %vm25_vm0, %v772_v41  ;;  %1077 = vst.msk [vmem:[#allocation4 + $0x38] sm:$0xff] %vm25_vm0, %v1045_v42  ;;  %v2061_v12 = vpop.f32.mrf.mxu1  ;;  %v2097_v13 = vpop.f32.mrf.mxu0  ;;  %v568_v29 = vld [vmem:[#allocation3 + $0x60] sm:$0xff] }
  0xff   :  { %v1493_v45 = vld [vmem:[#allocation4 + $0x18] sm:$0xff]  ;;  %1458 = vst.msk [vmem:[%s2983_s5] sm:$0xf] %vm1265_vm1, %v1892_v39  ;;  %v1895_v49 = vpack.c.bf16 %v1301_v44, %v1301_v44  ;;  %v776_v17 = vadd.f32 %v2061_v12, %v567_v63  ;;  %v1049_v18 = vadd.f32 %v2097_v13, %v840_v4  ;;  %v841_v34 = vld [vmem:[#allocation4 + $0x60] sm:$0xff] }
 0x100   :  { %1650 = vst.msk [vmem:[%s2984_s6] sm:$0xf] %vm1265_vm1, %v1924_v40  ;;  %v1927_v50 = vpack.c.bf16 %v1493_v45, %v1493_v45  ;;  %v1299_v54 = vld [vmem:[#allocation3 + $0x8] sm:$0xff]  ;;  %v673_v22 = vpop.f32.mrf.mxu1  ;;  %v946_v23 = vpop.f32.mrf.mxu0  ;;  %v571_v39 = vld [vmem:[#allocation3 + $0x78] sm:$0xff] }
 0x101   :  { %v1491_v55 = vld [vmem:[#allocation4 + $0x8] sm:$0xff]  ;;  %1461 = vst.msk [vmem:[%s2983_s5 + $0xc] sm:$0xf] %vm1265_vm1, %v1895_v49  ;;  %v1893_v59 = vpack.c.bf16 %v1299_v54, %v1299_v54  ;;  %v774_v27 = vadd.f32 %v673_v22, %v565_v9  ;;  %v1047_v28 = vadd.f32 %v946_v23, %v838_v14  ;;  %v844_v44 = vld [vmem:[#allocation4 + $0x78] sm:$0xff] }
 0x102   :  { %1653 = vst.msk [vmem:[%s2984_s6 + $0xc] sm:$0xf] %vm1265_vm1, %v1927_v50  ;;  %v1925_v60 = vpack.c.bf16 %v1491_v55, %v1491_v55  ;;  %v1304_v0 = vld [vmem:[#allocation3 + $0x30] sm:$0xff]  ;;  %v2064_v32 = vpop.f32.mrf.mxu1  ;;  %v2100_v33 = vpop.f32.mrf.mxu0  ;;  %v569_v49 = vld [vmem:[#allocation3 + $0x68] sm:$0xff] }
 0x103   :  { %802 = vst.msk [vmem:[#allocation3 + $0x28] sm:$0xff] %vm25_vm0, %v770_v51  ;;  %1075 = vst.msk [vmem:[#allocation4 + $0x28] sm:$0xff] %vm25_vm0, %v1043_v52  ;;  %v1496_v1 = vld [vmem:[#allocation4 + $0x30] sm:$0xff]  ;;  %v1898_v5 = vpack.c.bf16 %v1304_v0, %v1304_v0  ;;  %v779_v37 = vadd.f32 %v2064_v32, %v570_v19  ;;  %v1052_v38 = vadd.f32 %v2100_v33, %v843_v24  ;;  %v842_v54 = vld [vmem:[#allocation4 + $0x68] sm:$0xff] }
 0x104   :  { %1459 = vst.msk [vmem:[%s2983_s5 + $0x4] sm:$0xf] %vm1265_vm1, %v1893_v59  ;;  %1651 = vst.msk [vmem:[%s2984_s6 + $0x4] sm:$0xf] %vm1265_vm1, %v1925_v60  ;;  %v1930_v6 = vpack.c.bf16 %v1496_v1, %v1496_v1  ;;  %v1302_v10 = vld [vmem:[#allocation3 + $0x20] sm:$0xff]  ;;  %v686_v42 = vpop.f32.mrf.mxu1  ;;  %v959_v43 = vpop.f32.mrf.mxu0  ;;  %v574_v59 = vld [vmem:[#allocation3 + $0x90] sm:$0xff] }
 0x105   :  { %807 = vst.msk [vmem:[#allocation3 + $0x50] sm:$0xff] %vm25_vm0, %v775_v61  ;;  %1080 = vst.msk [vmem:[#allocation4 + $0x50] sm:$0xff] %vm25_vm0, %v1048_v62  ;;  %v1494_v11 = vld [vmem:[#allocation4 + $0x20] sm:$0xff]  ;;  %v1896_v15 = vpack.c.bf16 %v1302_v10, %v1302_v10  ;;  %v1305_v20 = vld [vmem:[#allocation3 + $0x38] sm:$0xff]  ;;  %v777_v47 = vadd.f32 %v686_v42, %v568_v29  ;;  %v1050_v48 = vadd.f32 %v959_v43, %v841_v34 }
 0x106   :  { %1464 = vst.msk [vmem:[%s2983_s5 + $0x18] sm:$0xf] %vm1265_vm1, %v1898_v5  ;;  %1656 = vst.msk [vmem:[%s2984_s6 + $0x18] sm:$0xf] %vm1265_vm1, %v1930_v6  ;;  %v1928_v16 = vpack.c.bf16 %v1494_v11, %v1494_v11  ;;  %v1497_v21 = vld [vmem:[#allocation4 + $0x38] sm:$0xff]  ;;  %v1899_v25 = vpack.c.bf16 %v1305_v20, %v1305_v20  ;;  %v2065_v52 = vpop.f32.mrf.mxu1  ;;  %v2101_v53 = vpop.f32.mrf.mxu0  ;;  %v847_v0 = vld [vmem:[#allocation4 + $0x90] sm:$0xff] }
 0x107   :  { %805 = vst.msk [vmem:[#allocation3 + $0x40] sm:$0xff] %vm25_vm0, %v773_v7  ;;  %1078 = vst.msk [vmem:[#allocation4 + $0x40] sm:$0xff] %vm25_vm0, %v1046_v8  ;;  %v1931_v26 = vpack.c.bf16 %v1497_v21, %v1497_v21  ;;  %v780_v57 = vadd.f32 %v2065_v52, %v571_v39  ;;  %v1053_v58 = vadd.f32 %v2101_v53, %v844_v44  ;;  %v572_v5 = vld [vmem:[#allocation3 + $0x80] sm:$0xff]  ;;  %v848_v20 = vld [vmem:[#allocation4 + $0x98] sm:$0xff] }
 0x108   :  { %1462 = vst.msk [vmem:[%s2983_s5 + $0x10] sm:$0xf] %vm1265_vm1, %v1896_v15  ;;  %1654 = vst.msk [vmem:[%s2984_s6 + $0x10] sm:$0xf] %vm1265_vm1, %v1928_v16  ;;  %v689_v62 = vpop.f32.mrf.mxu1  ;;  %v962_v63 = vpop.f32.mrf.mxu0  ;;  %v845_v10 = vld [vmem:[#allocation4 + $0x80] sm:$0xff]  ;;  %v575_v15 = vld [vmem:[#allocation3 + $0x98] sm:$0xff] }
 0x109   :  { %808 = vst.msk [vmem:[#allocation3 + $0x58] sm:$0xff] %vm25_vm0, %v776_v17  ;;  %1081 = vst.msk [vmem:[#allocation4 + $0x58] sm:$0xff] %vm25_vm0, %v1049_v18  ;;  %v778_v3 = vadd.f32 %v689_v62, %v569_v49  ;;  %v1051_v4 = vadd.f32 %v962_v63, %v842_v54 }
 0x10a   :  { %v1303_v30 = vld [vmem:[#allocation3 + $0x28] sm:$0xff]  ;;  %1465 = vst.msk [vmem:[%s2983_s5 + $0x1c] sm:$0xf] %vm1265_vm1, %v1899_v25  ;;  %1657 = vst.msk [vmem:[%s2984_s6 + $0x1c] sm:$0xf] %vm1265_vm1, %v1931_v26  ;;  %v2068_v8 = vpop.f32.mrf.mxu1  ;;  %v2104_v9 = vpop.f32.mrf.mxu0 }
 0x10b   :  { %v1495_v31 = vld [vmem:[#allocation4 + $0x28] sm:$0xff]  ;;  %v1897_v35 = vpack.c.bf16 %v1303_v30, %v1303_v30  ;;  %806 = vst.msk [vmem:[#allocation3 + $0x48] sm:$0xff] %vm25_vm0, %v774_v27  ;;  %1079 = vst.msk [vmem:[#allocation4 + $0x48] sm:$0xff] %vm25_vm0, %v1047_v28  ;;  %v783_v13 = vadd.f32 %v2068_v8, %v574_v59  ;;  %v1056_v14 = vadd.f32 %v2104_v9, %v847_v0 }
 0x10c   :  { %v1929_v36 = vpack.c.bf16 %v1495_v31, %v1495_v31  ;;  %v1308_v40 = vld [vmem:[#allocation3 + $0x50] sm:$0xff]  ;;  %811 = vst.msk [vmem:[#allocation3 + $0x70] sm:$0xff] %vm25_vm0, %v779_v37  ;;  %1084 = vst.msk [vmem:[#allocation4 + $0x70] sm:$0xff] %vm25_vm0, %v1052_v38  ;;  %v702_v18 = vpop.f32.mrf.mxu1  ;;  %v975_v19 = vpop.f32.mrf.mxu0  ;;  %v573_v25 = vld [vmem:[#allocation3 + $0x88] sm:$0xff] }
 0x10d   :  { %v1500_v41 = vld [vmem:[#allocation4 + $0x50] sm:$0xff]  ;;  %1463 = vst.msk [vmem:[%s2983_s5 + $0x14] sm:$0xf] %vm1265_vm1, %v1897_v35  ;;  %v1902_v45 = vpack.c.bf16 %v1308_v40, %v1308_v40  ;;  %v781_v23 = vadd.f32 %v702_v18, %v572_v5  ;;  %v1054_v24 = vadd.f32 %v975_v19, %v845_v10  ;;  %v846_v30 = vld [vmem:[#allocation4 + $0x88] sm:$0xff] }
 0x10e   :  { %1655 = vst.msk [vmem:[%s2984_s6 + $0x14] sm:$0xf] %vm1265_vm1, %v1929_v36  ;;  %v1934_v46 = vpack.c.bf16 %v1500_v41, %v1500_v41  ;;  %v1306_v50 = vld [vmem:[#allocation3 + $0x40] sm:$0xff]  ;;  %v2069_v28 = vpop.f32.mrf.mxu1  ;;  %v2105_v29 = vpop.f32.mrf.mxu0  ;;  %v578_v35 = vld [vmem:[#allocation3 + $0xb0] sm:$0xff] }
 0x10f   :  { %v1498_v51 = vld [vmem:[#allocation4 + $0x40] sm:$0xff]  ;;  %1468 = vst.msk [vmem:[%s2983_s5 + $0x28] sm:$0xf] %vm1265_vm1, %v1902_v45  ;;  %v1900_v55 = vpack.c.bf16 %v1306_v50, %v1306_v50  ;;  %v784_v33 = vadd.f32 %v2069_v28, %v575_v15  ;;  %v1057_v34 = vadd.f32 %v2105_v29, %v848_v20  ;;  %v851_v40 = vld [vmem:[#allocation4 + $0xb0] sm:$0xff] }
 0x110   :  { %1660 = vst.msk [vmem:[%s2984_s6 + $0x28] sm:$0xf] %vm1265_vm1, %v1934_v46  ;;  %v1932_v56 = vpack.c.bf16 %v1498_v51, %v1498_v51  ;;  %v1309_v60 = vld [vmem:[#allocation3 + $0x58] sm:$0xff]  ;;  %v705_v38 = vpop.f32.mrf.mxu1  ;;  %v978_v39 = vpop.f32.mrf.mxu0  ;;  %v576_v45 = vld [vmem:[#allocation3 + $0xa0] sm:$0xff] }
 0x111   :  { %809 = vst.msk [vmem:[#allocation3 + $0x60] sm:$0xff] %vm25_vm0, %v777_v47  ;;  %1082 = vst.msk [vmem:[#allocation4 + $0x60] sm:$0xff] %vm25_vm0, %v1050_v48  ;;  %v1501_v61 = vld [vmem:[#allocation4 + $0x58] sm:$0xff]  ;;  %v1903_v1 = vpack.c.bf16 %v1309_v60, %v1309_v60  ;;  %v782_v43 = vadd.f32 %v705_v38, %v573_v25  ;;  %v1055_v44 = vadd.f32 %v978_v39, %v846_v30  ;;  %v849_v50 = vld [vmem:[#allocation4 + $0xa0] sm:$0xff] }
 0x112   :  { %1466 = vst.msk [vmem:[%s2983_s5 + $0x20] sm:$0xf] %vm1265_vm1, %v1900_v55  ;;  %1658 = vst.msk [vmem:[%s2984_s6 + $0x20] sm:$0xf] %vm1265_vm1, %v1932_v56  ;;  %v1935_v2 = vpack.c.bf16 %v1501_v61, %v1501_v61  ;;  %v1307_v6 = vld [vmem:[#allocation3 + $0x48] sm:$0xff]  ;;  %v2072_v48 = vpop.f32.mrf.mxu1  ;;  %v2108_v49 = vpop.f32.mrf.mxu0  ;;  %v579_v55 = vld [vmem:[#allocation3 + $0xb8] sm:$0xff] }
 0x113   :  { %812 = vst.msk [vmem:[#allocation3 + $0x78] sm:$0xff] %vm25_vm0, %v780_v57  ;;  %1085 = vst.msk [vmem:[#allocation4 + $0x78] sm:$0xff] %vm25_vm0, %v1053_v58  ;;  %v1499_v7 = vld [vmem:[#allocation4 + $0x48] sm:$0xff]  ;;  %v1901_v11 = vpack.c.bf16 %v1307_v6, %v1307_v6  ;;  %v1312_v16 = vld [vmem:[#allocation3 + $0x70] sm:$0xff]  ;;  %v787_v53 = vadd.f32 %v2072_v48, %v578_v35  ;;  %v1060_v54 = vadd.f32 %v2108_v49, %v851_v40 }
 0x114   :  { %1469 = vst.msk [vmem:[%s2983_s5 + $0x2c] sm:$0xf] %vm1265_vm1, %v1903_v1  ;;  %1661 = vst.msk [vmem:[%s2984_s6 + $0x2c] sm:$0xf] %vm1265_vm1, %v1935_v2  ;;  %v1933_v12 = vpack.c.bf16 %v1499_v7, %v1499_v7  ;;  %v1504_v17 = vld [vmem:[#allocation4 + $0x70] sm:$0xff]  ;;  %v1906_v21 = vpack.c.bf16 %v1312_v16, %v1312_v16  ;;  %v718_v58 = vpop.f32.mrf.mxu1  ;;  %v991_v59 = vpop.f32.mrf.mxu0  ;;  %v852_v60 = vld [vmem:[#allocation4 + $0xb8] sm:$0xff] }
 0x115   :  { %810 = vst.msk [vmem:[#allocation3 + $0x68] sm:$0xff] %vm25_vm0, %v778_v3  ;;  %1083 = vst.msk [vmem:[#allocation4 + $0x68] sm:$0xff] %vm25_vm0, %v1051_v4  ;;  %v1938_v22 = vpack.c.bf16 %v1504_v17, %v1504_v17  ;;  %v785_v63 = vadd.f32 %v718_v58, %v576_v45  ;;  %v1058_v0 = vadd.f32 %v991_v59, %v849_v50  ;;  %v577_v1 = vld [vmem:[#allocation3 + $0xa8] sm:$0xff]  ;;  %v855_v16 = vld [vmem:[#allocation4 + $0xd0] sm:$0xff] }
 0x116   :  { %1467 = vst.msk [vmem:[%s2983_s5 + $0x24] sm:$0xf] %vm1265_vm1, %v1901_v11  ;;  %1659 = vst.msk [vmem:[%s2984_s6 + $0x24] sm:$0xf] %vm1265_vm1, %v1933_v12  ;;  %v2073_v4 = vpop.f32.mrf.mxu1  ;;  %v2109_v5 = vpop.f32.mrf.mxu0  ;;  %v850_v6 = vld [vmem:[#allocation4 + $0xa8] sm:$0xff]  ;;  %v582_v11 = vld [vmem:[#allocation3 + $0xd0] sm:$0xff] }
 0x117   :  { %815 = vst.msk [vmem:[#allocation3 + $0x90] sm:$0xff] %vm25_vm0, %v783_v13  ;;  %1088 = vst.msk [vmem:[#allocation4 + $0x90] sm:$0xff] %vm25_vm0, %v1056_v14  ;;  %v788_v9 = vadd.f32 %v2073_v4, %v579_v55  ;;  %v1061_v10 = vadd.f32 %v2109_v5, %v852_v60 }
 0x118   :  { %v1310_v26 = vld [vmem:[#allocation3 + $0x60] sm:$0xff]  ;;  %1472 = vst.msk [vmem:[%s2983_s5 + $0x38] sm:$0xf] %vm1265_vm1, %v1906_v21  ;;  %1664 = vst.msk [vmem:[%s2984_s6 + $0x38] sm:$0xf] %vm1265_vm1, %v1938_v22  ;;  %v721_v14 = vpop.f32.mrf.mxu1  ;;  %v994_v15 = vpop.f32.mrf.mxu0 }
 0x119   :  { %v1502_v27 = vld [vmem:[#allocation4 + $0x60] sm:$0xff]  ;;  %v1904_v31 = vpack.c.bf16 %v1310_v26, %v1310_v26  ;;  %813 = vst.msk [vmem:[#allocation3 + $0x80] sm:$0xff] %vm25_vm0, %v781_v23  ;;  %1086 = vst.msk [vmem:[#allocation4 + $0x80] sm:$0xff] %vm25_vm0, %v1054_v24  ;;  %v786_v19 = vadd.f32 %v721_v14, %v577_v1  ;;  %v1059_v20 = vadd.f32 %v994_v15, %v850_v6 }
 0x11a   :  { %v1936_v32 = vpack.c.bf16 %v1502_v27, %v1502_v27  ;;  %v1313_v36 = vld [vmem:[#allocation3 + $0x78] sm:$0xff]  ;;  %816 = vst.msk [vmem:[#allocation3 + $0x98] sm:$0xff] %vm25_vm0, %v784_v33  ;;  %1089 = vst.msk [vmem:[#allocation4 + $0x98] sm:$0xff] %vm25_vm0, %v1057_v34  ;;  %v580_v21 = vld [vmem:[#allocation3 + $0xc0] sm:$0xff]  ;;  %v2076_v24 = vpop.f32.mrf.mxu1  ;;  %v2112_v25 = vpop.f32.mrf.mxu0 }
 0x11b   :  { %v1505_v37 = vld [vmem:[#allocation4 + $0x78] sm:$0xff]  ;;  %1470 = vst.msk [vmem:[%s2983_s5 + $0x30] sm:$0xf] %vm1265_vm1, %v1904_v31  ;;  %v1907_v41 = vpack.c.bf16 %v1313_v36, %v1313_v36  ;;  %v853_v26 = vld [vmem:[#allocation4 + $0xc0] sm:$0xff]  ;;  %v791_v29 = vadd.f32 %v2076_v24, %v582_v11  ;;  %v1064_v30 = vadd.f32 %v2112_v25, %v855_v16 }
 0x11c   :  { %1662 = vst.msk [vmem:[%s2984_s6 + $0x30] sm:$0xf] %vm1265_vm1, %v1936_v32  ;;  %v1939_v42 = vpack.c.bf16 %v1505_v37, %v1505_v37  ;;  %v1311_v46 = vld [vmem:[#allocation3 + $0x68] sm:$0xff]  ;;  %v583_v31 = vld [vmem:[#allocation3 + $0xd8] sm:$0xff]  ;;  %v734_v34 = vpop.f32.mrf.mxu1  ;;  %v1007_v35 = vpop.f32.mrf.mxu0 }
 0x11d   :  { %v1503_v47 = vld [vmem:[#allocation4 + $0x68] sm:$0xff]  ;;  %1473 = vst.msk [vmem:[%s2983_s5 + $0x3c] sm:$0xf] %vm1265_vm1, %v1907_v41  ;;  %v1905_v51 = vpack.c.bf16 %v1311_v46, %v1311_v46  ;;  %v856_v36 = vld [vmem:[#allocation4 + $0xd8] sm:$0xff]  ;;  %v789_v39 = vadd.f32 %v734_v34, %v580_v21  ;;  %v1062_v40 = vadd.f32 %v1007_v35, %v853_v26 }
 0x11e   :  { %1665 = vst.msk [vmem:[%s2984_s6 + $0x3c] sm:$0xf] %vm1265_vm1, %v1939_v42  ;;  %v1937_v52 = vpack.c.bf16 %v1503_v47, %v1503_v47  ;;  %v1316_v56 = vld [vmem:[#allocation3 + $0x90] sm:$0xff]  ;;  %v581_v41 = vld [vmem:[#allocation3 + $0xc8] sm:$0xff]  ;;  %v2113_v45 = vpop.f32.mrf.mxu0 }
 0x11f   :  { %814 = vst.msk [vmem:[#allocation3 + $0x88] sm:$0xff] %vm25_vm0, %v782_v43  ;;  %1087 = vst.msk [vmem:[#allocation4 + $0x88] sm:$0xff] %vm25_vm0, %v1055_v44  ;;  %v1508_v57 = vld [vmem:[#allocation4 + $0x90] sm:$0xff]  ;;  %v1910_v61 = vpack.c.bf16 %v1316_v56, %v1316_v56  ;;  %v2077_v44 = vpop.f32.mrf.mxu1  ;;  %v854_v46 = vld [vmem:[#allocation4 + $0xc8] sm:$0xff]  ;;  %v1065_v50 = vadd.f32 %v2113_v45, %v856_v36 }
 0x120   :  { %1471 = vst.msk [vmem:[%s2983_s5 + $0x34] sm:$0xf] %vm1265_vm1, %v1905_v51  ;;  %1663 = vst.msk [vmem:[%s2984_s6 + $0x34] sm:$0xf] %vm1265_vm1, %v1937_v52  ;;  %v1942_v62 = vpack.c.bf16 %v1508_v57, %v1508_v57  ;;  %v1314_v2 = vld [vmem:[#allocation3 + $0x80] sm:$0xff]  ;;  %v792_v49 = vadd.f32 %v2077_v44, %v583_v31  ;;  %v586_v51 = vld [vmem:[#allocation3 + $0xf0] sm:$0xff]  ;;  %v1010_v55 = vpop.f32.mrf.mxu0 }
 0x121   :  { %819 = vst.msk [vmem:[#allocation3 + $0xb0] sm:$0xff] %vm25_vm0, %v787_v53  ;;  %1092 = vst.msk [vmem:[#allocation4 + $0xb0] sm:$0xff] %vm25_vm0, %v1060_v54  ;;  %v1506_v3 = vld [vmem:[#allocation4 + $0x80] sm:$0xff]  ;;  %v1908_v7 = vpack.c.bf16 %v1314_v2, %v1314_v2  ;;  %v1317_v12 = vld [vmem:[#allocation3 + $0x98] sm:$0xff]  ;;  %v737_v54 = vpop.f32.mrf.mxu1  ;;  %v1063_v60 = vadd.f32 %v1010_v55, %v854_v46 }
 0x122   :  { %1476 = vst.msk [vmem:[%s2983_s5 + $0x48] sm:$0xf] %vm1265_vm1, %v1910_v61  ;;  %1668 = vst.msk [vmem:[%s2984_s6 + $0x48] sm:$0xf] %vm1265_vm1, %v1942_v62  ;;  %v1940_v8 = vpack.c.bf16 %v1506_v3, %v1506_v3  ;;  %v1509_v13 = vld [vmem:[#allocation4 + $0x98] sm:$0xff]  ;;  %v1911_v17 = vpack.c.bf16 %v1317_v12, %v1317_v12  ;;  %v859_v56 = vld [vmem:[#allocation4 + $0xf0] sm:$0xff]  ;;  %v790_v59 = vadd.f32 %v737_v54, %v581_v41  ;;  %v2116_v1 = vpop.f32.mrf.mxu0 }
 0x123   :  { %817 = vst.msk [vmem:[#allocation3 + $0xa0] sm:$0xff] %vm25_vm0, %v785_v63  ;;  %1090 = vst.msk [vmem:[#allocation4 + $0xa0] sm:$0xff] %vm25_vm0, %v1058_v0  ;;  %v1943_v18 = vpack.c.bf16 %v1509_v13, %v1509_v13  ;;  %v584_v61 = vld [vmem:[#allocation3 + $0xe0] sm:$0xff]  ;;  %v2080_v0 = vpop.f32.mrf.mxu1  ;;  %v1068_v6 = vadd.f32 %v2116_v1, %v859_v56  ;;  %v860_v12 = vld [vmem:[#allocation4 + $0xf8] sm:$0xff] }
 0x124   :  { %1474 = vst.msk [vmem:[%s2983_s5 + $0x40] sm:$0xf] %vm1265_vm1, %v1908_v7  ;;  %1666 = vst.msk [vmem:[%s2984_s6 + $0x40] sm:$0xf] %vm1265_vm1, %v1940_v8  ;;  %v857_v2 = vld [vmem:[#allocation4 + $0xe0] sm:$0xff]  ;;  %v795_v5 = vadd.f32 %v2080_v0, %v586_v51  ;;  %v587_v7 = vld [vmem:[#allocation3 + $0xf8] sm:$0xff]  ;;  %v1023_v11 = vpop.f32.mrf.mxu0 }
 0x125   :  { %820 = vst.msk [vmem:[#allocation3 + $0xb8] sm:$0xff] %vm25_vm0, %v788_v9  ;;  %1093 = vst.msk [vmem:[#allocation4 + $0xb8] sm:$0xff] %vm25_vm0, %v1061_v10  ;;  %v750_v10 = vpop.f32.mrf.mxu1  ;;  %v1066_v16 = vadd.f32 %v1023_v11, %v857_v2 }
 0x126   :  { %v1315_v22 = vld [vmem:[#allocation3 + $0x88] sm:$0xff]  ;;  %1477 = vst.msk [vmem:[%s2983_s5 + $0x4c] sm:$0xf] %vm1265_vm1, %v1911_v17  ;;  %1669 = vst.msk [vmem:[%s2984_s6 + $0x4c] sm:$0xf] %vm1265_vm1, %v1943_v18  ;;  %v793_v15 = vadd.f32 %v750_v10, %v584_v61  ;;  %v2117_v21 = vpop.f32.mrf.mxu0 }
 0x127   :  { %v1507_v23 = vld [vmem:[#allocation4 + $0x88] sm:$0xff]  ;;  %v1909_v27 = vpack.c.bf16 %v1315_v22, %v1315_v22  ;;  %818 = vst.msk [vmem:[#allocation3 + $0xa8] sm:$0xff] %vm25_vm0, %v786_v19  ;;  %1091 = vst.msk [vmem:[#allocation4 + $0xa8] sm:$0xff] %vm25_vm0, %v1059_v20  ;;  %v2081_v20 = vpop.f32.mrf.mxu1  ;;  %v1069_v26 = vadd.f32 %v2117_v21, %v860_v12 }
 0x128   :  { %v1941_v28 = vpack.c.bf16 %v1507_v23, %v1507_v23  ;;  %v1320_v32 = vld [vmem:[#allocation3 + $0xb0] sm:$0xff]  ;;  %823 = vst.msk [vmem:[#allocation3 + $0xd0] sm:$0xff] %vm25_vm0, %v791_v29  ;;  %1096 = vst.msk [vmem:[#allocation4 + $0xd0] sm:$0xff] %vm25_vm0, %v1064_v30  ;;  %v585_v17 = vld [vmem:[#allocation3 + $0xe8] sm:$0xff]  ;;  %v796_v25 = vadd.f32 %v2081_v20, %v587_v7  ;;  %v1026_v30 = vpop.f32.mrf.mxu0 }
 0x129   :  { %v1512_v33 = vld [vmem:[#allocation4 + $0xb0] sm:$0xff]  ;;  %1475 = vst.msk [vmem:[%s2983_s5 + $0x44] sm:$0xf] %vm1265_vm1, %v1909_v27  ;;  %v1914_v37 = vpack.c.bf16 %v1320_v32, %v1320_v32  ;;  %v858_v22 = vld [vmem:[#allocation4 + $0xe8] sm:$0xff]  ;;  %v753_v29 = vpop.f32.mrf.mxu1 }
 0x12a   :  { %1667 = vst.msk [vmem:[%s2984_s6 + $0x44] sm:$0xf] %vm1265_vm1, %v1941_v28  ;;  %v1946_v38 = vpack.c.bf16 %v1512_v33, %v1512_v33  ;;  %v1318_v42 = vld [vmem:[#allocation3 + $0xa0] sm:$0xff]  ;;  %v794_v33 = vadd.f32 %v753_v29, %v585_v17  ;;  %v1067_v34 = vadd.f32 %v1026_v30, %v858_v22 }
 0x12b   :  { %v1510_v43 = vld [vmem:[#allocation4 + $0xa0] sm:$0xff]  ;;  %1480 = vst.msk [vmem:[%s2983_s5 + $0x58] sm:$0xf] %vm1265_vm1, %v1914_v37  ;;  %v1912_v47 = vpack.c.bf16 %v1318_v42, %v1318_v42 }
 0x12c   :  { %1672 = vst.msk [vmem:[%s2984_s6 + $0x58] sm:$0xf] %vm1265_vm1, %v1946_v38  ;;  %v1944_v48 = vpack.c.bf16 %v1510_v43, %v1510_v43  ;;  %v1321_v52 = vld [vmem:[#allocation3 + $0xb8] sm:$0xff] }
 0x12d   :  { %821 = vst.msk [vmem:[#allocation3 + $0xc0] sm:$0xff] %vm25_vm0, %v789_v39  ;;  %1094 = vst.msk [vmem:[#allocation4 + $0xc0] sm:$0xff] %vm25_vm0, %v1062_v40  ;;  %v1513_v53 = vld [vmem:[#allocation4 + $0xb8] sm:$0xff]  ;;  %v1915_v57 = vpack.c.bf16 %v1321_v52, %v1321_v52 }
 0x12e   :  { %1478 = vst.msk [vmem:[%s2983_s5 + $0x50] sm:$0xf] %vm1265_vm1, %v1912_v47  ;;  %1670 = vst.msk [vmem:[%s2984_s6 + $0x50] sm:$0xf] %vm1265_vm1, %v1944_v48  ;;  %v1947_v58 = vpack.c.bf16 %v1513_v53, %v1513_v53  ;;  %v1319_v62 = vld [vmem:[#allocation3 + $0xa8] sm:$0xff] }
 0x12f   :  { %824 = vst.msk [vmem:[#allocation3 + $0xd8] sm:$0xff] %vm25_vm0, %v792_v49  ;;  %1097 = vst.msk [vmem:[#allocation4 + $0xd8] sm:$0xff] %vm25_vm0, %v1065_v50  ;;  %v1511_v63 = vld [vmem:[#allocation4 + $0xa8] sm:$0xff]  ;;  %v1913_v3 = vpack.c.bf16 %v1319_v62, %v1319_v62  ;;  %v1324_v8 = vld [vmem:[#allocation3 + $0xd0] sm:$0xff] }
 0x130   :  { %1481 = vst.msk [vmem:[%s2983_s5 + $0x5c] sm:$0xf] %vm1265_vm1, %v1915_v57  ;;  %1673 = vst.msk [vmem:[%s2984_s6 + $0x5c] sm:$0xf] %vm1265_vm1, %v1947_v58  ;;  %v1945_v4 = vpack.c.bf16 %v1511_v63, %v1511_v63  ;;  %v1516_v9 = vld [vmem:[#allocation4 + $0xd0] sm:$0xff]  ;;  %v1918_v13 = vpack.c.bf16 %v1324_v8, %v1324_v8 }
 0x131   :  { %822 = vst.msk [vmem:[#allocation3 + $0xc8] sm:$0xff] %vm25_vm0, %v790_v59  ;;  %1095 = vst.msk [vmem:[#allocation4 + $0xc8] sm:$0xff] %vm25_vm0, %v1063_v60  ;;  %v1950_v14 = vpack.c.bf16 %v1516_v9, %v1516_v9 }
 0x132   :  { %1479 = vst.msk [vmem:[%s2983_s5 + $0x54] sm:$0xf] %vm1265_vm1, %v1913_v3  ;;  %1671 = vst.msk [vmem:[%s2984_s6 + $0x54] sm:$0xf] %vm1265_vm1, %v1945_v4 }
 0x133   :  { %827 = vst.msk [vmem:[#allocation3 + $0xf0] sm:$0xff] %vm25_vm0, %v795_v5  ;;  %1100 = vst.msk [vmem:[#allocation4 + $0xf0] sm:$0xff] %vm25_vm0, %v1068_v6 }
 0x134   :  { %v1322_v18 = vld [vmem:[#allocation3 + $0xc0] sm:$0xff]  ;;  %1484 = vst.msk [vmem:[%s2983_s5 + $0x68] sm:$0xf] %vm1265_vm1, %v1918_v13  ;;  %1676 = vst.msk [vmem:[%s2984_s6 + $0x68] sm:$0xf] %vm1265_vm1, %v1950_v14 }
 0x135   :  { %v1514_v19 = vld [vmem:[#allocation4 + $0xc0] sm:$0xff]  ;;  %v1916_v23 = vpack.c.bf16 %v1322_v18, %v1322_v18  ;;  %825 = vst.msk [vmem:[#allocation3 + $0xe0] sm:$0xff] %vm25_vm0, %v793_v15  ;;  %1098 = vst.msk [vmem:[#allocation4 + $0xe0] sm:$0xff] %vm25_vm0, %v1066_v16 }
 0x136   :  { %v1948_v24 = vpack.c.bf16 %v1514_v19, %v1514_v19  ;;  %v1325_v27 = vld [vmem:[#allocation3 + $0xd8] sm:$0xff]  ;;  %828 = vst.msk [vmem:[#allocation3 + $0xf8] sm:$0xff] %vm25_vm0, %v796_v25  ;;  %1101 = vst.msk [vmem:[#allocation4 + $0xf8] sm:$0xff] %vm25_vm0, %v1069_v26 }
 0x137   :  { %v1517_v28 = vld [vmem:[#allocation4 + $0xd8] sm:$0xff]  ;;  %1482 = vst.msk [vmem:[%s2983_s5 + $0x60] sm:$0xf] %vm1265_vm1, %v1916_v23  ;;  %v1919_v31 = vpack.c.bf16 %v1325_v27, %v1325_v27 }
 0x138   :  { %1674 = vst.msk [vmem:[%s2984_s6 + $0x60] sm:$0xf] %vm1265_vm1, %v1948_v24  ;;  %v1951_v32 = vpack.c.bf16 %v1517_v28, %v1517_v28  ;;  %v1323_v35 = vld [vmem:[#allocation3 + $0xc8] sm:$0xff] }
 0x139   :  { %v1515_v36 = vld [vmem:[#allocation4 + $0xc8] sm:$0xff]  ;;  %1485 = vst.msk [vmem:[%s2983_s5 + $0x6c] sm:$0xf] %vm1265_vm1, %v1919_v31  ;;  %v1917_v37 = vpack.c.bf16 %v1323_v35, %v1323_v35 }
 0x13a   :  { %1677 = vst.msk [vmem:[%s2984_s6 + $0x6c] sm:$0xf] %vm1265_vm1, %v1951_v32  ;;  %v1949_v38 = vpack.c.bf16 %v1515_v36, %v1515_v36  ;;  %v1328_v39 = vld [vmem:[#allocation3 + $0xf0] sm:$0xff] }
 0x13b   :  { %826 = vst.msk [vmem:[#allocation3 + $0xe8] sm:$0xff] %vm25_vm0, %v794_v33  ;;  %1099 = vst.msk [vmem:[#allocation4 + $0xe8] sm:$0xff] %vm25_vm0, %v1067_v34  ;;  %v1520_v40 = vld [vmem:[#allocation4 + $0xf0] sm:$0xff]  ;;  %v1922_v41 = vpack.c.bf16 %v1328_v39, %v1328_v39 }
 0x13c   :  { %1483 = vst.msk [vmem:[%s2983_s5 + $0x64] sm:$0xf] %vm1265_vm1, %v1917_v37  ;;  %1675 = vst.msk [vmem:[%s2984_s6 + $0x64] sm:$0xf] %vm1265_vm1, %v1949_v38  ;;  %v1954_v42 = vpack.c.bf16 %v1520_v40, %v1520_v40  ;;  %v1326_v43 = vld [vmem:[#allocation3 + $0xe0] sm:$0xff] }
 0x13d   :  { %v1518_v44 = vld [vmem:[#allocation4 + $0xe0] sm:$0xff]  ;;  %1488 = vst.msk [vmem:[%s2983_s5 + $0x78] sm:$0xf] %vm1265_vm1, %v1922_v41  ;;  %v1920_v45 = vpack.c.bf16 %v1326_v43, %v1326_v43  ;;  %v1329_v47 = vld [vmem:[#allocation3 + $0xf8] sm:$0xff] }
 0x13e   :  { %1680 = vst.msk [vmem:[%s2984_s6 + $0x78] sm:$0xf] %vm1265_vm1, %v1954_v42  ;;  %v1952_v46 = vpack.c.bf16 %v1518_v44, %v1518_v44  ;;  %v1521_v48 = vld [vmem:[#allocation4 + $0xf8] sm:$0xff]  ;;  %v1923_v49 = vpack.c.bf16 %v1329_v47, %v1329_v47 }
 0x13f   :  { %1486 = vst.msk [vmem:[%s2983_s5 + $0x70] sm:$0xf] %vm1265_vm1, %v1920_v45  ;;  %v1955_v50 = vpack.c.bf16 %v1521_v48, %v1521_v48 }
 0x140   :  { %1678 = vst.msk [vmem:[%s2984_s6 + $0x70] sm:$0xf] %vm1265_vm1, %v1952_v46  ;;  %1489 = vst.msk [vmem:[%s2983_s5 + $0x7c] sm:$0xf] %vm1265_vm1, %v1923_v49 }
 0x141   :  { %1681 = vst.msk [vmem:[%s2984_s6 + $0x7c] sm:$0xf] %vm1265_vm1, %v1955_v50 }
 0x142   :  { %v1327_v51 = vld [vmem:[#allocation3 + $0xe8] sm:$0xff] }
 0x143   :  { %v1519_v52 = vld [vmem:[#allocation4 + $0xe8] sm:$0xff]  ;;  %v1921_v53 = vpack.c.bf16 %v1327_v51, %v1327_v51 }
 0x144   :  { %v1953_v54 = vpack.c.bf16 %v1519_v52, %v1519_v52 }
 0x145   :  { %1487 = vst.msk [vmem:[%s2983_s5 + $0x74] sm:$0xf] %vm1265_vm1, %v1921_v53 }
 0x146   :  { %1679 = vst.msk [vmem:[%s2984_s6 + $0x74] sm:$0xf] %vm1265_vm1, %v1953_v54 }

</bundles_post_ra>
